<compile_context>
chip_gen: v5e
topology: v5e:2x2
jax: 0.10.0
libtpu: 0.0.40
codegen_flags: <defaults>
</compile_context>

<pallas_src>
import functools

import jax
import jax.numpy as jnp
import numpy as np
from jax.experimental import pallas as pl
from jax.experimental.pallas import tpu as pltpu

# ----------------------------- hyper-parameters ------------------------------
HIDDEN = 128          # hidden_size (module default)
HEAD = 4              # number of attention heads (module default)
DK = HIDDEN // HEAD   # per-head dim = 32
BN_EPS = 1e-5


# --------------------------------- kernel ------------------------------------
def match_kernel(feat_ref, lang_ref, maskb_ref,
                 wq_ref, bq_ref, wk_ref, bk_ref, wv_ref, bv_ref,
                 wo_ref, bo_ref, w1_ref, b1_ref, w2_ref, b2_ref, w3_ref,
                 scal_ref, out_ref,
                 q_scr, k_scr, v_scr, *, L, Nk, compute_dtype):
    """One grid step == one scene (all L = len_num_max descriptions of it).

    feat block  : (1, Nq, D)       proposal features (queries), shared by all L descriptions
    lang block  : (1, L*Nk, D)     language features (keys/values) for the L descriptions
    maskb block : (1, L*Nk, 1)     1.0 => padding token (masked out of attention)
    out  block  : (1, 1, L*Nq)     per-description, per-proposal confidence (lane-dense)
    q_scr/k_scr/v_scr : per-head projection scratch in compute dtype (bounds live ranges)
    """
    cdt = compute_dtype
    f32 = jnp.float32
    Nq = feat_ref.shape[1]

    x = feat_ref[0]                        # (Nq, D)    compute dtype
    lang = lang_ref[0]                     # (L*Nk, D)  compute dtype
    negs = maskb_ref[0] * (-1e9)           # (L*Nk, 1) f32 -- hoisted out of all loops

    a1 = scal_ref[0]                       # PReLU alphas + final bias, SMEM scalars
    a2 = scal_ref[1]
    b3 = scal_ref[2]

    # --- per-head projections (1/sqrt(DK) folded into wq/bq), streamed to VMEM scratch ---
    for h in range(HEAD):                  # static loop (4 heads)
        q_scr[h] = (jnp.dot(x, wq_ref[h], preferred_element_type=f32)
                    + bq_ref[h]).astype(cdt)                       # (Nq, DK)
        k_scr[h] = (jnp.dot(lang, wk_ref[h], preferred_element_type=f32)
                    + bk_ref[h]).astype(cdt)                       # (L*Nk, DK)
        v_scr[h] = (jnp.dot(lang, wv_ref[h], preferred_element_type=f32)
                    + bv_ref[h]).astype(cdt)

    dn_nt = (((1,), (1,)), ((), ()))       # contract last dims of both  (A @ B.T)
    dn_tn = (((0,), (0,)), ((), ()))       # contract first dims of both (A.T @ B)

    # --- per-description: attention + match head fully fused (live set capped at (Nq,D)) ---
    for l in range(L):                     # static loop over descriptions of this scene
        neg_l = negs[l * Nk:(l + 1) * Nk, :]                       # (Nk, 1)
        o_l = None
        for h in range(HEAD):
            q_h = q_scr[h]                                         # (Nq, DK)
            k_lh = k_scr[h, l * Nk:(l + 1) * Nk, :]                # (Nk, DK)
            v_lh = v_scr[h, l * Nk:(l + 1) * Nk, :]
            # transposed scores: (Nk, Nq) => softmax elementwise work is lane-dense
            s = jax.lax.dot_general(k_lh, q_h, dn_nt,
                                    preferred_element_type=f32)    # (Nk, Nq)
            s = s + neg_l                                          # additive padding bias
            s = s - jnp.max(s, axis=0, keepdims=True)              # stable softmax (1, Nq)
            p = jnp.exp(s)
            inv = pl.reciprocal(jnp.sum(p, axis=0, keepdims=True),
                                approx=True)                       # EUP slot, (1, Nq)
            p = (p * inv).astype(cdt)                              # normalized probs (Nk, Nq)
            pv = jax.lax.dot_general(p, v_lh, dn_tn,
                                     preferred_element_type=f32)   # (Nq, DK)
            term = jnp.dot(pv.astype(cdt), wo_ref[h],
                           preferred_element_type=f32)             # (Nq, D)
            o_l = term if o_l is None else o_l + term

        o_l = o_l + bo_ref[...]                                    # (Nq, D) f32

        # match head: 1x1 convs with eval-mode BN pre-folded, PReLU in f32
        h1 = jnp.dot(o_l.astype(cdt), w1_ref[...],
                     preferred_element_type=f32) + b1_ref[...]
        h1 = jnp.where(h1 > 0, h1, a1 * h1)
        h2 = jnp.dot(h1.astype(cdt), w2_ref[...],
                     preferred_element_type=f32) + b2_ref[...]
        h2 = jnp.where(h2 > 0, h2, a2 * h2)

        # final Conv1d(D -> 1): lane-dense (1, Nq) row, stored straight into the output slab
        c = jax.lax.dot_general(w3_ref[...], h2.astype(cdt), dn_nt,
                                preferred_element_type=f32)        # (8, Nq), rows identical
        out_ref[0, :, l * Nq:(l + 1) * Nq] = c[0:1, :] + b3


# ------------------------ parameter preparation (host side) -------------------
def _prepare_params(params, compute_dtype):
    """Fold BN + attention scale, split weights per head, cast matmul weights."""
    (wq, bq, wk, bk, wv, bv, wo, bo,
     w1, b1, s1, t1, a1, w2, b2, s2, t2, a2, w3, b3) = params
    D = wq.shape[0]
    scale = 1.0 / (DK ** 0.5)

    def split_cols(w):    # (D, D) -> (HEAD, D, DK)
        return jnp.stack([w[:, h * DK:(h + 1) * DK] for h in range(HEAD)], axis=0)

    def split_bias(b):    # (1, D) -> (HEAD, 1, DK)
        return jnp.stack([b[:, h * DK:(h + 1) * DK] for h in range(HEAD)], axis=0)

    wq_h = split_cols(wq * scale).astype(compute_dtype)
    bq_h = split_bias(bq * scale).astype(jnp.float32)
    wk_h = split_cols(wk).astype(compute_dtype)
    bk_h = split_bias(bk).astype(jnp.float32)
    wv_h = split_cols(wv).astype(compute_dtype)
    bv_h = split_bias(bv).astype(jnp.float32)
    # concat_h(head_h) @ wo == sum_h head_h @ wo[h*DK:(h+1)*DK, :]
    wo_h = jnp.stack([wo[h * DK:(h + 1) * DK, :] for h in range(HEAD)], axis=0)
    wo_h = wo_h.astype(compute_dtype)                       # (HEAD, DK, D)
    bo_f = bo.astype(jnp.float32)

    # fold eval-mode BatchNorm (y*s + t) into the adjacent 1x1 convs
    w1f = (w1 * s1).astype(compute_dtype)
    b1f = (b1 * s1 + t1).astype(jnp.float32)
    w2f = (w2 * s2).astype(compute_dtype)
    b2f = (b2 * s2 + t2).astype(jnp.float32)

    # final conv weight as a replicated (8, D) row => MXU-friendly lane-dense (8, Nq) result
    w3r = jnp.broadcast_to(w3.T, (8, D)).astype(compute_dtype)

    scal = jnp.stack([a1[0, 0], a2[0, 0], b3[0, 0]]).astype(jnp.float32)   # SMEM scalars
    return (wq_h, bq_h, wk_h, bk_h, wv_h, bv_h, wo_h, bo_f,
            w1f, b1f, w2f, b2f, w3r, scal)


# -------------------------------- wrapper -------------------------------------
def match_module_forward(bbox_feature, lang_fea, attention_mask, params,
                         compute_dtype=jnp.bfloat16):
    """Args:
         bbox_feature:   (B, num_proposal, D)
         lang_fea:       (B*len_num_max, Nk, D)
         attention_mask: (B*len_num_max, Nk)  float, 1.0 = padding token
       Returns:
         cluster_ref:    (B*len_num_max, num_proposal)
    """
    B, Nq, D = bbox_feature.shape
    BL, Nk, _ = lang_fea.shape
    L = BL // B
    assert B * L == BL
    assert D == HIDDEN and Nq % 8 == 0     # Nk ideally a multiple of 8 (pad upstream if not)

    prep = _prepare_params(params, compute_dtype)

    # free reshapes: no feature duplication, lang/mask grouped per scene
    feat = bbox_feature.astype(compute_dtype)                         # (B, Nq, D)
    lang = lang_fea.astype(compute_dtype).reshape(B, L * Nk, D)       # (B, L*Nk, D)
    maskb = attention_mask.astype(jnp.float32).reshape(B, L * Nk, 1)  # (B, L*Nk, 1)

    kern = functools.partial(match_kernel, L=L, Nk=Nk, compute_dtype=compute_dtype)

    def rep(shape):   # broadcast (weight) spec: same block every grid step -> single DMA
        nd = len(shape)
        return pl.BlockSpec(shape, lambda b, _nd=nd: (0,) * _nd)

    (wq_h, bq_h, wk_h, bk_h, wv_h, bv_h, wo_h, bo_f,
     w1f, b1f, w2f, b2f, w3r, scal) = prep

    in_specs = [
        pl.BlockSpec((1, Nq, D), lambda b: (b, 0, 0)),         # bbox features (per scene)
        pl.BlockSpec((1, L * Nk, D), lambda b: (b, 0, 0)),     # lang features (L descriptions)
        pl.BlockSpec((1, L * Nk, 1), lambda b: (b, 0, 0)),     # padding mask column
    ] + [rep(p.shape) for p in (wq_h, bq_h, wk_h, bk_h, wv_h, bv_h, wo_h, bo_f,
                                w1f, b1f, w2f, b2f, w3r)] + [
        pl.BlockSpec(memory_space=pltpu.MemorySpace.SMEM),     # (a1, a2, b3) scalars
    ]

    out = pl.pallas_call(
        kern,
        out_shape=jax.ShapeDtypeStruct((B, 1, L * Nq), jnp.float32),
        grid=(B,),
        in_specs=in_specs,
        out_specs=pl.BlockSpec((1, 1, L * Nq), lambda b: (b, 0, 0)),
        scratch_shapes=[
            pltpu.VMEM((HEAD, Nq, DK), compute_dtype),         # q heads
            pltpu.VMEM((HEAD, L * Nk, DK), compute_dtype),     # k heads
            pltpu.VMEM((HEAD, L * Nk, DK), compute_dtype),     # v heads
        ],
        compiler_params=pltpu.CompilerParams(
            dimension_semantics=("parallel",)),
    )(feat, lang, maskb, *prep)

    return out.reshape(BL, Nq)                                 # free reshape => cluster_ref


# ------------------------ deterministic parameter init -------------------------
def make_params(key, hidden=HIDDEN):
    ks = jax.random.split(key, 16)
    n = lambda k, shp, s=0.05: (s * jax.random.normal(k, shp)).astype(jnp.float32)

    # MHA projections, stored as (in, out) so x @ W + b
    wq, bq = n(ks[0], (hidden, hidden)), n(ks[1], (1, hidden))
    wk, bk = n(ks[2], (hidden, hidden)), n(ks[3], (1, hidden))
    wv, bv = n(ks[4], (hidden, hidden)), n(ks[5], (1, hidden))
    wo, bo = n(ks[6], (hidden, hidden)), n(ks[7], (1, hidden))

    # match head conv1x1 weights (in, out)
    w1, b1 = n(ks[8], (hidden, hidden)), n(ks[9], (1, hidden))
    w2, b2 = n(ks[10], (hidden, hidden)), n(ks[11], (1, hidden))
    w3, b3 = n(ks[12], (hidden, 1)), n(ks[13], (1, 1))

    # BatchNorm1d (eval mode) -> per-channel scale/shift: y = s*x + t
    def bn(k):
        k1, k2, k3, k4 = jax.random.split(k, 4)
        gamma = 1.0 + 0.1 * jax.random.normal(k1, (1, hidden))
        beta = 0.1 * jax.random.normal(k2, (1, hidden))
        mean = 0.1 * jax.random.normal(k3, (1, hidden))
        var = 1.0 + 0.1 * jax.random.uniform(k4, (1, hidden))
        s = gamma / jnp.sqrt(var + BN_EPS)
        t = beta - mean * s
        return s.astype(jnp.float32), t.astype(jnp.float32)

    s1, t1 = bn(ks[14])
    s2, t2 = bn(ks[15])

    a1 = jnp.full((1, 1), 0.25, jnp.float32)    # nn.PReLU() default alpha
    a2 = jnp.full((1, 1), 0.25, jnp.float32)

    return (wq, bq, wk, bk, wv, bv, wo, bo,
            w1, b1, s1, t1, a1,
            w2, b2, s2, t2, a2,
            w3, b3)


# ------------------------------ pure-JAX reference -----------------------------
def reference_forward(bbox_feature, lang_fea, attention_mask, params):
    (wq, bq, wk, bk, wv, bv, wo, bo,
     w1, b1, s1, t1, a1, w2, b2, s2, t2, a2, w3, b3) = params
    B, Nq, D = bbox_feature.shape
    BL, Nk, _ = lang_fea.shape
    L = BL // B
    feat1 = jnp.broadcast_to(bbox_feature[:, None], (B, L, Nq, D)).reshape(BL, Nq, D)

    q = feat1 @ wq + bq
    k = lang_fea @ wk + bk
    v = lang_fea @ wv + bv
    qh = q.reshape(BL, Nq, HEAD, DK).transpose(0, 2, 1, 3)
    kh = k.reshape(BL, Nk, HEAD, DK).transpose(0, 2, 1, 3)
    vh = v.reshape(BL, Nk, HEAD, DK).transpose(0, 2, 1, 3)
    att = jnp.einsum("bhqd,bhkd->bhqk", qh, kh) / jnp.sqrt(jnp.float32(DK))
    att = att - 1e9 * attention_mask[:, None, None, :]
    att = jax.nn.softmax(att, axis=-1)
    o = jnp.einsum("bhqk,bhkd->bhqd", att, vh).transpose(0, 2, 1, 3).reshape(BL, Nq, D)
    o = o @ wo + bo

    h1 = o @ w1 + b1
    h1 = h1 * s1 + t1
    h1 = jnp.where(h1 > 0, h1, a1[0, 0] * h1)
    h2 = h1 @ w2 + b2
    h2 = h2 * s2 + t2
    h2 = jnp.where(h2 > 0, h2, a2[0, 0] * h2)
    conf = h2 @ w3 + b3
    return conf[..., 0]


# ----------------------------------- main --------------------------------------
if __name__ == "__main__":
    key = jax.random.PRNGKey(0)
    k_feat, k_lang, k_par = jax.random.split(key, 3)

    B = 2                 # batch (scenes)
    LEN_NUM_MAX = 2       # descriptions per scene
    NUM_PROPOSAL = 32     # proposals (small demo stand-in for 256)
    NK = 8                # language tokens
    BL = B * LEN_NUM_MAX

    bbox_feature = jax.random.normal(k_feat, (B, NUM_PROPOSAL, HIDDEN), jnp.float32)
    lang_fea = jax.random.normal(k_lang, (BL, NK, HIDDEN), jnp.float32)
    # attention_mask: 1.0 = padding (masked); pad the last 2 tokens of odd entries
    attention_mask = jnp.zeros((BL, NK), jnp.float32)
    attention_mask = attention_mask.at[1::2, NK - 2:].set(1.0)

    params = make_params(k_par)
    expected = reference_forward(bbox_feature, lang_fea, attention_mask, params)

    # f32 compute path: validates the kernel math (BN fold, head split, masking, softmax)
    out_f32 = match_module_forward(bbox_feature, lang_fea, attention_mask, params,
                                   compute_dtype=jnp.float32)
    out_f32 = jax.block_until_ready(out_f32)
    np.testing.assert_allclose(np.asarray(out_f32), np.asarray(expected),
                               rtol=2e-2, atol=5e-3)   # slack for approx reciprocal

    # bf16 compute path (default / fast): f32 accumulation, f32 elementwise
    cluster_ref = match_module_forward(bbox_feature, lang_fea, attention_mask, params,
                                       compute_dtype=jnp.bfloat16)
    cluster_ref = jax.block_until_ready(cluster_ref)
    np.testing.assert_allclose(np.asarray(cluster_ref), np.asarray(expected),
                               rtol=4e-2, atol=1.5e-2)

    assert cluster_ref.shape == (BL, NUM_PROPOSAL)
    print("KERNEL_OK")
</pallas_src>

<mosaic_0001>
module attributes {stable_mosaic.version = 11 : i64} {
  func.func @match_kernel(%arg0: i32, %arg1: memref<1x32x128xf32, #tpu.memory_space<vmem>>, %arg2: memref<1x16x128xf32, #tpu.memory_space<vmem>>, %arg3: memref<1x16x1xf32, #tpu.memory_space<vmem>>, %arg4: memref<4x128x32xf32, #tpu.memory_space<vmem>>, %arg5: memref<4x1x32xf32, #tpu.memory_space<vmem>>, %arg6: memref<4x128x32xf32, #tpu.memory_space<vmem>>, %arg7: memref<4x1x32xf32, #tpu.memory_space<vmem>>, %arg8: memref<4x128x32xf32, #tpu.memory_space<vmem>>, %arg9: memref<4x1x32xf32, #tpu.memory_space<vmem>>, %arg10: memref<4x32x128xf32, #tpu.memory_space<vmem>>, %arg11: memref<1x128xf32, #tpu.memory_space<vmem>>, %arg12: memref<128x128xf32, #tpu.memory_space<vmem>>, %arg13: memref<1x128xf32, #tpu.memory_space<vmem>>, %arg14: memref<128x128xf32, #tpu.memory_space<vmem>>, %arg15: memref<1x128xf32, #tpu.memory_space<vmem>>, %arg16: memref<8x128xf32, #tpu.memory_space<vmem>>, %arg17: memref<3xf32, #tpu.memory_space<smem>>, %arg18: memref<1x1x64xf32, #tpu.memory_space<vmem>>, %arg19: memref<4x32x32xf32, #tpu.memory_space<vmem>>, %arg20: memref<4x16x32xf32, #tpu.memory_space<vmem>>, %arg21: memref<4x16x32xf32, #tpu.memory_space<vmem>>) attributes {dimension_semantics = [#tpu.dimension_semantics<parallel>], iteration_bounds = array<i64: 2>, scalar_prefetch = 0 : i64, scratch_operands = 3 : i64, tpu.core_type = #tpu.core_type<tc>, window_params = [{transform_indices = @transform_0, window_bounds = array<i64: 1, 32, 128>}, {transform_indices = @transform_1, window_bounds = array<i64: 1, 16, 128>}, {transform_indices = @transform_2, window_bounds = array<i64: 1, 16, 1>}, {pipeline_mode = #tpu.pipeline_mode<synchronous>, transform_indices = @transform_3, window_bounds = array<i64: 4, 128, 32>}, {pipeline_mode = #tpu.pipeline_mode<synchronous>, transform_indices = @transform_4, window_bounds = array<i64: 4, 1, 32>}, {pipeline_mode = #tpu.pipeline_mode<synchronous>, transform_indices = @transform_5, window_bounds = array<i64: 4, 128, 32>}, {pipeline_mode = #tpu.pipeline_mode<synchronous>, transform_indices = @transform_6, window_bounds = array<i64: 4, 1, 32>}, {pipeline_mode = #tpu.pipeline_mode<synchronous>, transform_indices = @transform_7, window_bounds = array<i64: 4, 128, 32>}, {pipeline_mode = #tpu.pipeline_mode<synchronous>, transform_indices = @transform_8, window_bounds = array<i64: 4, 1, 32>}, {pipeline_mode = #tpu.pipeline_mode<synchronous>, transform_indices = @transform_9, window_bounds = array<i64: 4, 32, 128>}, {pipeline_mode = #tpu.pipeline_mode<synchronous>, transform_indices = @transform_10, window_bounds = array<i64: 1, 128>}, {pipeline_mode = #tpu.pipeline_mode<synchronous>, transform_indices = @transform_11, window_bounds = array<i64: 128, 128>}, {pipeline_mode = #tpu.pipeline_mode<synchronous>, transform_indices = @transform_12, window_bounds = array<i64: 1, 128>}, {pipeline_mode = #tpu.pipeline_mode<synchronous>, transform_indices = @transform_13, window_bounds = array<i64: 128, 128>}, {pipeline_mode = #tpu.pipeline_mode<synchronous>, transform_indices = @transform_14, window_bounds = array<i64: 1, 128>}, {pipeline_mode = #tpu.pipeline_mode<synchronous>, transform_indices = @transform_15, window_bounds = array<i64: 8, 128>}, {transform_indices = @transform_16, window_bounds = array<i64: 3>}, {transform_indices = @transform_17, window_bounds = array<i64: 1, 1, 64>}]} {
    %c0 = arith.constant 0 : index
    %c0_0 = arith.constant 0 : index
    %c0_1 = arith.constant 0 : index
    %0 = vector.load %arg1[%c0, %c0_0, %c0_1] : memref<1x32x128xf32, #tpu.memory_space<vmem>>, vector<1x32x128xf32>
    %1 = vector.shape_cast %0 : vector<1x32x128xf32> to vector<32x128xf32>
    %c0_2 = arith.constant 0 : index
    %c0_3 = arith.constant 0 : index
    %c0_4 = arith.constant 0 : index
    %2 = vector.load %arg2[%c0_2, %c0_3, %c0_4] : memref<1x16x128xf32, #tpu.memory_space<vmem>>, vector<1x16x128xf32>
    %3 = vector.shape_cast %2 : vector<1x16x128xf32> to vector<16x128xf32>
    %c0_5 = arith.constant 0 : index
    %c0_6 = arith.constant 0 : index
    %c0_7 = arith.constant 0 : index
    %4 = vector.load %arg3[%c0_5, %c0_6, %c0_7] : memref<1x16x1xf32, #tpu.memory_space<vmem>>, vector<1x16x1xf32>
    %5 = vector.shape_cast %4 : vector<1x16x1xf32> to vector<16x1xf32>
    %cst = arith.constant -1.000000e+09 : f32
    %6 = vector.broadcast %cst : f32 to vector<16x1xf32>
    %7 = arith.mulf %5, %6 : vector<16x1xf32>
    %c0_8 = arith.constant 0 : index
    %8 = memref.load %arg17[%c0_8] : memref<3xf32, #tpu.memory_space<smem>>
    %c1 = arith.constant 1 : index
    %9 = memref.load %arg17[%c1] : memref<3xf32, #tpu.memory_space<smem>>
    %c2 = arith.constant 2 : index
    %10 = memref.load %arg17[%c2] : memref<3xf32, #tpu.memory_space<smem>>
    %c0_9 = arith.constant 0 : index
    %c0_10 = arith.constant 0 : index
    %c0_11 = arith.constant 0 : index
    %11 = vector.load %arg4[%c0_9, %c0_10, %c0_11] : memref<4x128x32xf32, #tpu.memory_space<vmem>>, vector<1x128x32xf32>
    %12 = vector.shape_cast %11 : vector<1x128x32xf32> to vector<128x32xf32>
    %cst_12 = arith.constant dense<0.000000e+00> : vector<32x32xf32>
    %13 = tpu.matmul %1, %12, %cst_12 {dimension_numbers = #tpu.dot_dimension_numbers<[1], [0], [0], [1], [0, 0, 1, 1], [], []>} : vector<32x128xf32>, vector<128x32xf32>, vector<32x32xf32> -> vector<32x32xf32>
    %c0_13 = arith.constant 0 : index
    %c0_14 = arith.constant 0 : index
    %c0_15 = arith.constant 0 : index
    %14 = vector.load %arg5[%c0_13, %c0_14, %c0_15] : memref<4x1x32xf32, #tpu.memory_space<vmem>>, vector<1x1x32xf32>
    %15 = vector.shape_cast %14 : vector<1x1x32xf32> to vector<1x32xf32>
    %16 = vector.broadcast %15 : vector<1x32xf32> to vector<32x32xf32>
    %17 = arith.addf %13, %16 : vector<32x32xf32>
    %c0_16 = arith.constant 0 : index
    %c0_17 = arith.constant 0 : index
    %c0_18 = arith.constant 0 : index
    %18 = vector.load %arg19[%c0_16, %c0_17, %c0_18] : memref<4x32x32xf32, #tpu.memory_space<vmem>>, vector<1x32x32xf32>
    %19 = vector.shape_cast %18 : vector<1x32x32xf32> to vector<32x32xf32>
    %20 = vector.shape_cast %17 : vector<32x32xf32> to vector<1x32x32xf32>
    tpu.vector_store %arg19[%c0_16, %c0_17, %c0_18], %20 {strides = array<i32>} : memref<4x32x32xf32, #tpu.memory_space<vmem>>, vector<1x32x32xf32>,
    %c0_19 = arith.constant 0 : index
    %c0_20 = arith.constant 0 : index
    %c0_21 = arith.constant 0 : index
    %21 = vector.load %arg6[%c0_19, %c0_20, %c0_21] : memref<4x128x32xf32, #tpu.memory_space<vmem>>, vector<1x128x32xf32>
    %22 = vector.shape_cast %21 : vector<1x128x32xf32> to vector<128x32xf32>
    %cst_22 = arith.constant dense<0.000000e+00> : vector<16x32xf32>
    %23 = tpu.matmul %3, %22, %cst_22 {dimension_numbers = #tpu.dot_dimension_numbers<[1], [0], [0], [1], [0, 0, 1, 1], [], []>} : vector<16x128xf32>, vector<128x32xf32>, vector<16x32xf32> -> vector<16x32xf32>
    %c0_23 = arith.constant 0 : index
    %c0_24 = arith.constant 0 : index
    %c0_25 = arith.constant 0 : index
    %24 = vector.load %arg7[%c0_23, %c0_24, %c0_25] : memref<4x1x32xf32, #tpu.memory_space<vmem>>, vector<1x1x32xf32>
    %25 = vector.shape_cast %24 : vector<1x1x32xf32> to vector<1x32xf32>
    %26 = vector.broadcast %25 : vector<1x32xf32> to vector<16x32xf32>
    %27 = arith.addf %23, %26 : vector<16x32xf32>
    %c0_26 = arith.constant 0 : index
    %c0_27 = arith.constant 0 : index
    %c0_28 = arith.constant 0 : index
    %28 = vector.load %arg20[%c0_26, %c0_27, %c0_28] : memref<4x16x32xf32, #tpu.memory_space<vmem>>, vector<1x16x32xf32>
    %29 = vector.shape_cast %28 : vector<1x16x32xf32> to vector<16x32xf32>
    %30 = vector.shape_cast %27 : vector<16x32xf32> to vector<1x16x32xf32>
    tpu.vector_store %arg20[%c0_26, %c0_27, %c0_28], %30 {strides = array<i32>} : memref<4x16x32xf32, #tpu.memory_space<vmem>>, vector<1x16x32xf32>,
    %c0_29 = arith.constant 0 : index
    %c0_30 = arith.constant 0 : index
    %c0_31 = arith.constant 0 : index
    %31 = vector.load %arg8[%c0_29, %c0_30, %c0_31] : memref<4x128x32xf32, #tpu.memory_space<vmem>>, vector<1x128x32xf32>
    %32 = vector.shape_cast %31 : vector<1x128x32xf32> to vector<128x32xf32>
    %cst_32 = arith.constant dense<0.000000e+00> : vector<16x32xf32>
    %33 = tpu.matmul %3, %32, %cst_32 {dimension_numbers = #tpu.dot_dimension_numbers<[1], [0], [0], [1], [0, 0, 1, 1], [], []>} : vector<16x128xf32>, vector<128x32xf32>, vector<16x32xf32> -> vector<16x32xf32>
    %c0_33 = arith.constant 0 : index
    %c0_34 = arith.constant 0 : index
    %c0_35 = arith.constant 0 : index
    %34 = vector.load %arg9[%c0_33, %c0_34, %c0_35] : memref<4x1x32xf32, #tpu.memory_space<vmem>>, vector<1x1x32xf32>
    %35 = vector.shape_cast %34 : vector<1x1x32xf32> to vector<1x32xf32>
    %36 = vector.broadcast %35 : vector<1x32xf32> to vector<16x32xf32>
    %37 = arith.addf %33, %36 : vector<16x32xf32>
    %c0_36 = arith.constant 0 : index
    %c0_37 = arith.constant 0 : index
    %c0_38 = arith.constant 0 : index
    %38 = vector.load %arg21[%c0_36, %c0_37, %c0_38] : memref<4x16x32xf32, #tpu.memory_space<vmem>>, vector<1x16x32xf32>
    %39 = vector.shape_cast %38 : vector<1x16x32xf32> to vector<16x32xf32>
    %40 = vector.shape_cast %37 : vector<16x32xf32> to vector<1x16x32xf32>
    tpu.vector_store %arg21[%c0_36, %c0_37, %c0_38], %40 {strides = array<i32>} : memref<4x16x32xf32, #tpu.memory_space<vmem>>, vector<1x16x32xf32>,
    %c1_39 = arith.constant 1 : index
    %c0_40 = arith.constant 0 : index
    %c0_41 = arith.constant 0 : index
    %41 = vector.load %arg4[%c1_39, %c0_40, %c0_41] : memref<4x128x32xf32, #tpu.memory_space<vmem>>, vector<1x128x32xf32>
    %42 = vector.shape_cast %41 : vector<1x128x32xf32> to vector<128x32xf32>
    %cst_42 = arith.constant dense<0.000000e+00> : vector<32x32xf32>
    %43 = tpu.matmul %1, %42, %cst_42 {dimension_numbers = #tpu.dot_dimension_numbers<[1], [0], [0], [1], [0, 0, 1, 1], [], []>} : vector<32x128xf32>, vector<128x32xf32>, vector<32x32xf32> -> vector<32x32xf32>
    %c1_43 = arith.constant 1 : index
    %c0_44 = arith.constant 0 : index
    %c0_45 = arith.constant 0 : index
    %44 = vector.load %arg5[%c1_43, %c0_44, %c0_45] : memref<4x1x32xf32, #tpu.memory_space<vmem>>, vector<1x1x32xf32>
    %45 = vector.shape_cast %44 : vector<1x1x32xf32> to vector<1x32xf32>
    %46 = vector.broadcast %45 : vector<1x32xf32> to vector<32x32xf32>
    %47 = arith.addf %43, %46 : vector<32x32xf32>
    %c1_46 = arith.constant 1 : index
    %c0_47 = arith.constant 0 : index
    %c0_48 = arith.constant 0 : index
    %48 = vector.load %arg19[%c1_46, %c0_47, %c0_48] : memref<4x32x32xf32, #tpu.memory_space<vmem>>, vector<1x32x32xf32>
    %49 = vector.shape_cast %48 : vector<1x32x32xf32> to vector<32x32xf32>
    %50 = vector.shape_cast %47 : vector<32x32xf32> to vector<1x32x32xf32>
    tpu.vector_store %arg19[%c1_46, %c0_47, %c0_48], %50 {strides = array<i32>} : memref<4x32x32xf32, #tpu.memory_space<vmem>>, vector<1x32x32xf32>,
    %c1_49 = arith.constant 1 : index
    %c0_50 = arith.constant 0 : index
    %c0_51 = arith.constant 0 : index
    %51 = vector.load %arg6[%c1_49, %c0_50, %c0_51] : memref<4x128x32xf32, #tpu.memory_space<vmem>>, vector<1x128x32xf32>
    %52 = vector.shape_cast %51 : vector<1x128x32xf32> to vector<128x32xf32>
    %cst_52 = arith.constant dense<0.000000e+00> : vector<16x32xf32>
    %53 = tpu.matmul %3, %52, %cst_52 {dimension_numbers = #tpu.dot_dimension_numbers<[1], [0], [0], [1], [0, 0, 1, 1], [], []>} : vector<16x128xf32>, vector<128x32xf32>, vector<16x32xf32> -> vector<16x32xf32>
    %c1_53 = arith.constant 1 : index
    %c0_54 = arith.constant 0 : index
    %c0_55 = arith.constant 0 : index
    %54 = vector.load %arg7[%c1_53, %c0_54, %c0_55] : memref<4x1x32xf32, #tpu.memory_space<vmem>>, vector<1x1x32xf32>
    %55 = vector.shape_cast %54 : vector<1x1x32xf32> to vector<1x32xf32>
    %56 = vector.broadcast %55 : vector<1x32xf32> to vector<16x32xf32>
    %57 = arith.addf %53, %56 : vector<16x32xf32>
    %c1_56 = arith.constant 1 : index
    %c0_57 = arith.constant 0 : index
    %c0_58 = arith.constant 0 : index
    %58 = vector.load %arg20[%c1_56, %c0_57, %c0_58] : memref<4x16x32xf32, #tpu.memory_space<vmem>>, vector<1x16x32xf32>
    %59 = vector.shape_cast %58 : vector<1x16x32xf32> to vector<16x32xf32>
    %60 = vector.shape_cast %57 : vector<16x32xf32> to vector<1x16x32xf32>
    tpu.vector_store %arg20[%c1_56, %c0_57, %c0_58], %60 {strides = array<i32>} : memref<4x16x32xf32, #tpu.memory_space<vmem>>, vector<1x16x32xf32>,
    %c1_59 = arith.constant 1 : index
    %c0_60 = arith.constant 0 : index
    %c0_61 = arith.constant 0 : index
    %61 = vector.load %arg8[%c1_59, %c0_60, %c0_61] : memref<4x128x32xf32, #tpu.memory_space<vmem>>, vector<1x128x32xf32>
    %62 = vector.shape_cast %61 : vector<1x128x32xf32> to vector<128x32xf32>
    %cst_62 = arith.constant dense<0.000000e+00> : vector<16x32xf32>
    %63 = tpu.matmul %3, %62, %cst_62 {dimension_numbers = #tpu.dot_dimension_numbers<[1], [0], [0], [1], [0, 0, 1, 1], [], []>} : vector<16x128xf32>, vector<128x32xf32>, vector<16x32xf32> -> vector<16x32xf32>
    %c1_63 = arith.constant 1 : index
    %c0_64 = arith.constant 0 : index
    %c0_65 = arith.constant 0 : index
    %64 = vector.load %arg9[%c1_63, %c0_64, %c0_65] : memref<4x1x32xf32, #tpu.memory_space<vmem>>, vector<1x1x32xf32>
    %65 = vector.shape_cast %64 : vector<1x1x32xf32> to vector<1x32xf32>
    %66 = vector.broadcast %65 : vector<1x32xf32> to vector<16x32xf32>
    %67 = arith.addf %63, %66 : vector<16x32xf32>
    %c1_66 = arith.constant 1 : index
    %c0_67 = arith.constant 0 : index
    %c0_68 = arith.constant 0 : index
    %68 = vector.load %arg21[%c1_66, %c0_67, %c0_68] : memref<4x16x32xf32, #tpu.memory_space<vmem>>, vector<1x16x32xf32>
    %69 = vector.shape_cast %68 : vector<1x16x32xf32> to vector<16x32xf32>
    %70 = vector.shape_cast %67 : vector<16x32xf32> to vector<1x16x32xf32>
    tpu.vector_store %arg21[%c1_66, %c0_67, %c0_68], %70 {strides = array<i32>} : memref<4x16x32xf32, #tpu.memory_space<vmem>>, vector<1x16x32xf32>,
    %c2_69 = arith.constant 2 : index
    %c0_70 = arith.constant 0 : index
    %c0_71 = arith.constant 0 : index
    %71 = vector.load %arg4[%c2_69, %c0_70, %c0_71] : memref<4x128x32xf32, #tpu.memory_space<vmem>>, vector<1x128x32xf32>
    %72 = vector.shape_cast %71 : vector<1x128x32xf32> to vector<128x32xf32>
    %cst_72 = arith.constant dense<0.000000e+00> : vector<32x32xf32>
    %73 = tpu.matmul %1, %72, %cst_72 {dimension_numbers = #tpu.dot_dimension_numbers<[1], [0], [0], [1], [0, 0, 1, 1], [], []>} : vector<32x128xf32>, vector<128x32xf32>, vector<32x32xf32> -> vector<32x32xf32>
    %c2_73 = arith.constant 2 : index
    %c0_74 = arith.constant 0 : index
    %c0_75 = arith.constant 0 : index
    %74 = vector.load %arg5[%c2_73, %c0_74, %c0_75] : memref<4x1x32xf32, #tpu.memory_space<vmem>>, vector<1x1x32xf32>
    %75 = vector.shape_cast %74 : vector<1x1x32xf32> to vector<1x32xf32>
    %76 = vector.broadcast %75 : vector<1x32xf32> to vector<32x32xf32>
    %77 = arith.addf %73, %76 : vector<32x32xf32>
    %c2_76 = arith.constant 2 : index
    %c0_77 = arith.constant 0 : index
    %c0_78 = arith.constant 0 : index
    %78 = vector.load %arg19[%c2_76, %c0_77, %c0_78] : memref<4x32x32xf32, #tpu.memory_space<vmem>>, vector<1x32x32xf32>
    %79 = vector.shape_cast %78 : vector<1x32x32xf32> to vector<32x32xf32>
    %80 = vector.shape_cast %77 : vector<32x32xf32> to vector<1x32x32xf32>
    tpu.vector_store %arg19[%c2_76, %c0_77, %c0_78], %80 {strides = array<i32>} : memref<4x32x32xf32, #tpu.memory_space<vmem>>, vector<1x32x32xf32>,
    %c2_79 = arith.constant 2 : index
    %c0_80 = arith.constant 0 : index
    %c0_81 = arith.constant 0 : index
    %81 = vector.load %arg6[%c2_79, %c0_80, %c0_81] : memref<4x128x32xf32, #tpu.memory_space<vmem>>, vector<1x128x32xf32>
    %82 = vector.shape_cast %81 : vector<1x128x32xf32> to vector<128x32xf32>
    %cst_82 = arith.constant dense<0.000000e+00> : vector<16x32xf32>
    %83 = tpu.matmul %3, %82, %cst_82 {dimension_numbers = #tpu.dot_dimension_numbers<[1], [0], [0], [1], [0, 0, 1, 1], [], []>} : vector<16x128xf32>, vector<128x32xf32>, vector<16x32xf32> -> vector<16x32xf32>
    %c2_83 = arith.constant 2 : index
    %c0_84 = arith.constant 0 : index
    %c0_85 = arith.constant 0 : index
    %84 = vector.load %arg7[%c2_83, %c0_84, %c0_85] : memref<4x1x32xf32, #tpu.memory_space<vmem>>, vector<1x1x32xf32>
    %85 = vector.shape_cast %84 : vector<1x1x32xf32> to vector<1x32xf32>
    %86 = vector.broadcast %85 : vector<1x32xf32> to vector<16x32xf32>
    %87 = arith.addf %83, %86 : vector<16x32xf32>
    %c2_86 = arith.constant 2 : index
    %c0_87 = arith.constant 0 : index
    %c0_88 = arith.constant 0 : index
    %88 = vector.load %arg20[%c2_86, %c0_87, %c0_88] : memref<4x16x32xf32, #tpu.memory_space<vmem>>, vector<1x16x32xf32>
    %89 = vector.shape_cast %88 : vector<1x16x32xf32> to vector<16x32xf32>
    %90 = vector.shape_cast %87 : vector<16x32xf32> to vector<1x16x32xf32>
    tpu.vector_store %arg20[%c2_86, %c0_87, %c0_88], %90 {strides = array<i32>} : memref<4x16x32xf32, #tpu.memory_space<vmem>>, vector<1x16x32xf32>,
    %c2_89 = arith.constant 2 : index
    %c0_90 = arith.constant 0 : index
    %c0_91 = arith.constant 0 : index
    %91 = vector.load %arg8[%c2_89, %c0_90, %c0_91] : memref<4x128x32xf32, #tpu.memory_space<vmem>>, vector<1x128x32xf32>
    %92 = vector.shape_cast %91 : vector<1x128x32xf32> to vector<128x32xf32>
    %cst_92 = arith.constant dense<0.000000e+00> : vector<16x32xf32>
    %93 = tpu.matmul %3, %92, %cst_92 {dimension_numbers = #tpu.dot_dimension_numbers<[1], [0], [0], [1], [0, 0, 1, 1], [], []>} : vector<16x128xf32>, vector<128x32xf32>, vector<16x32xf32> -> vector<16x32xf32>
    %c2_93 = arith.constant 2 : index
    %c0_94 = arith.constant 0 : index
    %c0_95 = arith.constant 0 : index
    %94 = vector.load %arg9[%c2_93, %c0_94, %c0_95] : memref<4x1x32xf32, #tpu.memory_space<vmem>>, vector<1x1x32xf32>
    %95 = vector.shape_cast %94 : vector<1x1x32xf32> to vector<1x32xf32>
    %96 = vector.broadcast %95 : vector<1x32xf32> to vector<16x32xf32>
    %97 = arith.addf %93, %96 : vector<16x32xf32>
    %c2_96 = arith.constant 2 : index
    %c0_97 = arith.constant 0 : index
    %c0_98 = arith.constant 0 : index
    %98 = vector.load %arg21[%c2_96, %c0_97, %c0_98] : memref<4x16x32xf32, #tpu.memory_space<vmem>>, vector<1x16x32xf32>
    %99 = vector.shape_cast %98 : vector<1x16x32xf32> to vector<16x32xf32>
    %100 = vector.shape_cast %97 : vector<16x32xf32> to vector<1x16x32xf32>
    tpu.vector_store %arg21[%c2_96, %c0_97, %c0_98], %100 {strides = array<i32>} : memref<4x16x32xf32, #tpu.memory_space<vmem>>, vector<1x16x32xf32>,
    %c3 = arith.constant 3 : index
    %c0_99 = arith.constant 0 : index
    %c0_100 = arith.constant 0 : index
    %101 = vector.load %arg4[%c3, %c0_99, %c0_100] : memref<4x128x32xf32, #tpu.memory_space<vmem>>, vector<1x128x32xf32>
    %102 = vector.shape_cast %101 : vector<1x128x32xf32> to vector<128x32xf32>
    %cst_101 = arith.constant dense<0.000000e+00> : vector<32x32xf32>
    %103 = tpu.matmul %1, %102, %cst_101 {dimension_numbers = #tpu.dot_dimension_numbers<[1], [0], [0], [1], [0, 0, 1, 1], [], []>} : vector<32x128xf32>, vector<128x32xf32>, vector<32x32xf32> -> vector<32x32xf32>
    %c3_102 = arith.constant 3 : index
    %c0_103 = arith.constant 0 : index
    %c0_104 = arith.constant 0 : index
    %104 = vector.load %arg5[%c3_102, %c0_103, %c0_104] : memref<4x1x32xf32, #tpu.memory_space<vmem>>, vector<1x1x32xf32>
    %105 = vector.shape_cast %104 : vector<1x1x32xf32> to vector<1x32xf32>
    %106 = vector.broadcast %105 : vector<1x32xf32> to vector<32x32xf32>
    %107 = arith.addf %103, %106 : vector<32x32xf32>
    %c3_105 = arith.constant 3 : index
    %c0_106 = arith.constant 0 : index
    %c0_107 = arith.constant 0 : index
    %108 = vector.load %arg19[%c3_105, %c0_106, %c0_107] : memref<4x32x32xf32, #tpu.memory_space<vmem>>, vector<1x32x32xf32>
    %109 = vector.shape_cast %108 : vector<1x32x32xf32> to vector<32x32xf32>
    %110 = vector.shape_cast %107 : vector<32x32xf32> to vector<1x32x32xf32>
    tpu.vector_store %arg19[%c3_105, %c0_106, %c0_107], %110 {strides = array<i32>} : memref<4x32x32xf32, #tpu.memory_space<vmem>>, vector<1x32x32xf32>,
    %c3_108 = arith.constant 3 : index
    %c0_109 = arith.constant 0 : index
    %c0_110 = arith.constant 0 : index
    %111 = vector.load %arg6[%c3_108, %c0_109, %c0_110] : memref<4x128x32xf32, #tpu.memory_space<vmem>>, vector<1x128x32xf32>
    %112 = vector.shape_cast %111 : vector<1x128x32xf32> to vector<128x32xf32>
    %cst_111 = arith.constant dense<0.000000e+00> : vector<16x32xf32>
    %113 = tpu.matmul %3, %112, %cst_111 {dimension_numbers = #tpu.dot_dimension_numbers<[1], [0], [0], [1], [0, 0, 1, 1], [], []>} : vector<16x128xf32>, vector<128x32xf32>, vector<16x32xf32> -> vector<16x32xf32>
    %c3_112 = arith.constant 3 : index
    %c0_113 = arith.constant 0 : index
    %c0_114 = arith.constant 0 : index
    %114 = vector.load %arg7[%c3_112, %c0_113, %c0_114] : memref<4x1x32xf32, #tpu.memory_space<vmem>>, vector<1x1x32xf32>
    %115 = vector.shape_cast %114 : vector<1x1x32xf32> to vector<1x32xf32>
    %116 = vector.broadcast %115 : vector<1x32xf32> to vector<16x32xf32>
    %117 = arith.addf %113, %116 : vector<16x32xf32>
    %c3_115 = arith.constant 3 : index
    %c0_116 = arith.constant 0 : index
    %c0_117 = arith.constant 0 : index
    %118 = vector.load %arg20[%c3_115, %c0_116, %c0_117] : memref<4x16x32xf32, #tpu.memory_space<vmem>>, vector<1x16x32xf32>
    %119 = vector.shape_cast %118 : vector<1x16x32xf32> to vector<16x32xf32>
    %120 = vector.shape_cast %117 : vector<16x32xf32> to vector<1x16x32xf32>
    tpu.vector_store %arg20[%c3_115, %c0_116, %c0_117], %120 {strides = array<i32>} : memref<4x16x32xf32, #tpu.memory_space<vmem>>, vector<1x16x32xf32>,
    %c3_118 = arith.constant 3 : index
    %c0_119 = arith.constant 0 : index
    %c0_120 = arith.constant 0 : index
    %121 = vector.load %arg8[%c3_118, %c0_119, %c0_120] : memref<4x128x32xf32, #tpu.memory_space<vmem>>, vector<1x128x32xf32>
    %122 = vector.shape_cast %121 : vector<1x128x32xf32> to vector<128x32xf32>
    %cst_121 = arith.constant dense<0.000000e+00> : vector<16x32xf32>
    %123 = tpu.matmul %3, %122, %cst_121 {dimension_numbers = #tpu.dot_dimension_numbers<[1], [0], [0], [1], [0, 0, 1, 1], [], []>} : vector<16x128xf32>, vector<128x32xf32>, vector<16x32xf32> -> vector<16x32xf32>
    %c3_122 = arith.constant 3 : index
    %c0_123 = arith.constant 0 : index
    %c0_124 = arith.constant 0 : index
    %124 = vector.load %arg9[%c3_122, %c0_123, %c0_124] : memref<4x1x32xf32, #tpu.memory_space<vmem>>, vector<1x1x32xf32>
    %125 = vector.shape_cast %124 : vector<1x1x32xf32> to vector<1x32xf32>
    %126 = vector.broadcast %125 : vector<1x32xf32> to vector<16x32xf32>
    %127 = arith.addf %123, %126 : vector<16x32xf32>
    %c3_125 = arith.constant 3 : index
    %c0_126 = arith.constant 0 : index
    %c0_127 = arith.constant 0 : index
    %128 = vector.load %arg21[%c3_125, %c0_126, %c0_127] : memref<4x16x32xf32, #tpu.memory_space<vmem>>, vector<1x16x32xf32>
    %129 = vector.shape_cast %128 : vector<1x16x32xf32> to vector<16x32xf32>
    %130 = vector.shape_cast %127 : vector<16x32xf32> to vector<1x16x32xf32>
    tpu.vector_store %arg21[%c3_125, %c0_126, %c0_127], %130 {strides = array<i32>} : memref<4x16x32xf32, #tpu.memory_space<vmem>>, vector<1x16x32xf32>,
    %131 = vector.extract_strided_slice %7 {offsets = [0, 0], sizes = [8, 1], strides = [1, 1]} : vector<16x1xf32> to vector<8x1xf32>
    %c0_128 = arith.constant 0 : index
    %c0_129 = arith.constant 0 : index
    %c0_130 = arith.constant 0 : index
    %132 = vector.load %arg19[%c0_128, %c0_129, %c0_130] : memref<4x32x32xf32, #tpu.memory_space<vmem>>, vector<1x32x32xf32>
    %133 = vector.shape_cast %132 : vector<1x32x32xf32> to vector<32x32xf32>
    %c0_131 = arith.constant 0 : index
    %c0_132 = arith.constant 0 : index
    %c0_133 = arith.constant 0 : index
    %134 = vector.load %arg20[%c0_131, %c0_132, %c0_133] : memref<4x16x32xf32, #tpu.memory_space<vmem>>, vector<1x8x32xf32>
    %135 = vector.shape_cast %134 : vector<1x8x32xf32> to vector<8x32xf32>
    %c0_134 = arith.constant 0 : index
    %c0_135 = arith.constant 0 : index
    %c0_136 = arith.constant 0 : index
    %136 = vector.load %arg21[%c0_134, %c0_135, %c0_136] : memref<4x16x32xf32, #tpu.memory_space<vmem>>, vector<1x8x32xf32>
    %137 = vector.shape_cast %136 : vector<1x8x32xf32> to vector<8x32xf32>
    %cst_137 = arith.constant dense<0.000000e+00> : vector<8x32xf32>
    %138 = tpu.matmul %135, %133, %cst_137 {dimension_numbers = #tpu.dot_dimension_numbers<[1], [1], [0], [0], [0, 0, 1, 0], [], []>} : vector<8x32xf32>, vector<32x32xf32>, vector<8x32xf32> -> vector<8x32xf32>
    %139 = vector.broadcast %131 : vector<8x1xf32> to vector<8x32xf32>
    %140 = arith.addf %138, %139 : vector<8x32xf32>
    %cst_138 = arith.constant dense<0xFF800000> : vector<32xf32>
    %141 = vector.multi_reduction <maximumf>, %140, %cst_138 [0] : vector<8x32xf32> to vector<32xf32>
    %142 = vector.shape_cast %141 : vector<32xf32> to vector<1x32xf32>
    %143 = vector.broadcast %142 : vector<1x32xf32> to vector<8x32xf32>
    %144 = arith.subf %140, %143 : vector<8x32xf32>
    %145 = math.exp %144 : vector<8x32xf32>
    %cst_139 = arith.constant dense<0.000000e+00> : vector<32xf32>
    %146 = vector.multi_reduction <add>, %145, %cst_139 [0] : vector<8x32xf32> to vector<32xf32>
    %147 = vector.shape_cast %146 : vector<32xf32> to vector<1x32xf32>
    %148 = tpu.reciprocal %147 {approx = true} : vector<1x32xf32> -> vector<1x32xf32>
    %149 = vector.broadcast %148 : vector<1x32xf32> to vector<8x32xf32>
    %150 = arith.mulf %145, %149 : vector<8x32xf32>
    %cst_140 = arith.constant dense<0.000000e+00> : vector<32x32xf32>
    %151 = tpu.matmul %150, %137, %cst_140 {dimension_numbers = #tpu.dot_dimension_numbers<[0], [0], [1], [1], [0, 1, 1, 1], [], []>} : vector<8x32xf32>, vector<8x32xf32>, vector<32x32xf32> -> vector<32x32xf32>
    %c0_141 = arith.constant 0 : index
    %c0_142 = arith.constant 0 : index
    %c0_143 = arith.constant 0 : index
    %152 = vector.load %arg10[%c0_141, %c0_142, %c0_143] : memref<4x32x128xf32, #tpu.memory_space<vmem>>, vector<1x32x128xf32>
    %153 = vector.shape_cast %152 : vector<1x32x128xf32> to vector<32x128xf32>
    %cst_144 = arith.constant dense<0.000000e+00> : vector<32x128xf32>
    %154 = tpu.matmul %151, %153, %cst_144 {dimension_numbers = #tpu.dot_dimension_numbers<[1], [0], [0], [1], [0, 0, 1, 1], [], []>} : vector<32x32xf32>, vector<32x128xf32>, vector<32x128xf32> -> vector<32x128xf32>
    %c1_145 = arith.constant 1 : index
    %c0_146 = arith.constant 0 : index
    %c0_147 = arith.constant 0 : index
    %155 = vector.load %arg19[%c1_145, %c0_146, %c0_147] : memref<4x32x32xf32, #tpu.memory_space<vmem>>, vector<1x32x32xf32>
    %156 = vector.shape_cast %155 : vector<1x32x32xf32> to vector<32x32xf32>
    %c1_148 = arith.constant 1 : index
    %c0_149 = arith.constant 0 : index
    %c0_150 = arith.constant 0 : index
    %157 = vector.load %arg20[%c1_148, %c0_149, %c0_150] : memref<4x16x32xf32, #tpu.memory_space<vmem>>, vector<1x8x32xf32>
    %158 = vector.shape_cast %157 : vector<1x8x32xf32> to vector<8x32xf32>
    %c1_151 = arith.constant 1 : index
    %c0_152 = arith.constant 0 : index
    %c0_153 = arith.constant 0 : index
    %159 = vector.load %arg21[%c1_151, %c0_152, %c0_153] : memref<4x16x32xf32, #tpu.memory_space<vmem>>, vector<1x8x32xf32>
    %160 = vector.shape_cast %159 : vector<1x8x32xf32> to vector<8x32xf32>
    %cst_154 = arith.constant dense<0.000000e+00> : vector<8x32xf32>
    %161 = tpu.matmul %158, %156, %cst_154 {dimension_numbers = #tpu.dot_dimension_numbers<[1], [1], [0], [0], [0, 0, 1, 0], [], []>} : vector<8x32xf32>, vector<32x32xf32>, vector<8x32xf32> -> vector<8x32xf32>
    %162 = vector.broadcast %131 : vector<8x1xf32> to vector<8x32xf32>
    %163 = arith.addf %161, %162 : vector<8x32xf32>
    %cst_155 = arith.constant dense<0xFF800000> : vector<32xf32>
    %164 = vector.multi_reduction <maximumf>, %163, %cst_155 [0] : vector<8x32xf32> to vector<32xf32>
    %165 = vector.shape_cast %164 : vector<32xf32> to vector<1x32xf32>
    %166 = vector.broadcast %165 : vector<1x32xf32> to vector<8x32xf32>
    %167 = arith.subf %163, %166 : vector<8x32xf32>
    %168 = math.exp %167 : vector<8x32xf32>
    %cst_156 = arith.constant dense<0.000000e+00> : vector<32xf32>
    %169 = vector.multi_reduction <add>, %168, %cst_156 [0] : vector<8x32xf32> to vector<32xf32>
    %170 = vector.shape_cast %169 : vector<32xf32> to vector<1x32xf32>
    %171 = tpu.reciprocal %170 {approx = true} : vector<1x32xf32> -> vector<1x32xf32>
    %172 = vector.broadcast %171 : vector<1x32xf32> to vector<8x32xf32>
    %173 = arith.mulf %168, %172 : vector<8x32xf32>
    %cst_157 = arith.constant dense<0.000000e+00> : vector<32x32xf32>
    %174 = tpu.matmul %173, %160, %cst_157 {dimension_numbers = #tpu.dot_dimension_numbers<[0], [0], [1], [1], [0, 1, 1, 1], [], []>} : vector<8x32xf32>, vector<8x32xf32>, vector<32x32xf32> -> vector<32x32xf32>
    %c1_158 = arith.constant 1 : index
    %c0_159 = arith.constant 0 : index
    %c0_160 = arith.constant 0 : index
    %175 = vector.load %arg10[%c1_158, %c0_159, %c0_160] : memref<4x32x128xf32, #tpu.memory_space<vmem>>, vector<1x32x128xf32>
    %176 = vector.shape_cast %175 : vector<1x32x128xf32> to vector<32x128xf32>
    %cst_161 = arith.constant dense<0.000000e+00> : vector<32x128xf32>
    %177 = tpu.matmul %174, %176, %cst_161 {dimension_numbers = #tpu.dot_dimension_numbers<[1], [0], [0], [1], [0, 0, 1, 1], [], []>} : vector<32x32xf32>, vector<32x128xf32>, vector<32x128xf32> -> vector<32x128xf32>
    %178 = arith.addf %154, %177 : vector<32x128xf32>
    %c2_162 = arith.constant 2 : index
    %c0_163 = arith.constant 0 : index
    %c0_164 = arith.constant 0 : index
    %179 = vector.load %arg19[%c2_162, %c0_163, %c0_164] : memref<4x32x32xf32, #tpu.memory_space<vmem>>, vector<1x32x32xf32>
    %180 = vector.shape_cast %179 : vector<1x32x32xf32> to vector<32x32xf32>
    %c2_165 = arith.constant 2 : index
    %c0_166 = arith.constant 0 : index
    %c0_167 = arith.constant 0 : index
    %181 = vector.load %arg20[%c2_165, %c0_166, %c0_167] : memref<4x16x32xf32, #tpu.memory_space<vmem>>, vector<1x8x32xf32>
    %182 = vector.shape_cast %181 : vector<1x8x32xf32> to vector<8x32xf32>
    %c2_168 = arith.constant 2 : index
    %c0_169 = arith.constant 0 : index
    %c0_170 = arith.constant 0 : index
    %183 = vector.load %arg21[%c2_168, %c0_169, %c0_170] : memref<4x16x32xf32, #tpu.memory_space<vmem>>, vector<1x8x32xf32>
    %184 = vector.shape_cast %183 : vector<1x8x32xf32> to vector<8x32xf32>
    %cst_171 = arith.constant dense<0.000000e+00> : vector<8x32xf32>
    %185 = tpu.matmul %182, %180, %cst_171 {dimension_numbers = #tpu.dot_dimension_numbers<[1], [1], [0], [0], [0, 0, 1, 0], [], []>} : vector<8x32xf32>, vector<32x32xf32>, vector<8x32xf32> -> vector<8x32xf32>
    %186 = vector.broadcast %131 : vector<8x1xf32> to vector<8x32xf32>
    %187 = arith.addf %185, %186 : vector<8x32xf32>
    %cst_172 = arith.constant dense<0xFF800000> : vector<32xf32>
    %188 = vector.multi_reduction <maximumf>, %187, %cst_172 [0] : vector<8x32xf32> to vector<32xf32>
    %189 = vector.shape_cast %188 : vector<32xf32> to vector<1x32xf32>
    %190 = vector.broadcast %189 : vector<1x32xf32> to vector<8x32xf32>
    %191 = arith.subf %187, %190 : vector<8x32xf32>
    %192 = math.exp %191 : vector<8x32xf32>
    %cst_173 = arith.constant dense<0.000000e+00> : vector<32xf32>
    %193 = vector.multi_reduction <add>, %192, %cst_173 [0] : vector<8x32xf32> to vector<32xf32>
    %194 = vector.shape_cast %193 : vector<32xf32> to vector<1x32xf32>
    %195 = tpu.reciprocal %194 {approx = true} : vector<1x32xf32> -> vector<1x32xf32>
    %196 = vector.broadcast %195 : vector<1x32xf32> to vector<8x32xf32>
    %197 = arith.mulf %192, %196 : vector<8x32xf32>
    %cst_174 = arith.constant dense<0.000000e+00> : vector<32x32xf32>
    %198 = tpu.matmul %197, %184, %cst_174 {dimension_numbers = #tpu.dot_dimension_numbers<[0], [0], [1], [1], [0, 1, 1, 1], [], []>} : vector<8x32xf32>, vector<8x32xf32>, vector<32x32xf32> -> vector<32x32xf32>
    %c2_175 = arith.constant 2 : index
    %c0_176 = arith.constant 0 : index
    %c0_177 = arith.constant 0 : index
    %199 = vector.load %arg10[%c2_175, %c0_176, %c0_177] : memref<4x32x128xf32, #tpu.memory_space<vmem>>, vector<1x32x128xf32>
    %200 = vector.shape_cast %199 : vector<1x32x128xf32> to vector<32x128xf32>
    %cst_178 = arith.constant dense<0.000000e+00> : vector<32x128xf32>
    %201 = tpu.matmul %198, %200, %cst_178 {dimension_numbers = #tpu.dot_dimension_numbers<[1], [0], [0], [1], [0, 0, 1, 1], [], []>} : vector<32x32xf32>, vector<32x128xf32>, vector<32x128xf32> -> vector<32x128xf32>
    %202 = arith.addf %178, %201 : vector<32x128xf32>
    %c3_179 = arith.constant 3 : index
    %c0_180 = arith.constant 0 : index
    %c0_181 = arith.constant 0 : index
    %203 = vector.load %arg19[%c3_179, %c0_180, %c0_181] : memref<4x32x32xf32, #tpu.memory_space<vmem>>, vector<1x32x32xf32>
    %204 = vector.shape_cast %203 : vector<1x32x32xf32> to vector<32x32xf32>
    %c3_182 = arith.constant 3 : index
    %c0_183 = arith.constant 0 : index
    %c0_184 = arith.constant 0 : index
    %205 = vector.load %arg20[%c3_182, %c0_183, %c0_184] : memref<4x16x32xf32, #tpu.memory_space<vmem>>, vector<1x8x32xf32>
    %206 = vector.shape_cast %205 : vector<1x8x32xf32> to vector<8x32xf32>
    %c3_185 = arith.constant 3 : index
    %c0_186 = arith.constant 0 : index
    %c0_187 = arith.constant 0 : index
    %207 = vector.load %arg21[%c3_185, %c0_186, %c0_187] : memref<4x16x32xf32, #tpu.memory_space<vmem>>, vector<1x8x32xf32>
    %208 = vector.shape_cast %207 : vector<1x8x32xf32> to vector<8x32xf32>
    %cst_188 = arith.constant dense<0.000000e+00> : vector<8x32xf32>
    %209 = tpu.matmul %206, %204, %cst_188 {dimension_numbers = #tpu.dot_dimension_numbers<[1], [1], [0], [0], [0, 0, 1, 0], [], []>} : vector<8x32xf32>, vector<32x32xf32>, vector<8x32xf32> -> vector<8x32xf32>
    %210 = vector.broadcast %131 : vector<8x1xf32> to vector<8x32xf32>
    %211 = arith.addf %209, %210 : vector<8x32xf32>
    %cst_189 = arith.constant dense<0xFF800000> : vector<32xf32>
    %212 = vector.multi_reduction <maximumf>, %211, %cst_189 [0] : vector<8x32xf32> to vector<32xf32>
    %213 = vector.shape_cast %212 : vector<32xf32> to vector<1x32xf32>
    %214 = vector.broadcast %213 : vector<1x32xf32> to vector<8x32xf32>
    %215 = arith.subf %211, %214 : vector<8x32xf32>
    %216 = math.exp %215 : vector<8x32xf32>
    %cst_190 = arith.constant dense<0.000000e+00> : vector<32xf32>
    %217 = vector.multi_reduction <add>, %216, %cst_190 [0] : vector<8x32xf32> to vector<32xf32>
    %218 = vector.shape_cast %217 : vector<32xf32> to vector<1x32xf32>
    %219 = tpu.reciprocal %218 {approx = true} : vector<1x32xf32> -> vector<1x32xf32>
    %220 = vector.broadcast %219 : vector<1x32xf32> to vector<8x32xf32>
    %221 = arith.mulf %216, %220 : vector<8x32xf32>
    %cst_191 = arith.constant dense<0.000000e+00> : vector<32x32xf32>
    %222 = tpu.matmul %221, %208, %cst_191 {dimension_numbers = #tpu.dot_dimension_numbers<[0], [0], [1], [1], [0, 1, 1, 1], [], []>} : vector<8x32xf32>, vector<8x32xf32>, vector<32x32xf32> -> vector<32x32xf32>
    %c3_192 = arith.constant 3 : index
    %c0_193 = arith.constant 0 : index
    %c0_194 = arith.constant 0 : index
    %223 = vector.load %arg10[%c3_192, %c0_193, %c0_194] : memref<4x32x128xf32, #tpu.memory_space<vmem>>, vector<1x32x128xf32>
    %224 = vector.shape_cast %223 : vector<1x32x128xf32> to vector<32x128xf32>
    %cst_195 = arith.constant dense<0.000000e+00> : vector<32x128xf32>
    %225 = tpu.matmul %222, %224, %cst_195 {dimension_numbers = #tpu.dot_dimension_numbers<[1], [0], [0], [1], [0, 0, 1, 1], [], []>} : vector<32x32xf32>, vector<32x128xf32>, vector<32x128xf32> -> vector<32x128xf32>
    %226 = arith.addf %202, %225 : vector<32x128xf32>
    %c0_196 = arith.constant 0 : index
    %c0_197 = arith.constant 0 : index
    %227 = vector.load %arg11[%c0_196, %c0_197] : memref<1x128xf32, #tpu.memory_space<vmem>>, vector<1x128xf32>
    %228 = vector.broadcast %227 : vector<1x128xf32> to vector<32x128xf32>
    %229 = arith.addf %226, %228 : vector<32x128xf32>
    %c0_198 = arith.constant 0 : index
    %c0_199 = arith.constant 0 : index
    %230 = vector.load %arg12[%c0_198, %c0_199] : memref<128x128xf32, #tpu.memory_space<vmem>>, vector<128x128xf32>
    %cst_200 = arith.constant dense<0.000000e+00> : vector<32x128xf32>
    %231 = tpu.matmul %229, %230, %cst_200 {dimension_numbers = #tpu.dot_dimension_numbers<[1], [0], [0], [1], [0, 0, 1, 1], [], []>} : vector<32x128xf32>, vector<128x128xf32>, vector<32x128xf32> -> vector<32x128xf32>
    %c0_201 = arith.constant 0 : index
    %c0_202 = arith.constant 0 : index
    %232 = vector.load %arg13[%c0_201, %c0_202] : memref<1x128xf32, #tpu.memory_space<vmem>>, vector<1x128xf32>
    %233 = vector.broadcast %232 : vector<1x128xf32> to vector<32x128xf32>
    %234 = arith.addf %231, %233 : vector<32x128xf32>
    %cst_203 = arith.constant 0.000000e+00 : f32
    %235 = vector.broadcast %cst_203 : f32 to vector<32x128xf32>
    %236 = arith.cmpf ogt, %234, %235 : vector<32x128xf32>
    %237 = vector.broadcast %8 : f32 to vector<32x128xf32>
    %238 = arith.mulf %237, %234 : vector<32x128xf32>
    %239 = arith.select %236, %234, %238 : vector<32x128xi1>, vector<32x128xf32>
    %c0_204 = arith.constant 0 : index
    %c0_205 = arith.constant 0 : index
    %240 = vector.load %arg14[%c0_204, %c0_205] : memref<128x128xf32, #tpu.memory_space<vmem>>, vector<128x128xf32>
    %cst_206 = arith.constant dense<0.000000e+00> : vector<32x128xf32>
    %241 = tpu.matmul %239, %240, %cst_206 {dimension_numbers = #tpu.dot_dimension_numbers<[1], [0], [0], [1], [0, 0, 1, 1], [], []>} : vector<32x128xf32>, vector<128x128xf32>, vector<32x128xf32> -> vector<32x128xf32>
    %c0_207 = arith.constant 0 : index
    %c0_208 = arith.constant 0 : index
    %242 = vector.load %arg15[%c0_207, %c0_208] : memref<1x128xf32, #tpu.memory_space<vmem>>, vector<1x128xf32>
    %243 = vector.broadcast %242 : vector<1x128xf32> to vector<32x128xf32>
    %244 = arith.addf %241, %243 : vector<32x128xf32>
    %cst_209 = arith.constant 0.000000e+00 : f32
    %245 = vector.broadcast %cst_209 : f32 to vector<32x128xf32>
    %246 = arith.cmpf ogt, %244, %245 : vector<32x128xf32>
    %247 = vector.broadcast %9 : f32 to vector<32x128xf32>
    %248 = arith.mulf %247, %244 : vector<32x128xf32>
    %249 = arith.select %246, %244, %248 : vector<32x128xi1>, vector<32x128xf32>
    %c0_210 = arith.constant 0 : index
    %c0_211 = arith.constant 0 : index
    %250 = vector.load %arg16[%c0_210, %c0_211] : memref<8x128xf32, #tpu.memory_space<vmem>>, vector<8x128xf32>
    %cst_212 = arith.constant dense<0.000000e+00> : vector<8x32xf32>
    %251 = tpu.matmul %250, %249, %cst_212 {dimension_numbers = #tpu.dot_dimension_numbers<[1], [1], [0], [0], [0, 0, 1, 0], [], []>} : vector<8x128xf32>, vector<32x128xf32>, vector<8x32xf32> -> vector<8x32xf32>
    %252 = vector.extract_strided_slice %251 {offsets = [0, 0], sizes = [1, 32], strides = [1, 1]} : vector<8x32xf32> to vector<1x32xf32>
    %253 = vector.broadcast %10 : f32 to vector<1x32xf32>
    %254 = arith.addf %252, %253 : vector<1x32xf32>
    %c0_213 = arith.constant 0 : index
    %c0_214 = arith.constant 0 : index
    %c0_215 = arith.constant 0 : index
    %255 = vector.load %arg18[%c0_213, %c0_214, %c0_215] : memref<1x1x64xf32, #tpu.memory_space<vmem>>, vector<1x1x32xf32>
    %256 = vector.shape_cast %255 : vector<1x1x32xf32> to vector<1x32xf32>
    %257 = vector.shape_cast %254 : vector<1x32xf32> to vector<1x1x32xf32>
    tpu.vector_store %arg18[%c0_213, %c0_214, %c0_215], %257 {strides = array<i32>} : memref<1x1x64xf32, #tpu.memory_space<vmem>>, vector<1x1x32xf32>,
    %258 = vector.extract_strided_slice %7 {offsets = [8, 0], sizes = [8, 1], strides = [1, 1]} : vector<16x1xf32> to vector<8x1xf32>
    %c0_216 = arith.constant 0 : index
    %c0_217 = arith.constant 0 : index
    %c0_218 = arith.constant 0 : index
    %259 = vector.load %arg19[%c0_216, %c0_217, %c0_218] : memref<4x32x32xf32, #tpu.memory_space<vmem>>, vector<1x32x32xf32>
    %260 = vector.shape_cast %259 : vector<1x32x32xf32> to vector<32x32xf32>
    %c0_219 = arith.constant 0 : index
    %c8 = arith.constant 8 : index
    %c0_220 = arith.constant 0 : index
    %261 = vector.load %arg20[%c0_219, %c8, %c0_220] : memref<4x16x32xf32, #tpu.memory_space<vmem>>, vector<1x8x32xf32>
    %262 = vector.shape_cast %261 : vector<1x8x32xf32> to vector<8x32xf32>
    %c0_221 = arith.constant 0 : index
    %c8_222 = arith.constant 8 : index
    %c0_223 = arith.constant 0 : index
    %263 = vector.load %arg21[%c0_221, %c8_222, %c0_223] : memref<4x16x32xf32, #tpu.memory_space<vmem>>, vector<1x8x32xf32>
    %264 = vector.shape_cast %263 : vector<1x8x32xf32> to vector<8x32xf32>
    %cst_224 = arith.constant dense<0.000000e+00> : vector<8x32xf32>
    %265 = tpu.matmul %262, %260, %cst_224 {dimension_numbers = #tpu.dot_dimension_numbers<[1], [1], [0], [0], [0, 0, 1, 0], [], []>} : vector<8x32xf32>, vector<32x32xf32>, vector<8x32xf32> -> vector<8x32xf32>
    %266 = vector.broadcast %258 : vector<8x1xf32> to vector<8x32xf32>
    %267 = arith.addf %265, %266 : vector<8x32xf32>
    %cst_225 = arith.constant dense<0xFF800000> : vector<32xf32>
    %268 = vector.multi_reduction <maximumf>, %267, %cst_225 [0] : vector<8x32xf32> to vector<32xf32>
    %269 = vector.shape_cast %268 : vector<32xf32> to vector<1x32xf32>
    %270 = vector.broadcast %269 : vector<1x32xf32> to vector<8x32xf32>
    %271 = arith.subf %267, %270 : vector<8x32xf32>
    %272 = math.exp %271 : vector<8x32xf32>
    %cst_226 = arith.constant dense<0.000000e+00> : vector<32xf32>
    %273 = vector.multi_reduction <add>, %272, %cst_226 [0] : vector<8x32xf32> to vector<32xf32>
    %274 = vector.shape_cast %273 : vector<32xf32> to vector<1x32xf32>
    %275 = tpu.reciprocal %274 {approx = true} : vector<1x32xf32> -> vector<1x32xf32>
    %276 = vector.broadcast %275 : vector<1x32xf32> to vector<8x32xf32>
    %277 = arith.mulf %272, %276 : vector<8x32xf32>
    %cst_227 = arith.constant dense<0.000000e+00> : vector<32x32xf32>
    %278 = tpu.matmul %277, %264, %cst_227 {dimension_numbers = #tpu.dot_dimension_numbers<[0], [0], [1], [1], [0, 1, 1, 1], [], []>} : vector<8x32xf32>, vector<8x32xf32>, vector<32x32xf32> -> vector<32x32xf32>
    %c0_228 = arith.constant 0 : index
    %c0_229 = arith.constant 0 : index
    %c0_230 = arith.constant 0 : index
    %279 = vector.load %arg10[%c0_228, %c0_229, %c0_230] : memref<4x32x128xf32, #tpu.memory_space<vmem>>, vector<1x32x128xf32>
    %280 = vector.shape_cast %279 : vector<1x32x128xf32> to vector<32x128xf32>
    %cst_231 = arith.constant dense<0.000000e+00> : vector<32x128xf32>
    %281 = tpu.matmul %278, %280, %cst_231 {dimension_numbers = #tpu.dot_dimension_numbers<[1], [0], [0], [1], [0, 0, 1, 1], [], []>} : vector<32x32xf32>, vector<32x128xf32>, vector<32x128xf32> -> vector<32x128xf32>
    %c1_232 = arith.constant 1 : index
    %c0_233 = arith.constant 0 : index
    %c0_234 = arith.constant 0 : index
    %282 = vector.load %arg19[%c1_232, %c0_233, %c0_234] : memref<4x32x32xf32, #tpu.memory_space<vmem>>, vector<1x32x32xf32>
    %283 = vector.shape_cast %282 : vector<1x32x32xf32> to vector<32x32xf32>
    %c1_235 = arith.constant 1 : index
    %c8_236 = arith.constant 8 : index
    %c0_237 = arith.constant 0 : index
    %284 = vector.load %arg20[%c1_235, %c8_236, %c0_237] : memref<4x16x32xf32, #tpu.memory_space<vmem>>, vector<1x8x32xf32>
    %285 = vector.shape_cast %284 : vector<1x8x32xf32> to vector<8x32xf32>
    %c1_238 = arith.constant 1 : index
    %c8_239 = arith.constant 8 : index
    %c0_240 = arith.constant 0 : index
    %286 = vector.load %arg21[%c1_238, %c8_239, %c0_240] : memref<4x16x32xf32, #tpu.memory_space<vmem>>, vector<1x8x32xf32>
    %287 = vector.shape_cast %286 : vector<1x8x32xf32> to vector<8x32xf32>
    %cst_241 = arith.constant dense<0.000000e+00> : vector<8x32xf32>
    %288 = tpu.matmul %285, %283, %cst_241 {dimension_numbers = #tpu.dot_dimension_numbers<[1], [1], [0], [0], [0, 0, 1, 0], [], []>} : vector<8x32xf32>, vector<32x32xf32>, vector<8x32xf32> -> vector<8x32xf32>
    %289 = vector.broadcast %258 : vector<8x1xf32> to vector<8x32xf32>
    %290 = arith.addf %288, %289 : vector<8x32xf32>
    %cst_242 = arith.constant dense<0xFF800000> : vector<32xf32>
    %291 = vector.multi_reduction <maximumf>, %290, %cst_242 [0] : vector<8x32xf32> to vector<32xf32>
    %292 = vector.shape_cast %291 : vector<32xf32> to vector<1x32xf32>
    %293 = vector.broadcast %292 : vector<1x32xf32> to vector<8x32xf32>
    %294 = arith.subf %290, %293 : vector<8x32xf32>
    %295 = math.exp %294 : vector<8x32xf32>
    %cst_243 = arith.constant dense<0.000000e+00> : vector<32xf32>
    %296 = vector.multi_reduction <add>, %295, %cst_243 [0] : vector<8x32xf32> to vector<32xf32>
    %297 = vector.shape_cast %296 : vector<32xf32> to vector<1x32xf32>
    %298 = tpu.reciprocal %297 {approx = true} : vector<1x32xf32> -> vector<1x32xf32>
    %299 = vector.broadcast %298 : vector<1x32xf32> to vector<8x32xf32>
    %300 = arith.mulf %295, %299 : vector<8x32xf32>
    %cst_244 = arith.constant dense<0.000000e+00> : vector<32x32xf32>
    %301 = tpu.matmul %300, %287, %cst_244 {dimension_numbers = #tpu.dot_dimension_numbers<[0], [0], [1], [1], [0, 1, 1, 1], [], []>} : vector<8x32xf32>, vector<8x32xf32>, vector<32x32xf32> -> vector<32x32xf32>
    %c1_245 = arith.constant 1 : index
    %c0_246 = arith.constant 0 : index
    %c0_247 = arith.constant 0 : index
    %302 = vector.load %arg10[%c1_245, %c0_246, %c0_247] : memref<4x32x128xf32, #tpu.memory_space<vmem>>, vector<1x32x128xf32>
    %303 = vector.shape_cast %302 : vector<1x32x128xf32> to vector<32x128xf32>
    %cst_248 = arith.constant dense<0.000000e+00> : vector<32x128xf32>
    %304 = tpu.matmul %301, %303, %cst_248 {dimension_numbers = #tpu.dot_dimension_numbers<[1], [0], [0], [1], [0, 0, 1, 1], [], []>} : vector<32x32xf32>, vector<32x128xf32>, vector<32x128xf32> -> vector<32x128xf32>
    %305 = arith.addf %281, %304 : vector<32x128xf32>
    %c2_249 = arith.constant 2 : index
    %c0_250 = arith.constant 0 : index
    %c0_251 = arith.constant 0 : index
    %306 = vector.load %arg19[%c2_249, %c0_250, %c0_251] : memref<4x32x32xf32, #tpu.memory_space<vmem>>, vector<1x32x32xf32>
    %307 = vector.shape_cast %306 : vector<1x32x32xf32> to vector<32x32xf32>
    %c2_252 = arith.constant 2 : index
    %c8_253 = arith.constant 8 : index
    %c0_254 = arith.constant 0 : index
    %308 = vector.load %arg20[%c2_252, %c8_253, %c0_254] : memref<4x16x32xf32, #tpu.memory_space<vmem>>, vector<1x8x32xf32>
    %309 = vector.shape_cast %308 : vector<1x8x32xf32> to vector<8x32xf32>
    %c2_255 = arith.constant 2 : index
    %c8_256 = arith.constant 8 : index
    %c0_257 = arith.constant 0 : index
    %310 = vector.load %arg21[%c2_255, %c8_256, %c0_257] : memref<4x16x32xf32, #tpu.memory_space<vmem>>, vector<1x8x32xf32>
    %311 = vector.shape_cast %310 : vector<1x8x32xf32> to vector<8x32xf32>
    %cst_258 = arith.constant dense<0.000000e+00> : vector<8x32xf32>
    %312 = tpu.matmul %309, %307, %cst_258 {dimension_numbers = #tpu.dot_dimension_numbers<[1], [1], [0], [0], [0, 0, 1, 0], [], []>} : vector<8x32xf32>, vector<32x32xf32>, vector<8x32xf32> -> vector<8x32xf32>
    %313 = vector.broadcast %258 : vector<8x1xf32> to vector<8x32xf32>
    %314 = arith.addf %312, %313 : vector<8x32xf32>
    %cst_259 = arith.constant dense<0xFF800000> : vector<32xf32>
    %315 = vector.multi_reduction <maximumf>, %314, %cst_259 [0] : vector<8x32xf32> to vector<32xf32>
    %316 = vector.shape_cast %315 : vector<32xf32> to vector<1x32xf32>
    %317 = vector.broadcast %316 : vector<1x32xf32> to vector<8x32xf32>
    %318 = arith.subf %314, %317 : vector<8x32xf32>
    %319 = math.exp %318 : vector<8x32xf32>
    %cst_260 = arith.constant dense<0.000000e+00> : vector<32xf32>
    %320 = vector.multi_reduction <add>, %319, %cst_260 [0] : vector<8x32xf32> to vector<32xf32>
    %321 = vector.shape_cast %320 : vector<32xf32> to vector<1x32xf32>
    %322 = tpu.reciprocal %321 {approx = true} : vector<1x32xf32> -> vector<1x32xf32>
    %323 = vector.broadcast %322 : vector<1x32xf32> to vector<8x32xf32>
    %324 = arith.mulf %319, %323 : vector<8x32xf32>
    %cst_261 = arith.constant dense<0.000000e+00> : vector<32x32xf32>
    %325 = tpu.matmul %324, %311, %cst_261 {dimension_numbers = #tpu.dot_dimension_numbers<[0], [0], [1], [1], [0, 1, 1, 1], [], []>} : vector<8x32xf32>, vector<8x32xf32>, vector<32x32xf32> -> vector<32x32xf32>
    %c2_262 = arith.constant 2 : index
    %c0_263 = arith.constant 0 : index
    %c0_264 = arith.constant 0 : index
    %326 = vector.load %arg10[%c2_262, %c0_263, %c0_264] : memref<4x32x128xf32, #tpu.memory_space<vmem>>, vector<1x32x128xf32>
    %327 = vector.shape_cast %326 : vector<1x32x128xf32> to vector<32x128xf32>
    %cst_265 = arith.constant dense<0.000000e+00> : vector<32x128xf32>
    %328 = tpu.matmul %325, %327, %cst_265 {dimension_numbers = #tpu.dot_dimension_numbers<[1], [0], [0], [1], [0, 0, 1, 1], [], []>} : vector<32x32xf32>, vector<32x128xf32>, vector<32x128xf32> -> vector<32x128xf32>
    %329 = arith.addf %305, %328 : vector<32x128xf32>
    %c3_266 = arith.constant 3 : index
    %c0_267 = arith.constant 0 : index
    %c0_268 = arith.constant 0 : index
    %330 = vector.load %arg19[%c3_266, %c0_267, %c0_268] : memref<4x32x32xf32, #tpu.memory_space<vmem>>, vector<1x32x32xf32>
    %331 = vector.shape_cast %330 : vector<1x32x32xf32> to vector<32x32xf32>
    %c3_269 = arith.constant 3 : index
    %c8_270 = arith.constant 8 : index
    %c0_271 = arith.constant 0 : index
    %332 = vector.load %arg20[%c3_269, %c8_270, %c0_271] : memref<4x16x32xf32, #tpu.memory_space<vmem>>, vector<1x8x32xf32>
    %333 = vector.shape_cast %332 : vector<1x8x32xf32> to vector<8x32xf32>
    %c3_272 = arith.constant 3 : index
    %c8_273 = arith.constant 8 : index
    %c0_274 = arith.constant 0 : index
    %334 = vector.load %arg21[%c3_272, %c8_273, %c0_274] : memref<4x16x32xf32, #tpu.memory_space<vmem>>, vector<1x8x32xf32>
    %335 = vector.shape_cast %334 : vector<1x8x32xf32> to vector<8x32xf32>
    %cst_275 = arith.constant dense<0.000000e+00> : vector<8x32xf32>
    %336 = tpu.matmul %333, %331, %cst_275 {dimension_numbers = #tpu.dot_dimension_numbers<[1], [1], [0], [0], [0, 0, 1, 0], [], []>} : vector<8x32xf32>, vector<32x32xf32>, vector<8x32xf32> -> vector<8x32xf32>
    %337 = vector.broadcast %258 : vector<8x1xf32> to vector<8x32xf32>
    %338 = arith.addf %336, %337 : vector<8x32xf32>
    %cst_276 = arith.constant dense<0xFF800000> : vector<32xf32>
    %339 = vector.multi_reduction <maximumf>, %338, %cst_276 [0] : vector<8x32xf32> to vector<32xf32>
    %340 = vector.shape_cast %339 : vector<32xf32> to vector<1x32xf32>
    %341 = vector.broadcast %340 : vector<1x32xf32> to vector<8x32xf32>
    %342 = arith.subf %338, %341 : vector<8x32xf32>
    %343 = math.exp %342 : vector<8x32xf32>
    %cst_277 = arith.constant dense<0.000000e+00> : vector<32xf32>
    %344 = vector.multi_reduction <add>, %343, %cst_277 [0] : vector<8x32xf32> to vector<32xf32>
    %345 = vector.shape_cast %344 : vector<32xf32> to vector<1x32xf32>
    %346 = tpu.reciprocal %345 {approx = true} : vector<1x32xf32> -> vector<1x32xf32>
    %347 = vector.broadcast %346 : vector<1x32xf32> to vector<8x32xf32>
    %348 = arith.mulf %343, %347 : vector<8x32xf32>
    %cst_278 = arith.constant dense<0.000000e+00> : vector<32x32xf32>
    %349 = tpu.matmul %348, %335, %cst_278 {dimension_numbers = #tpu.dot_dimension_numbers<[0], [0], [1], [1], [0, 1, 1, 1], [], []>} : vector<8x32xf32>, vector<8x32xf32>, vector<32x32xf32> -> vector<32x32xf32>
    %c3_279 = arith.constant 3 : index
    %c0_280 = arith.constant 0 : index
    %c0_281 = arith.constant 0 : index
    %350 = vector.load %arg10[%c3_279, %c0_280, %c0_281] : memref<4x32x128xf32, #tpu.memory_space<vmem>>, vector<1x32x128xf32>
    %351 = vector.shape_cast %350 : vector<1x32x128xf32> to vector<32x128xf32>
    %cst_282 = arith.constant dense<0.000000e+00> : vector<32x128xf32>
    %352 = tpu.matmul %349, %351, %cst_282 {dimension_numbers = #tpu.dot_dimension_numbers<[1], [0], [0], [1], [0, 0, 1, 1], [], []>} : vector<32x32xf32>, vector<32x128xf32>, vector<32x128xf32> -> vector<32x128xf32>
    %353 = arith.addf %329, %352 : vector<32x128xf32>
    %c0_283 = arith.constant 0 : index
    %c0_284 = arith.constant 0 : index
    %354 = vector.load %arg11[%c0_283, %c0_284] : memref<1x128xf32, #tpu.memory_space<vmem>>, vector<1x128xf32>
    %355 = vector.broadcast %354 : vector<1x128xf32> to vector<32x128xf32>
    %356 = arith.addf %353, %355 : vector<32x128xf32>
    %c0_285 = arith.constant 0 : index
    %c0_286 = arith.constant 0 : index
    %357 = vector.load %arg12[%c0_285, %c0_286] : memref<128x128xf32, #tpu.memory_space<vmem>>, vector<128x128xf32>
    %cst_287 = arith.constant dense<0.000000e+00> : vector<32x128xf32>
    %358 = tpu.matmul %356, %357, %cst_287 {dimension_numbers = #tpu.dot_dimension_numbers<[1], [0], [0], [1], [0, 0, 1, 1], [], []>} : vector<32x128xf32>, vector<128x128xf32>, vector<32x128xf32> -> vector<32x128xf32>
    %c0_288 = arith.constant 0 : index
    %c0_289 = arith.constant 0 : index
    %359 = vector.load %arg13[%c0_288, %c0_289] : memref<1x128xf32, #tpu.memory_space<vmem>>, vector<1x128xf32>
    %360 = vector.broadcast %359 : vector<1x128xf32> to vector<32x128xf32>
    %361 = arith.addf %358, %360 : vector<32x128xf32>
    %cst_290 = arith.constant 0.000000e+00 : f32
    %362 = vector.broadcast %cst_290 : f32 to vector<32x128xf32>
    %363 = arith.cmpf ogt, %361, %362 : vector<32x128xf32>
    %364 = vector.broadcast %8 : f32 to vector<32x128xf32>
    %365 = arith.mulf %364, %361 : vector<32x128xf32>
    %366 = arith.select %363, %361, %365 : vector<32x128xi1>, vector<32x128xf32>
    %c0_291 = arith.constant 0 : index
    %c0_292 = arith.constant 0 : index
    %367 = vector.load %arg14[%c0_291, %c0_292] : memref<128x128xf32, #tpu.memory_space<vmem>>, vector<128x128xf32>
    %cst_293 = arith.constant dense<0.000000e+00> : vector<32x128xf32>
    %368 = tpu.matmul %366, %367, %cst_293 {dimension_numbers = #tpu.dot_dimension_numbers<[1], [0], [0], [1], [0, 0, 1, 1], [], []>} : vector<32x128xf32>, vector<128x128xf32>, vector<32x128xf32> -> vector<32x128xf32>
    %c0_294 = arith.constant 0 : index
    %c0_295 = arith.constant 0 : index
    %369 = vector.load %arg15[%c0_294, %c0_295] : memref<1x128xf32, #tpu.memory_space<vmem>>, vector<1x128xf32>
    %370 = vector.broadcast %369 : vector<1x128xf32> to vector<32x128xf32>
    %371 = arith.addf %368, %370 : vector<32x128xf32>
    %cst_296 = arith.constant 0.000000e+00 : f32
    %372 = vector.broadcast %cst_296 : f32 to vector<32x128xf32>
    %373 = arith.cmpf ogt, %371, %372 : vector<32x128xf32>
    %374 = vector.broadcast %9 : f32 to vector<32x128xf32>
    %375 = arith.mulf %374, %371 : vector<32x128xf32>
    %376 = arith.select %373, %371, %375 : vector<32x128xi1>, vector<32x128xf32>
    %c0_297 = arith.constant 0 : index
    %c0_298 = arith.constant 0 : index
    %377 = vector.load %arg16[%c0_297, %c0_298] : memref<8x128xf32, #tpu.memory_space<vmem>>, vector<8x128xf32>
    %cst_299 = arith.constant dense<0.000000e+00> : vector<8x32xf32>
    %378 = tpu.matmul %377, %376, %cst_299 {dimension_numbers = #tpu.dot_dimension_numbers<[1], [1], [0], [0], [0, 0, 1, 0], [], []>} : vector<8x128xf32>, vector<32x128xf32>, vector<8x32xf32> -> vector<8x32xf32>
    %379 = vector.extract_strided_slice %378 {offsets = [0, 0], sizes = [1, 32], strides = [1, 1]} : vector<8x32xf32> to vector<1x32xf32>
    %380 = vector.broadcast %10 : f32 to vector<1x32xf32>
    %381 = arith.addf %379, %380 : vector<1x32xf32>
    %c0_300 = arith.constant 0 : index
    %c0_301 = arith.constant 0 : index
    %c32 = arith.constant 32 : index
    %382 = vector.load %arg18[%c0_300, %c0_301, %c32] : memref<1x1x64xf32, #tpu.memory_space<vmem>>, vector<1x1x32xf32>
    %383 = vector.shape_cast %382 : vector<1x1x32xf32> to vector<1x32xf32>
    %384 = vector.shape_cast %381 : vector<1x32xf32> to vector<1x1x32xf32>
    tpu.vector_store %arg18[%c0_300, %c0_301, %c32], %384 {strides = array<i32>} : memref<1x1x64xf32, #tpu.memory_space<vmem>>, vector<1x1x32xf32>,
    return
  }
  func.func @transform_0(%arg0: i32) -> (i32, i32, i32) {
    %c0_i32 = arith.constant 0 : i32
    %c0_i32_0 = arith.constant 0 : i32
    %c0_i32_1 = arith.constant 0 : i32
    return %arg0, %c0_i32, %c0_i32_0 : i32, i32, i32
  }
  func.func @transform_1(%arg0: i32) -> (i32, i32, i32) {
    %c0_i32 = arith.constant 0 : i32
    %c0_i32_0 = arith.constant 0 : i32
    %c0_i32_1 = arith.constant 0 : i32
    return %arg0, %c0_i32, %c0_i32_0 : i32, i32, i32
  }
  func.func @transform_2(%arg0: i32) -> (i32, i32, i32) {
    %c0_i32 = arith.constant 0 : i32
    %c0_i32_0 = arith.constant 0 : i32
    %c0_i32_1 = arith.constant 0 : i32
    return %arg0, %c0_i32, %c0_i32_0 : i32, i32, i32
  }
  func.func @transform_3(%arg0: i32) -> (i32, i32, i32) {
    %c0_i32 = arith.constant 0 : i32
    %c0_i32_0 = arith.constant 0 : i32
    %c0_i32_1 = arith.constant 0 : i32
    %c0_i32_2 = arith.constant 0 : i32
    return %c0_i32, %c0_i32_0, %c0_i32_1 : i32, i32, i32
  }
  func.func @transform_4(%arg0: i32) -> (i32, i32, i32) {
    %c0_i32 = arith.constant 0 : i32
    %c0_i32_0 = arith.constant 0 : i32
    %c0_i32_1 = arith.constant 0 : i32
    %c0_i32_2 = arith.constant 0 : i32
    return %c0_i32, %c0_i32_0, %c0_i32_1 : i32, i32, i32
  }
  func.func @transform_5(%arg0: i32) -> (i32, i32, i32) {
    %c0_i32 = arith.constant 0 : i32
    %c0_i32_0 = arith.constant 0 : i32
    %c0_i32_1 = arith.constant 0 : i32
    %c0_i32_2 = arith.constant 0 : i32
    return %c0_i32, %c0_i32_0, %c0_i32_1 : i32, i32, i32
  }
  func.func @transform_6(%arg0: i32) -> (i32, i32, i32) {
    %c0_i32 = arith.constant 0 : i32
    %c0_i32_0 = arith.constant 0 : i32
    %c0_i32_1 = arith.constant 0 : i32
    %c0_i32_2 = arith.constant 0 : i32
    return %c0_i32, %c0_i32_0, %c0_i32_1 : i32, i32, i32
  }
  func.func @transform_7(%arg0: i32) -> (i32, i32, i32) {
    %c0_i32 = arith.constant 0 : i32
    %c0_i32_0 = arith.constant 0 : i32
    %c0_i32_1 = arith.constant 0 : i32
    %c0_i32_2 = arith.constant 0 : i32
    return %c0_i32, %c0_i32_0, %c0_i32_1 : i32, i32, i32
  }
  func.func @transform_8(%arg0: i32) -> (i32, i32, i32) {
    %c0_i32 = arith.constant 0 : i32
    %c0_i32_0 = arith.constant 0 : i32
    %c0_i32_1 = arith.constant 0 : i32
    %c0_i32_2 = arith.constant 0 : i32
    return %c0_i32, %c0_i32_0, %c0_i32_1 : i32, i32, i32
  }
  func.func @transform_9(%arg0: i32) -> (i32, i32, i32) {
    %c0_i32 = arith.constant 0 : i32
    %c0_i32_0 = arith.constant 0 : i32
    %c0_i32_1 = arith.constant 0 : i32
    %c0_i32_2 = arith.constant 0 : i32
    return %c0_i32, %c0_i32_0, %c0_i32_1 : i32, i32, i32
  }
  func.func @transform_10(%arg0: i32) -> (i32, i32) {
    %c0_i32 = arith.constant 0 : i32
    %c0_i32_0 = arith.constant 0 : i32
    %c0_i32_1 = arith.constant 0 : i32
    return %c0_i32, %c0_i32_0 : i32, i32
  }
  func.func @transform_11(%arg0: i32) -> (i32, i32) {
    %c0_i32 = arith.constant 0 : i32
    %c0_i32_0 = arith.constant 0 : i32
    %c0_i32_1 = arith.constant 0 : i32
    return %c0_i32, %c0_i32_0 : i32, i32
  }
  func.func @transform_12(%arg0: i32) -> (i32, i32) {
    %c0_i32 = arith.constant 0 : i32
    %c0_i32_0 = arith.constant 0 : i32
    %c0_i32_1 = arith.constant 0 : i32
    return %c0_i32, %c0_i32_0 : i32, i32
  }
  func.func @transform_13(%arg0: i32) -> (i32, i32) {
    %c0_i32 = arith.constant 0 : i32
    %c0_i32_0 = arith.constant 0 : i32
    %c0_i32_1 = arith.constant 0 : i32
    return %c0_i32, %c0_i32_0 : i32, i32
  }
  func.func @transform_14(%arg0: i32) -> (i32, i32) {
    %c0_i32 = arith.constant 0 : i32
    %c0_i32_0 = arith.constant 0 : i32
    %c0_i32_1 = arith.constant 0 : i32
    return %c0_i32, %c0_i32_0 : i32, i32
  }
  func.func @transform_15(%arg0: i32) -> (i32, i32) {
    %c0_i32 = arith.constant 0 : i32
    %c0_i32_0 = arith.constant 0 : i32
    %c0_i32_1 = arith.constant 0 : i32
    return %c0_i32, %c0_i32_0 : i32, i32
  }
  func.func @transform_16(%arg0: i32) -> i32 {
    %c0_i32 = arith.constant 0 : i32
    %c0_i32_0 = arith.constant 0 : i32
    return %c0_i32 : i32
  }
  func.func @transform_17(%arg0: i32) -> (i32, i32, i32) {
    %c0_i32 = arith.constant 0 : i32
    %c0_i32_0 = arith.constant 0 : i32
    %c0_i32_1 = arith.constant 0 : i32
    return %arg0, %c0_i32, %c0_i32_0 : i32, i32, i32
  }
}

</mosaic_0001>

<bundles_post_ra>
// kernel: tpu_custom_call.1
= control target key start
LH: loop header
LB: loop body
LE: loop exit
PB: predicated region body
PF: predicated region fallthrough
CT: control target
= control target key end

     0   :  { %s5074_s0 = inlined_call_operand.vmem [shape: f32[2,32,128], index: 0, kind: input, shape index: {}]   ;;  %s5075_s1 = inlined_call_operand.vmem [shape: f32[2,16,128], index: 1, kind: input, shape index: {}]   ;;  %s5076_s2 = inlined_call_operand.vmem [shape: f32[2,16,1], index: 2, kind: input, shape index: {}]   ;;  %s5077_s3 = inlined_call_operand.vmem [shape: f32[4,128,32], index: 3, kind: input, shape index: {}]   ;;  %s5078_s4 = inlined_call_operand.vmem [shape: f32[4,1,32], index: 4, kind: input, shape index: {}]   ;;  %s5079_s5 = inlined_call_operand.vmem [shape: f32[4,128,32], index: 5, kind: input, shape index: {}]   ;;  %s5080_s6 = inlined_call_operand.vmem [shape: f32[4,1,32], index: 6, kind: input, shape index: {}]   ;;  %s5081_s7 = inlined_call_operand.vmem [shape: f32[4,128,32], index: 7, kind: input, shape index: {}]   ;;  %s5082_s8 = inlined_call_operand.vmem [shape: f32[4,1,32], index: 8, kind: input, shape index: {}]   ;;  %s5083_s9 = inlined_call_operand.vmem [shape: f32[4,32,128], index: 9, kind: input, shape index: {}]   ;;  %s5084_s10 = inlined_call_operand.vmem [shape: f32[1,128], index: 10, kind: input, shape index: {}]   ;;  %s5085_s11 = inlined_call_operand.vmem [shape: f32[128,128], index: 11, kind: input, shape index: {}]   ;;  %s5086_s12 = inlined_call_operand.vmem [shape: f32[1,128], index: 12, kind: input, shape index: {}]   ;;  %s5087_s13 = inlined_call_operand.vmem [shape: f32[128,128], index: 13, kind: input, shape index: {}]   ;;  %s5088_s14 = inlined_call_operand.vmem [shape: f32[1,128], index: 14, kind: input, shape index: {}]   ;;  %s5089_s15 = inlined_call_operand.vmem [shape: f32[8,128], index: 15, kind: input, shape index: {}]   ;;  %s5090_s16 = inlined_call_operand.vmem [shape: f32[3], index: 16, kind: input, shape index: {}]   ;;  %s5091_s17 = inlined_call_operand.hbm [shape: f32[2,1,64], index: 17, kind: output, shape index: {}]  }
   0x1   :  { %5099 = sst [smem:[#allocation17_spill]] %s5074_s0 }
   0x2   :  { %5100 = sst [smem:[#allocation18_spill]] %s5075_s1 }
   0x3   :  { %5101 = sst [smem:[#allocation19_spill]] %s5090_s16 }
   0x4   :  { %22 = vsyncpa [#allocation7], 0 }
   0x5   :  { %23 = vsyncpa [#allocation6], 0 }
   0x6   :  { %25 = vsyncpa [#allocation6 + $0x1], 0  ;;  %s3669_s24 = smov 0   ;;  %s3671_s25 = smov 0  }
   0x7   :  { %s3673_s26 = smov 0   ;;  %s3675_s27 = smov 0  }
   0x8 LB: > { %5102 = sst [smem:[#allocation11_spill]] %s3562_s24  ;;  %s3690_s28 = sadd.s32 4294967295, %s3574_s27   ;;  %s3574_s27 = sphi %s3675_s27, %s5117_s27   ;;  %s3570_s26 = sphi %s3673_s26, %s5122_s26   ;;  %s3566_s25 = sphi %s3671_s25, %s5121_s25   ;;  %s3562_s24 = sphi %s3669_s24, %s5120_s24  }
   0x9   : > { %5103 = sst [smem:[#allocation12_spill]] %s3570_s26  ;;  %s3086_s29 = sadd.s32 4294967294, %s3574_s27  }
   0xa   : > { %5104 = sst [smem:[#allocation13_spill]] %s3574_s27  ;;  %s3694_s0 = sadd.s32 1, %s3574_s27  }
   0xb   : > { %5105 = sst [smem:[#allocation14_spill]] %s3694_s0  ;;  %s410_s30 = sadd.s32 1, %s3570_s26 }
   0xc   : > { %s407_s18 = ssub.s32 %s3574_s27, %s3694_s0  ;;  %p420_p0 = scmp.ne.s32.totalorder %s3570_s26, %s3566_s25 }
   0xd   : > { %p408_p1 = scmp.eq.s32.totalorder %s407_s18, 0  ;;  %p421_p2 = scmp.eq.s32.totalorder %s3690_s28, 1 }
   0xe   : > { %p426_p3 = scmp.ne.s32.totalorder %s3566_s25, %s3562_s24  ;;  %p427_p4 = scmp.eq.s32.totalorder %s3086_s29, 1 }
   0xf   : > { %s3705_s19 = scalar_select %p408_p1, %s3570_s26, %s410_s30  }
  0x10   : > { %p3707_p5 = por %p421_p2, %p420_p0  ;;  %p3711_p6 = por %p427_p4, %p426_p3 }
  0x11   : > { %5106 = sst [smem:[#allocation15_spill]] %s3705_s19  ;;  %p3087_p7 = scmp.ge.s32.totalorder %s3574_s27, 1 }
  0x12   : > { %s5108_s20 = scalar_select %p3711_p6, 1, 0 }
  0x13   : > { %p434_p8 = scmp.lt.s32.totalorder %s3574_s27, 3  ;;  %p3400_p9 = scmp.eq.s32.totalorder %s3690_s28, 0 }
  0x14   : > { %5109 = sst [smem:[#allocation16_spill]] %s5108_s20  ;;  %s3576_s29 = smov [#allocation5]  }
  0x15   : > { %p435_p10 = pnand %p3087_p7, %p434_p8  ;;  %s5110_s16 = sld [smem:[#allocation19_spill]] }
  0x17   : > { %p3392_p11 = pneg %p435_p10 }
  0x18   : > { %522 = sbr.rel (%p435_p10) target bundleno = 2918 (0xb66), region = 88 }
  0x19   : > { %p3393_p12 = pnand %p3400_p9, %p3392_p11 }
  0x1b   : > { %s485_s23 = sshll.u32 %s5110_s16, 4  ;;  %s486_s23 = int_to_ptr.vmem [resolvable:$true] %s485_s23 }
  0x1c   : > { %3395 = dma.vmem_to_smem (!%p3393_p12), %s486_s23, 16, %s3576_s29, [#allocation7]  }
  0x1d   : > { %3553 = dma.done.wait (%p3400_p9), [#allocation7], 16  }
  0x1e   : > { %3555 = vsyncadd (%p3400_p9), [#allocation7], 4294967280 }
  0x1f   : > { %529 = sfence }
  0x20   : > { %v628_v0 = vld [vmem:[%s5077_s3 + $0x78] sm:$0xff]  ;;  %v627_v2 = vld [vmem:[%s5077_s3 + $0x70] sm:$0xff]  ;;  %v626_v4 = vld [vmem:[%s5077_s3 + $0x68] sm:$0xff]  ;;  %p585_p13 = scmp.lt.s32.totalorder %s3690_s28, 1  ;;  %s5111_s27 = sld [smem:[#allocation17_spill]]  ;;  %vm662_vm0 = vcmask 261120  }
  0x21   : > { %v3115_v1 = vld [vmem:[%s5077_s3 + $0xf8] sm:$0xff]  ;;  %633 = vmatpush.msra.mxu0 %v628_v0  ;;  %v3114_v3 = vld [vmem:[%s5077_s3 + $0xf0] sm:$0xff]  ;;  %v3113_v5 = vld [vmem:[%s5077_s3 + $0xe8] sm:$0xff]  ;;  %s5112_s19 = sld [smem:[#allocation18_spill]]  ;;  %vm1310_vm1 = vcmask 64512   ;;  %vm2097_vm10 = vcmask 253952   ;;  %s2991_s23 = scalar_lea.hbm %s5091_s17, %s3690_s28 }
  0x22   : > { %779 = vmatpush.msra.mxu3 %v3115_v1  ;;  %v625_v6 = vld [vmem:[%s5077_s3 + $0x60] sm:$0xff]  ;;  %v624_v8 = vld [vmem:[%s5077_s3 + $0x58] sm:$0xff]  ;;  %v623_v10 = vld [vmem:[%s5077_s3 + $0x50] sm:$0xff]  ;;  %s3809_s20 = scalar_select %p585_p13, %s3690_s28, 1 }
  0x23   : > { %634 = vmatpush.msra.mxu0 %v627_v2  ;;  %v3112_v7 = vld [vmem:[%s5077_s3 + $0xe0] sm:$0xff]  ;;  %v3111_v9 = vld [vmem:[%s5077_s3 + $0xd8] sm:$0xff]  ;;  %v3110_v11 = vld [vmem:[%s5077_s3 + $0xd0] sm:$0xff]  ;;  %s4982_s30 = sld [smem:[#allocation5 + $0x2]]  ;;  %s2995_s18 = sshll.u32 %s2991_s23, 4  ;;  %s2996_s18 = int_to_ptr.hbm [resolvable:$true] %s2995_s18 }
  0x24   : > { %780 = vmatpush.msra.mxu3 %v3114_v3  ;;  %v622_v12 = vld [vmem:[%s5077_s3 + $0x48] sm:$0xff]  ;;  %v621_v14 = vld [vmem:[%s5077_s3 + $0x40] sm:$0xff]  ;;  %v682_v16 = vld [vmem:[%s5079_s5 + $0x78] sm:$0xff]  ;;  %s3383_s0 = sshll.u32 %s3809_s20, 5  ;;  %s3522_s26 = sshra.s32 %s2996_s18, 4  ;;  %s3523_s26 = int_to_ptr.hbm [resolvable:$true] %s3522_s26 }
  0x25   : > { %635 = vmatpush.msra.mxu0 %v626_v4  ;;  %v3109_v13 = vld [vmem:[%s5077_s3 + $0xc8] sm:$0xff]  ;;  %v3108_v15 = vld [vmem:[%s5077_s3 + $0xc0] sm:$0xff]  ;;  %v620_v17 = vld [vmem:[%s5077_s3 + $0x38] sm:$0xff]  ;;  %687 = vmatpush.msra.mxu1 %v682_v16  ;;  %s3528_s28 = scalar_lea.hbm %s5091_s17, 2  ;;  %p3529_p3 = scmp.lt.s32.totalorder %s3523_s26, %s5091_s17 }
  0x26   : > { %781 = vmatpush.msra.mxu3 %v3113_v5  ;;  %v3107_v18 = vld [vmem:[%s5077_s3 + $0xb8] sm:$0xff]  ;;  %v681_v19 = vld [vmem:[%s5079_s5 + $0x70] sm:$0xff]  ;;  %v680_v20 = vld [vmem:[%s5079_s5 + $0x68] sm:$0xff]  ;;  %s3845_s29 = scalar_lea.vmem %s5111_s27, %s3383_s0  ;;  %s5098_s27 = sshll.u32 %s3809_s20, 4 }
  0x27   : > { %636 = vmatpush.msra.mxu0 %v625_v6  ;;  %v619_v21 = vld [vmem:[%s5077_s3 + $0x30] sm:$0xff]  ;;  %688 = vmatpush.msra.mxu1 %v681_v19  ;;  %v618_v23 = vld [vmem:[%s5077_s3 + $0x28] sm:$0xff]  ;;  %v679_v25 = vld [vmem:[%s5079_s5 + $0x60] sm:$0xff]  ;;  %s3912_s21 = scalar_lea.vmem %s5112_s19, %s5098_s27  ;;  %s5113_s0 = sshll.u32 %s3809_s20, 4 }
  0x28   : > { %782 = vmatpush.msra.mxu3 %v3112_v7  ;;  %v3106_v22 = vld [vmem:[%s5077_s3 + $0xb0] sm:$0xff]  ;;  %v3105_v24 = vld [vmem:[%s5077_s3 + $0xa8] sm:$0xff]  ;;  %v617_v26 = vld [vmem:[%s5077_s3 + $0x20] sm:$0xff]  ;;  %s4238_s16 = scalar_lea.vmem %s5076_s2, %s5113_s0  ;;  %s610_s27 = sld [smem:[#allocation5]] }
  0x29   : > { %637 = vmatpush.msra.mxu0 %v624_v8  ;;  %v3104_v27 = vld [vmem:[%s5077_s3 + $0xa0] sm:$0xff]  ;;  %689 = vmatpush.msra.mxu1 %v680_v20  ;;  %v678_v28 = vld [vmem:[%s5079_s5 + $0x58] sm:$0xff]  ;;  %v677_v29 = vld [vmem:[%s5079_s5 + $0x50] sm:$0xff]  ;;  %s3098_s19 = sld [smem:[#allocation5 + $0x1]]  ;;  %s3578_s0 = smov 32  }
  0x2a   : > { %783 = vmatpush.msra.mxu3 %v3111_v9  ;;  %v616_v30 = vld [vmem:[%s5077_s3 + $0x18] sm:$0xff]  ;;  %v676_v32 = vld [vmem:[%s5079_s5 + $0x48] sm:$0xff]  ;;  %v615_v33 = vld [vmem:[%s5077_s3 + $0x10] sm:$0xff] }
  0x2b   : > { %638 = vmatpush.msra.mxu0 %v623_v10  ;;  %v3103_v31 = vld [vmem:[%s5077_s3 + $0x98] sm:$0xff]  ;;  %690 = vmatpush.msra.mxu1 %v679_v25  ;;  %v3102_v34 = vld [vmem:[%s5077_s3 + $0x90] sm:$0xff]  ;;  %v675_v35 = vld [vmem:[%s5079_s5 + $0x40] sm:$0xff] }
  0x2c   : > { %784 = vmatpush.msra.mxu3 %v3110_v11  ;;  %v614_v36 = vld [vmem:[%s5077_s3 + $0x8] sm:$0xff]  ;;  %v674_v38 = vld [vmem:[%s5079_s5 + $0x38] sm:$0xff]  ;;  %v613_v39 = vld [vmem:[%s5077_s3] sm:$0xff] }
  0x2d   : > { %639 = vmatpush.msra.mxu0 %v622_v12  ;;  %691 = vmatpush.msra.mxu1 %v678_v28  ;;  %v3101_v37 = vld [vmem:[%s5077_s3 + $0x88] sm:$0xff]  ;;  %v3100_v40 = vld [vmem:[%s5077_s3 + $0x80] sm:$0xff]  ;;  %v3132_v42 = vld [vmem:[%s5079_s5 + $0xf8] sm:$0xff] }
  0x2e   : > { %785 = vmatpush.msra.mxu3 %v3109_v13  ;;  %v3857_v41 = vld [vmem:[%s3845_s29] sm:$0xff]  ;;  %v673_v43 = vld [vmem:[%s5079_s5 + $0x30] sm:$0xff]  ;;  %v672_v45 = vld [vmem:[%s5079_s5 + $0x28] sm:$0xff] }
  0x2f   : > { %640 = vmatpush.msra.mxu0 %v621_v14  ;;  %692 = vmatpush.msra.mxu1 %v677_v29  ;;  %v3131_v44 = vld [vmem:[%s5079_s5 + $0xf0] sm:$0xff]  ;;  %v727_v46 = vld [vmem:[%s5081_s7 + $0x78] sm:$0xff]  ;;  %v3130_v48 = vld [vmem:[%s5079_s5 + $0xe8] sm:$0xff] }
  0x30   : > { %786 = vmatpush.msra.mxu3 %v3108_v15  ;;  %v726_v47 = vld [vmem:[%s5081_s7 + $0x70] sm:$0xff]  ;;  %v671_v49 = vld [vmem:[%s5079_s5 + $0x20] sm:$0xff]  ;;  %732 = vmatpush.msra.mxu2 %v727_v46  ;;  %v725_v50 = vld [vmem:[%s5081_s7 + $0x68] sm:$0xff] }
  0x31   : > { %641 = vmatpush.msra.mxu0 %v620_v17  ;;  %693 = vmatpush.msra.mxu1 %v676_v32  ;;  %v3129_v51 = vld [vmem:[%s5079_s5 + $0xe0] sm:$0xff]  ;;  %v670_v52 = vld [vmem:[%s5079_s5 + $0x18] sm:$0xff]  ;;  %v3896_v53 = vld [vmem:[%s3845_s29 + $0x8] sm:$0xff] }
  0x32   : > { %787 = vmatpush.msra.mxu3 %v3107_v18  ;;  %733 = vmatpush.msra.mxu2 %v726_v47  ;;  %v3128_v54 = vld [vmem:[%s5079_s5 + $0xd8] sm:$0xff]  ;;  %v669_v55 = vld [vmem:[%s5079_s5 + $0x10] sm:$0xff]  ;;  %v724_v56 = vld [vmem:[%s5081_s7 + $0x60] sm:$0xff] }
  0x33   : > { %642 = vmatpush.msra.mxu0 %v619_v21  ;;  %694 = vmatpush.msra.mxu1 %v675_v35  ;;  %v3127_v57 = vld [vmem:[%s5079_s5 + $0xd0] sm:$0xff]  ;;  %v668_v58 = vld [vmem:[%s5079_s5 + $0x8] sm:$0xff]  ;;  %v723_v59 = vld [vmem:[%s5081_s7 + $0x58] sm:$0xff] }
  0x34   : > { %788 = vmatpush.msra.mxu3 %v3106_v22  ;;  %734 = vmatpush.msra.mxu2 %v725_v50  ;;  %v3126_v60 = vld [vmem:[%s5079_s5 + $0xc8] sm:$0xff]  ;;  %v667_v61 = vld [vmem:[%s5079_s5] sm:$0xff]  ;;  %v3183_v62 = vld [vmem:[%s5079_s5 + $0x178] sm:$0xff] }
  0x35   : > { %643 = vmatpush.msra.mxu0 %v618_v23  ;;  %695 = vmatpush.msra.mxu1 %v674_v38  ;;  %v3935_v63 = vld [vmem:[%s3912_s21] sm:$0xff]  ;;  %v722_v0 = vld [vmem:[%s5081_s7 + $0x50] sm:$0xff]  ;;  %v3124_v4 = vld [vmem:[%s5079_s5 + $0xb8] sm:$0xff] }
  0x36   : > { %789 = vmatpush.msra.mxu3 %v3105_v24  ;;  %735 = vmatpush.msra.mxu2 %v724_v56  ;;  %v3125_v1 = vld [vmem:[%s5079_s5 + $0xc0] sm:$0xff]  ;;  %v3182_v2 = vld [vmem:[%s5079_s5 + $0x170] sm:$0xff]  ;;  %v721_v5 = vld [vmem:[%s5081_s7 + $0x48] sm:$0xff] }
  0x37   : > { %644 = vmatpush.msra.mxu0 %v617_v26  ;;  %696 = vmatpush.msra.mxu1 %v673_v43  ;;  %v3947_v3 = vld [vmem:[%s3845_s29 + $0x10] sm:$0xff]  ;;  %v3181_v6 = vld [vmem:[%s5079_s5 + $0x168] sm:$0xff]  ;;  %v720_v8 = vld [vmem:[%s5081_s7 + $0x40] sm:$0xff] }
  0x38   : > { %790 = vmatpush.msra.mxu3 %v3104_v27  ;;  %736 = vmatpush.msra.mxu2 %v723_v59  ;;  %v3123_v7 = vld [vmem:[%s5079_s5 + $0xb0] sm:$0xff]  ;;  %v3180_v9 = vld [vmem:[%s5079_s5 + $0x160] sm:$0xff]  ;;  %v3122_v10 = vld [vmem:[%s5079_s5 + $0xa8] sm:$0xff] }
  0x39   : > { %645 = vmatpush.msra.mxu0 %v616_v30  ;;  %697 = vmatpush.msra.mxu1 %v672_v45  ;;  %v719_v11 = vld [vmem:[%s5081_s7 + $0x38] sm:$0xff]  ;;  %v3121_v13 = vld [vmem:[%s5079_s5 + $0xa0] sm:$0xff]  ;;  %v718_v14 = vld [vmem:[%s5081_s7 + $0x30] sm:$0xff] }
  0x3a   : > { %791 = vmatpush.msra.mxu3 %v3103_v31  ;;  %737 = vmatpush.msra.mxu2 %v722_v0  ;;  %v3179_v12 = vld [vmem:[%s5079_s5 + $0x158] sm:$0xff]  ;;  %v3986_v15 = vld [vmem:[%s3912_s21 + $0x8] sm:$0xff]  ;;  %v3178_v19 = vld [vmem:[%s5079_s5 + $0x150] sm:$0xff]  ;;  %s583_s21 = sand.u32 1, %s3566_s25  }
  0x3b   : > { %646 = vmatpush.msra.mxu0 %v615_v33  ;;  %698 = vmatpush.msra.mxu1 %v671_v49  ;;  %v3989_v16 = vld [vmem:[%s3845_s29 + $0x18] sm:$0xff]  ;;  %v717_v18 = vld [vmem:[%s5081_s7 + $0x28] sm:$0xff]  ;;  %v3119_v20 = vld [vmem:[%s5079_s5 + $0x90] sm:$0xff]  ;;  %s4993_s20 = scalar_lea.vmem [#allocation8], %s583_s21 }
  0x3c   : > { %792 = vmatpush.msra.mxu3 %v3102_v34  ;;  %738 = vmatpush.msra.mxu2 %v721_v5  ;;  %v3120_v17 = vld [vmem:[%s5079_s5 + $0x98] sm:$0xff]  ;;  %v716_v21 = vld [vmem:[%s5081_s7 + $0x20] sm:$0xff]  ;;  %v3177_v22 = vld [vmem:[%s5079_s5 + $0x148] sm:$0xff]  ;;  %s2993_s29 = sshll.u32 %s4993_s20, 4  ;;  %s2994_s29 = int_to_ptr.vmem [resolvable:$true] %s2993_s29 }
  0x3d   : > { %647 = vmatpush.msra.mxu0 %v614_v36  ;;  %699 = vmatpush.msra.mxu1 %v670_v52  ;;  %v3118_v23 = vld [vmem:[%s5079_s5 + $0x88] sm:$0xff]  ;;  %v715_v24 = vld [vmem:[%s5081_s7 + $0x18] sm:$0xff]  ;;  %v3176_v25 = vld [vmem:[%s5079_s5 + $0x140] sm:$0xff] }
  0x3e   : > { %793 = vmatpush.msra.mxu3 %v3101_v37  ;;  %739 = vmatpush.msra.mxu2 %v720_v8  ;;  %v3117_v26 = vld [vmem:[%s5079_s5 + $0x80] sm:$0xff]  ;;  %v714_v27 = vld [vmem:[%s5081_s7 + $0x10] sm:$0xff]  ;;  %v3175_v28 = vld [vmem:[%s5079_s5 + $0x138] sm:$0xff] }
  0x3f   : > { %648 = vmatpush.msra.mxu0 %v613_v39  ;;  %700 = vmatpush.msra.mxu1 %v669_v55  ;;  %v713_v29 = vld [vmem:[%s5081_s7 + $0x8] sm:$0xff]  ;;  %v3174_v30 = vld [vmem:[%s5079_s5 + $0x130] sm:$0xff]  ;;  %v712_v31 = vld [vmem:[%s5081_s7] sm:$0xff] }
  0x40   : > { %794 = vmatpush.msra.mxu3 %v3100_v40  ;;  %649 = vmatmul.f32.vlgmr.msra.gmra.mxu0 %v3857_v41  ;;  %v3166_v32 = vld [vmem:[%s5077_s3 + $0x178] sm:$0xff]  ;;  %v3173_v33 = vld [vmem:[%s5079_s5 + $0x128] sm:$0xff]  ;;  %v3165_v34 = vld [vmem:[%s5077_s3 + $0x170] sm:$0xff] }
  0x41   : > { %795 = vmatmul.f32.vlgmr.msra.gmra.mxu3 %v3857_v41  ;;  %835 = vmatpush.msrb.mxu0 %v3132_v42  ;;  %v3164_v35 = vld [vmem:[%s5077_s3 + $0x168] sm:$0xff]  ;;  %v3163_v36 = vld [vmem:[%s5077_s3 + $0x160] sm:$0xff]  ;;  %v3162_v37 = vld [vmem:[%s5077_s3 + $0x158] sm:$0xff] }
  0x42   : > { %701 = vmatpush.msra.mxu1 %v668_v58  ;;  %987 = vmatpush.msrb.mxu3 %v3183_v62  ;;  %v3161_v38 = vld [vmem:[%s5077_s3 + $0x150] sm:$0xff]  ;;  %v3160_v39 = vld [vmem:[%s5077_s3 + $0x148] sm:$0xff]  ;;  %v3159_v40 = vld [vmem:[%s5077_s3 + $0x140] sm:$0xff] }
  0x43   : > { %836 = vmatpush.msrb.mxu0 %v3131_v44  ;;  %740 = vmatpush.msra.mxu2 %v719_v11  ;;  %v3158_v42 = vld [vmem:[%s5077_s3 + $0x138] sm:$0xff]  ;;  %v3157_v43 = vld [vmem:[%s5077_s3 + $0x130] sm:$0xff]  ;;  %v3156_v44 = vld [vmem:[%s5077_s3 + $0x128] sm:$0xff] }
  0x44   : > { %702 = vmatpush.msra.mxu1 %v667_v61  ;;  %988 = vmatpush.msrb.mxu3 %v3182_v2  ;;  %v3155_v45 = vld [vmem:[%s5077_s3 + $0x120] sm:$0xff]  ;;  %v3154_v46 = vld [vmem:[%s5077_s3 + $0x118] sm:$0xff]  ;;  %v3153_v47 = vld [vmem:[%s5077_s3 + $0x110] sm:$0xff] }
  0x45   : > { %837 = vmatpush.msrb.mxu0 %v3130_v48  ;;  %703 = vmatmul.f32.vlgmr.msra.gmra.mxu1 %v3935_v63  ;;  %v3152_v48 = vld [vmem:[%s5077_s3 + $0x108] sm:$0xff]  ;;  %v3172_v49 = vld [vmem:[%s5079_s5 + $0x120] sm:$0xff]  ;;  %v3234_v52 = vld [vmem:[%s5079_s5 + $0x1f8] sm:$0xff] }
  0x46   : > { %989 = vmatpush.msrb.mxu3 %v3181_v6  ;;  %741 = vmatpush.msra.mxu2 %v718_v14  ;;  %v3151_v50 = vld [vmem:[%s5077_s3 + $0x100] sm:$0xff]  ;;  %v3233_v55 = vld [vmem:[%s5079_s5 + $0x1f0] sm:$0xff]  ;;  %v3169_v56 = vld [vmem:[%s5079_s5 + $0x108] sm:$0xff] }
  0x47   : > { %838 = vmatpush.msrb.mxu0 %v3129_v51  ;;  %v3171_v51 = vld [vmem:[%s5079_s5 + $0x118] sm:$0xff]  ;;  %v3168_v58 = vld [vmem:[%s5079_s5 + $0x100] sm:$0xff]  ;;  %v3250_v62 = vld [vmem:[%s5081_s7 + $0x1f0] sm:$0xff] }
  0x48   : > { %652 = vmatmul.f32.gmra.mxu0 %v3896_v53  ;;  %990 = vmatpush.msrb.mxu3 %v3180_v9  ;;  %v3231_v59 = vld [vmem:[%s5079_s5 + $0x1e0] sm:$0xff]  ;;  %v3230_v61 = vld [vmem:[%s5079_s5 + $0x1d8] sm:$0xff]  ;;  %v3229_v0 = vld [vmem:[%s5079_s5 + $0x1d0] sm:$0xff] }
  0x49   : > { %798 = vmatmul.f32.gmra.mxu3 %v3896_v53  ;;  %839 = vmatpush.msrb.mxu0 %v3128_v54  ;;  %v3170_v54 = vld [vmem:[%s5079_s5 + $0x110] sm:$0xff]  ;;  %v3228_v2 = vld [vmem:[%s5079_s5 + $0x1c8] sm:$0xff]  ;;  %v3227_v5 = vld [vmem:[%s5079_s5 + $0x1c0] sm:$0xff] }
  0x4a   : > { %991 = vmatpush.msrb.mxu3 %v3179_v12  ;;  %742 = vmatpush.msra.mxu2 %v717_v18  ;;  %v3247_v6 = vld [vmem:[%s5081_s7 + $0x1d8] sm:$0xff]  ;;  %v3246_v8 = vld [vmem:[%s5081_s7 + $0x1d0] sm:$0xff]  ;;  %v3224_v11 = vld [vmem:[%s5079_s5 + $0x1a8] sm:$0xff] }
  0x4b   : > { %840 = vmatpush.msrb.mxu0 %v3127_v57  ;;  %v3232_v57 = vld [vmem:[%s5079_s5 + $0x1e8] sm:$0xff]  ;;  %v3225_v9 = vld [vmem:[%s5079_s5 + $0x1b0] sm:$0xff]  ;;  %v3244_v12 = vld [vmem:[%s5081_s7 + $0x1c0] sm:$0xff] }
  0x4c   : > { %992 = vmatpush.msrb.mxu3 %v3178_v19  ;;  %743 = vmatpush.msra.mxu2 %v716_v21  ;;  %v3243_v14 = vld [vmem:[%s5081_s7 + $0x1b8] sm:$0xff]  ;;  %v3242_v18 = vld [vmem:[%s5081_s7 + $0x1b0] sm:$0xff]  ;;  %v3441_v21 = vld [vmem:[%s5078_s4] ss:$0 sm:$0xff] }
  0x4d   : > { %841 = vmatpush.msrb.mxu0 %v3126_v60  ;;  %706 = vmatmul.f32.gmra.mxu1 %v3986_v15  ;;  %v3251_v60 = vld [vmem:[%s5081_s7 + $0x1f8] sm:$0xff]  ;;  %v3221_v19 = vld [vmem:[%s5079_s5 + $0x190] sm:$0xff] }
  0x4e   : > { %993 = vmatpush.msrb.mxu3 %v3177_v22  ;;  %744 = vmatpush.msra.mxu2 %v715_v24  ;;  %v3220_v22 = vld [vmem:[%s5079_s5 + $0x188] sm:$0xff] }
  0x4f   : > { %842 = vmatpush.msrb.mxu0 %v3125_v1  ;;  %v3249_v1 = vld [vmem:[%s5081_s7 + $0x1e8] sm:$0xff] }
  0x50   : > { %655 = vmatmul.f32.gmra.mxu0 %v3947_v3  ;;  %994 = vmatpush.msrb.mxu3 %v3176_v25  ;;  %v3219_v25 = vld [vmem:[%s5079_s5 + $0x180] sm:$0xff] }
  0x51   : > { %801 = vmatmul.f32.gmra.mxu3 %v3947_v3  ;;  %843 = vmatpush.msrb.mxu0 %v3124_v4  ;;  %v3248_v4 = vld [vmem:[%s5081_s7 + $0x1e0] sm:$0xff] }
  0x52   : > { %745 = vmatpush.msra.mxu2 %v714_v27  ;;  %995 = vmatpush.msrb.mxu3 %v3175_v28  ;;  %v3238_v28 = vld [vmem:[%s5081_s7 + $0x190] sm:$0xff] }
  0x53   : > { %844 = vmatpush.msrb.mxu0 %v3123_v7  ;;  %v3226_v7 = vld [vmem:[%s5079_s5 + $0x1b8] sm:$0xff] }
  0x54   : > { %746 = vmatpush.msra.mxu2 %v713_v29  ;;  %996 = vmatpush.msrb.mxu3 %v3174_v30  ;;  %v3442_v29 = vld [vmem:[%s5078_s4 + $0x1] ss:$0 sm:$0xff]  ;;  %v3237_v30 = vld [vmem:[%s5081_s7 + $0x188] sm:$0xff] }
  0x55   : > { %845 = vmatpush.msrb.mxu0 %v3122_v10  ;;  %v3245_v10 = vld [vmem:[%s5081_s7 + $0x1c8] sm:$0xff] }
  0x56   : > { %747 = vmatpush.msra.mxu2 %v712_v31  ;;  %997 = vmatpush.msrb.mxu3 %v3173_v33  ;;  %v3236_v31 = vld [vmem:[%s5081_s7 + $0x180] sm:$0xff] }
  0x57   : > { %846 = vmatpush.msrb.mxu0 %v3121_v13  ;;  %748 = vmatmul.f32.vlgmr.msra.gmra.mxu2 %v3935_v63  ;;  %v3223_v13 = vld [vmem:[%s5079_s5 + $0x1a0] sm:$0xff] }
  0x58   : > { %658 = vmatmul.f32.gmra.mxu0 %v3989_v16  ;;  %931 = vmatpush.msrb.mxu2 %v3166_v32 }
  0x59   : > { %804 = vmatmul.f32.gmra.mxu3 %v3989_v16  ;;  %847 = vmatpush.msrb.mxu0 %v3120_v17  ;;  %v3222_v17 = vld [vmem:[%s5079_s5 + $0x198] sm:$0xff] }
  0x5a   : > { %932 = vmatpush.msrb.mxu2 %v3165_v34  ;;  %998 = vmatpush.msrb.mxu3 %v3172_v49  ;;  %v3577_v49 = vmov 0  }
  0x5b   : > { %848 = vmatpush.msrb.mxu0 %v3119_v20  ;;  %v3241_v20 = vld [vmem:[%s5081_s7 + $0x1a8] sm:$0xff]  ;;  %3439 = vset.pattern.permute.xlu0 %v3577_v49 }
  0x5c   : > { %933 = vmatpush.msrb.mxu2 %v3164_v35  ;;  %999 = vmatpush.msrb.mxu3 %v3171_v51  ;;  %v3149_v51 = vld [vmem:[%s5081_s7 + $0xf8] sm:$0xff] }
  0x5d   : > { %849 = vmatpush.msrb.mxu0 %v3118_v23  ;;  %v3240_v23 = vld [vmem:[%s5081_s7 + $0x1a0] sm:$0xff]  ;;  %883 = vmatpush.msrb.mxu1 %v3149_v51 }
  0x5e   : > { %934 = vmatpush.msrb.mxu2 %v3163_v36  ;;  %1000 = vmatpush.msrb.mxu3 %v3170_v54  ;;  %v4226_v36 = vld [vmem:[%s5080_s6] ss:$0 sm:$0xff]  ;;  %v3147_v54 = vld [vmem:[%s5081_s7 + $0xe8] sm:$0xff] }
  0x5f   : > { %850 = vmatpush.msrb.mxu0 %v3117_v26  ;;  %751 = vmatmul.f32.gmra.mxu2 %v3986_v15  ;;  %v3239_v26 = vld [vmem:[%s5081_s7 + $0x198] sm:$0xff] }
  0x60   : > { %851 = vmatmul.f32.vlgmr.msrb.gmra.mxu0 %v3935_v63  ;;  %935 = vmatpush.msrb.mxu2 %v3162_v37 }
  0x61   : > { %1001 = vmatpush.msrb.mxu3 %v3169_v56  ;;  %v3146_v56 = vld [vmem:[%s5081_s7 + $0xe0] sm:$0xff] }
  0x62   : > { %936 = vmatpush.msrb.mxu2 %v3161_v38 }
  0x63   : > { %1002 = vmatpush.msrb.mxu3 %v3168_v58 }
  0x64   : > { %937 = vmatpush.msrb.mxu2 %v3160_v39  ;;  %1003 = vmatmul.f32.vlgmr.msrb.gmra.mxu3 %v3935_v63 }
  0x65   : > { %1187 = vmatpush.msra.mxu3 %v3251_v60 }
  0x66   : > { %938 = vmatpush.msrb.mxu2 %v3159_v40 }
  0x67   : > { %1188 = vmatpush.msra.mxu3 %v3250_v62  ;;  %v3144_v62 = vld [vmem:[%s5081_s7 + $0xd0] sm:$0xff] }
  0x68   : > { %854 = vmatmul.f32.gmra.mxu0 %v3986_v15  ;;  %939 = vmatpush.msrb.mxu2 %v3158_v42 }
  0x69   : > { %1189 = vmatpush.msra.mxu3 %v3249_v1  ;;  %v3143_v1 = vld [vmem:[%s5081_s7 + $0xc8] sm:$0xff] }
  0x6a   : > { %940 = vmatpush.msrb.mxu2 %v3157_v43 }
  0x6b   : > { %1190 = vmatpush.msra.mxu3 %v3248_v4  ;;  %v3142_v4 = vld [vmem:[%s5081_s7 + $0xc0] sm:$0xff] }
  0x6c   : > { %941 = vmatpush.msrb.mxu2 %v3156_v44  ;;  %1006 = vmatmul.f32.gmra.mxu3 %v3986_v15 }
  0x6d   : > { %1191 = vmatpush.msra.mxu3 %v3247_v6 }
  0x6e   : > { %942 = vmatpush.msrb.mxu2 %v3155_v45 }
  0x6f   : > { %1192 = vmatpush.msra.mxu3 %v3246_v8  ;;  %v3140_v8 = vld [vmem:[%s5081_s7 + $0xb0] sm:$0xff] }
  0x70   : > { %943 = vmatpush.msrb.mxu2 %v3154_v46 }
  0x71   : > { %1193 = vmatpush.msra.mxu3 %v3245_v10 }
  0x72   : > { %944 = vmatpush.msrb.mxu2 %v3153_v47  ;;  %v606_v47 = vld [vmem:[%s4238_s16] sm:$0xff] }
  0x73   : > { %1194 = vmatpush.msra.mxu3 %v3244_v12 }
  0x74   : > { %945 = vmatpush.msrb.mxu2 %v3152_v48 }
  0x75   : > { %1195 = vmatpush.msra.mxu3 %v3243_v14 }
  0x76   : > { %946 = vmatpush.msrb.mxu2 %v3151_v50  ;;  %v608_v50 = vmul.f32 -1e+09, %v606_v47  ;;  %v3204_v47 = vld [vmem:[%s5077_s3 + $0x190] sm:$0xff] }
  0x77   : > { %947 = vmatmul.f32.vlgmr.msrb.gmra.mxu2 %v3857_v41  ;;  %1196 = vmatpush.msra.mxu3 %v3242_v18 }
  0x78   : > { %1139 = vmatpush.msra.mxu2 %v3234_v52  ;;  %v3148_v52 = vld [vmem:[%s5081_s7 + $0xf0] sm:$0xff]  ;;  %1221 = vperm.xlu0 %3439, %v608_v50  }
  0x79   : > { %1197 = vmatpush.msra.mxu3 %v3241_v20  ;;  %884 = vmatpush.msrb.mxu1 %v3148_v52 }
  0x7a   : > { %1140 = vmatpush.msra.mxu2 %v3233_v55  ;;  %v4256_v55 = vld [vmem:[%s5080_s6 + $0x1] ss:$0 sm:$0xff] }
  0x7b   : > { %1198 = vmatpush.msra.mxu3 %v3240_v23  ;;  %885 = vmatpush.msrb.mxu1 %v3147_v54  ;;  %v3138_v23 = vld [vmem:[%s5081_s7 + $0xa0] sm:$0xff]  ;;  %v3203_v54 = vld [vmem:[%s5077_s3 + $0x188] sm:$0xff] }
  0x7c   : > { %1141 = vmatpush.msra.mxu2 %v3232_v57 }
  0x7d   : > { %1199 = vmatpush.msra.mxu3 %v3239_v26  ;;  %886 = vmatpush.msrb.mxu1 %v3146_v56  ;;  %v3135_v26 = vld [vmem:[%s5081_s7 + $0x88] sm:$0xff]  ;;  %v3202_v56 = vld [vmem:[%s5077_s3 + $0x180] sm:$0xff] }
  0x7e   : > { %1142 = vmatpush.msra.mxu2 %v3231_v59  ;;  %v3145_v59 = vld [vmem:[%s5081_s7 + $0xd8] sm:$0xff] }
  0x7f   : > { %950 = vmatmul.f32.gmra.mxu2 %v3896_v53  ;;  %1200 = vmatpush.msra.mxu3 %v3238_v28  ;;  %v3217_v28 = vld [vmem:[%s5077_s3 + $0x1f8] sm:$0xff] }
  0x80   : > { %1143 = vmatpush.msra.mxu2 %v3230_v61  ;;  %887 = vmatpush.msrb.mxu1 %v3145_v59 }
  0x81   : > { %1201 = vmatpush.msra.mxu3 %v3237_v30  ;;  %v3215_v30 = vld [vmem:[%s5077_s3 + $0x1e8] sm:$0xff] }
  0x82   : > { %1144 = vmatpush.msra.mxu2 %v3229_v0  ;;  %888 = vmatpush.msrb.mxu1 %v3144_v62 }
  0x83   : > { %1202 = vmatpush.msra.mxu3 %v3236_v31  ;;  %v3214_v31 = vld [vmem:[%s5077_s3 + $0x1e0] sm:$0xff] }
  0x84   : > { %1145 = vmatpush.msra.mxu2 %v3228_v2  ;;  %1203 = vmatmul.f32.vlgmr.msra.gmra.mxu3 %v3935_v63 }
  0x85   : > { %889 = vmatpush.msrb.mxu1 %v3143_v1  ;;  %v4414_v1 = vld [vmem:[%s5083_s9 + $0x8] sm:$0xff] }
  0x86   : > { %1146 = vmatpush.msra.mxu2 %v3227_v5  ;;  %v3141_v5 = vld [vmem:[%s5081_s7 + $0xb8] sm:$0xff] }
  0x87   : > { %953 = vmatmul.f32.gmra.mxu2 %v3947_v3  ;;  %890 = vmatpush.msrb.mxu1 %v3142_v4 }
  0x88   : > { %1147 = vmatpush.msra.mxu2 %v3226_v7  ;;  %v3445_v7 = vld [vmem:[%s5082_s8] ss:$0 sm:$0xff] }
  0x89   : > { %891 = vmatpush.msrb.mxu1 %v3141_v5  ;;  %v3448_v5 = vld [vmem:[%s5080_s6 + $0x3] ss:$0 sm:$0xff] }
  0x8a   : > { %1148 = vmatpush.msra.mxu2 %v3225_v9 }
  0x8b   : > { %892 = vmatpush.msrb.mxu1 %v3140_v8 }
  0x8c   : > { %1149 = vmatpush.msra.mxu2 %v3224_v11  ;;  %1206 = vmatmul.f32.gmra.mxu3 %v3986_v15  ;;  %v3139_v11 = vld [vmem:[%s5081_s7 + $0xa8] sm:$0xff] }
  0x8d   : > { %893 = vmatpush.msrb.mxu1 %v3139_v11 }
  0x8e   : > { %1150 = vmatpush.msra.mxu2 %v3223_v13 }
  0x8f   : > { %956 = vmatmul.f32.gmra.mxu2 %v3989_v16  ;;  %894 = vmatpush.msrb.mxu1 %v3138_v23 }
  0x90   : > { %1151 = vmatpush.msra.mxu2 %v3222_v17 }
  0x92   : > { %1152 = vmatpush.msra.mxu2 %v3221_v19 }
  0x94   : > { %1153 = vmatpush.msra.mxu2 %v3220_v22 }
  0x96   : > { %1154 = vmatpush.msra.mxu2 %v3219_v25  ;;  %v3136_v25 = vld [vmem:[%s5081_s7 + $0x90] sm:$0xff] }
  0x97   : > { %1155 = vmatmul.f32.vlgmr.msra.gmra.mxu2 %v3935_v63 }
  0x9f   : > { %1158 = vmatmul.f32.gmra.mxu2 %v3986_v15 }
  0xbd   : > { %v650_v24 = vpop.f32.mrf.mxu0 }
  0xbe   : > { %v651_v27 = vadd.f32 %v3441_v21, %v650_v24  ;;  %v3137_v24 = vld [vmem:[%s5081_s7 + $0x98] sm:$0xff] }
  0xbf   : > { %895 = vmatpush.msrb.mxu1 %v3137_v24 }
  0xc0   : > { %663 = vst.msk [vmem:[#allocation2] sm:$0xff] %vm662_vm0, %v651_v27  ;;  %v3134_v27 = vld [vmem:[%s5081_s7 + $0x80] sm:$0xff] }
  0xc1   : > { %896 = vmatpush.msrb.mxu1 %v3136_v25 }
  0xc2   : > { %v704_v38 = vpop.f32.mrf.mxu1 }
  0xc3   : > { %v705_v40 = vadd.f32 %v4226_v36, %v704_v38  ;;  %897 = vmatpush.msrb.mxu1 %v3135_v26  ;;  %v3208_v38 = vld [vmem:[%s5077_s3 + $0x1b0] sm:$0xff] }
  0xc4   : > { %v796_v32 = vpop.f32.mrf.mxu3 }
  0xc5   : > { %v797_v33 = vadd.f32 %v3442_v29, %v796_v32  ;;  %v653_v34 = vpop.f32.mrf.mxu0  ;;  %710 = vst.msk [vmem:[#allocation3] sm:$0xff] %vm662_vm0, %v705_v40  ;;  %898 = vmatpush.msrb.mxu1 %v3134_v27  ;;  %v3213_v32 = vld [vmem:[%s5077_s3 + $0x1d8] sm:$0xff]  ;;  %v3207_v40 = vld [vmem:[%s5077_s3 + $0x1a8] sm:$0xff] }
  0xc6   : > { %v654_v35 = vadd.f32 %v3441_v21, %v653_v34  ;;  %899 = vmatmul.f32.vlgmr.msrb.gmra.mxu1 %v3935_v63  ;;  %v3211_v34 = vld [vmem:[%s5077_s3 + $0x1c8] sm:$0xff] }
  0xc7   : > { %809 = vst.msk [vmem:[#allocation2 + $0x20] sm:$0xff] %vm662_vm0, %v797_v33  ;;  %v4308_v14 = vld [vmem:[#allocation2] sm:$0xff]  ;;  %1083 = vmatpush.msra.mxu1 %v3217_v28  ;;  %v3212_v33 = vld [vmem:[%s5077_s3 + $0x1d0] sm:$0xff] }
  0xc8   : > { %664 = vst.msk [vmem:[#allocation2 + $0x8] sm:$0xff] %vm662_vm0, %v654_v35  ;;  %v3210_v35 = vld [vmem:[%s5077_s3 + $0x1c0] sm:$0xff] }
  0xcc   : > { %v799_v37 = vpop.f32.mrf.mxu3  ;;  %v1217_v17 = vld [vmem:[#allocation3] sm:$0xff] }
  0xcd   : > { %v800_v39 = vadd.f32 %v3442_v29, %v799_v37  ;;  %v656_v42 = vpop.f32.mrf.mxu0  ;;  %v3209_v37 = vld [vmem:[%s5077_s3 + $0x1b8] sm:$0xff] }
  0xce   : > { %v657_v43 = vadd.f32 %v3441_v21, %v656_v42  ;;  %v4318_v20 = vld [vmem:[#allocation2 + $0x20] sm:$0xff]  ;;  %902 = vmatmul.f32.gmra.mxu1 %v3986_v15 }
  0xcf   : > { %810 = vst.msk [vmem:[#allocation2 + $0x28] sm:$0xff] %vm662_vm0, %v800_v39  ;;  %v4297_v9 = vld [vmem:[#allocation2 + $0x8] sm:$0xff]  ;;  %v3446_v39 = vld [vmem:[%s5078_s4 + $0x2] ss:$0 sm:$0xff] }
  0xd0   : > { %665 = vst.msk [vmem:[#allocation2 + $0x10] sm:$0xff] %vm662_vm0, %v657_v43 }
  0xd4   : > { %v802_v44 = vpop.f32.mrf.mxu3 }
  0xd5   : > { %v803_v45 = vadd.f32 %v3442_v29, %v802_v44  ;;  %v659_v46 = vpop.f32.mrf.mxu0  ;;  %v3206_v44 = vld [vmem:[%s5077_s3 + $0x1a0] sm:$0xff] }
  0xd6   : > { %v660_v48 = vadd.f32 %v3441_v21, %v659_v46  ;;  %v4313_v18 = vld [vmem:[#allocation2 + $0x28] sm:$0xff]  ;;  %v3447_v46 = vld [vmem:[%s5080_s6 + $0x2] ss:$0 sm:$0xff] }
  0xd7   : > { %811 = vst.msk [vmem:[#allocation2 + $0x30] sm:$0xff] %vm662_vm0, %v803_v45  ;;  %v4277_v2 = vld [vmem:[#allocation2 + $0x10] sm:$0xff]  ;;  %v3205_v45 = vld [vmem:[%s5077_s3 + $0x198] sm:$0xff] }
  0xd8   : > { %666 = vst.msk [vmem:[#allocation2 + $0x18] sm:$0xff] %vm662_vm0, %v660_v48 }
  0xda   : > { %v749_v10 = vpop.f32.mrf.mxu2 }
  0xdb   : > { %v750_v13 = vadd.f32 %v3445_v7, %v749_v10  ;;  %v3449_v10 = vld [vmem:[%s5082_s8 + $0x3] ss:$0 sm:$0xff] }
  0xdc   : > { %v805_v57 = vpop.f32.mrf.mxu3 }
  0xdd   : > { %v806_v58 = vadd.f32 %v3442_v29, %v805_v57  ;;  %v852_v60 = vpop.f32.mrf.mxu0  ;;  %755 = vst.msk [vmem:[#allocation4] sm:$0xff] %vm662_vm0, %v750_v13  ;;  %v3216_v29 = vld [vmem:[%s5077_s3 + $0x1f0] sm:$0xff]  ;;  %v4400_v57 = vld [vmem:[%s5083_s9 + $0x18] sm:$0xff] }
  0xde   : > { %v853_v61 = vadd.f32 %v4256_v55, %v852_v60  ;;  %v4304_v12 = vld [vmem:[#allocation2 + $0x30] sm:$0xff]  ;;  %1084 = vmatpush.msra.mxu1 %v3216_v29 }
  0xdf   : > { %812 = vst.msk [vmem:[#allocation2 + $0x38] sm:$0xff] %vm662_vm0, %v806_v58  ;;  %v4269_v0 = vld [vmem:[#allocation2 + $0x18] sm:$0xff]  ;;  %v4406_v58 = vld [vmem:[%s5083_s9 + $0x10] sm:$0xff] }
  0xe0   : > { %3253 = vmatpush.xpose.msk.msrb.mxu2 %vm662_vm0, %v4269_v0  ;;  %859 = vst.msk [vmem:[#allocation3 + $0x10] sm:$0xff] %vm662_vm0, %v853_v61  ;;  %1085 = vmatpush.msra.mxu1 %v3215_v30 }
  0xe2   : > { %v752_v19 = vpop.f32.mrf.mxu2  ;;  %1086 = vmatpush.msra.mxu1 %v3214_v31 }
  0xe3   : > { %v753_v21 = vadd.f32 %v3445_v7, %v752_v19 }
  0xe4   : > { %3254 = vmatpush.xpose.msk.msrb.mxu2 %vm662_vm0, %v4277_v2  ;;  %1087 = vmatpush.msra.mxu1 %v3213_v32 }
  0xe5   : > { %756 = vst.msk [vmem:[#allocation4 + $0x8] sm:$0xff] %vm662_vm0, %v753_v21  ;;  %v4435_v21 = vld [vmem:[%s5083_s9] sm:$0xff] }
  0xe6   : > { %v4287_v6 = vld [vmem:[#allocation2 + $0x38] sm:$0xff]  ;;  %1088 = vmatpush.msra.mxu1 %v3212_v33 }
  0xe7   : > { %3262 = vmatpush.xpose.msk.msrb.mxu3 %vm662_vm0, %v4287_v6  ;;  %v1360_v22 = vld [vmem:[#allocation3 + $0x10] sm:$0xff]  ;;  %v1004_v50 = vpop.f32.mrf.mxu3 }
  0xe8   : > { %3255 = vmatpush.xpose.msk.msrb.mxu2 %vm662_vm0, %v4297_v9  ;;  %1089 = vmatpush.msra.mxu1 %v3211_v34  ;;  %v1005_v52 = vadd.f32 %v3447_v46, %v1004_v50 }
  0xea   : > { %1090 = vmatpush.msra.mxu1 %v3210_v35  ;;  %1011 = vst.msk [vmem:[#allocation3 + $0x20] sm:$0xff] %vm662_vm0, %v1005_v52 }
  0xeb   : > { %3263 = vmatpush.xpose.msk.msrb.mxu3 %vm662_vm0, %v4304_v12 }
  0xec   : > { %3256 = vmatpush.xpose.msk.msrb.mxu2 %vm662_vm0, %v4308_v14  ;;  %1091 = vmatpush.msra.mxu1 %v3209_v37 }
  0xee   : > { %1092 = vmatpush.msra.mxu1 %v3208_v38 }
  0xef   : > { %3264 = vmatpush.xpose.msk.msrb.mxu3 %vm662_vm0, %v4313_v18  ;;  %3257 = vmatmul.msk.f32.vlgmr.msrb.gmra.mxu2 %vm662_vm0, %v1217_v17  ;;  %v1007_v60 = vpop.f32.mrf.mxu3 }
  0xf0   : > { %1093 = vmatpush.msra.mxu1 %v3207_v40  ;;  %v1008_v62 = vadd.f32 %v3447_v46, %v1007_v60  ;;  %v1218_v46 = vld [vmem:[#allocation4] sm:$0xff]  ;;  %v3198_v60 = vld [vmem:[%s5081_s7 + $0x168] sm:$0xff] }
  0xf1   : > { %1338 = vmatpush.msra.mxu2 %v1218_v46 }
  0xf2   : > { %1094 = vmatpush.msra.mxu1 %v3206_v44  ;;  %1012 = vst.msk [vmem:[#allocation3 + $0x28] sm:$0xff] %vm662_vm0, %v1008_v62  ;;  %v3197_v62 = vld [vmem:[%s5081_s7 + $0x160] sm:$0xff] }
  0xf3   : > { %3265 = vmatpush.xpose.msk.msrb.mxu3 %vm662_vm0, %v4318_v20 }
  0xf4   : > { %1095 = vmatpush.msra.mxu1 %v3205_v45 }
  0xf6   : > { %3266 = vmatmul.msk.f32.vlgmr.msrb.gmra.mxu3 %vm662_vm0, %v1360_v22  ;;  %1096 = vmatpush.msra.mxu1 %v3204_v47 }
  0xf8   : > { %1097 = vmatpush.msra.mxu1 %v3203_v54  ;;  %v3199_v54 = vld [vmem:[%s5081_s7 + $0x170] sm:$0xff] }
  0xfa   : > { %v948_v42 = vpop.f32.mrf.mxu2  ;;  %1098 = vmatpush.msra.mxu1 %v3202_v56 }
  0xfb   : > { %v949_v43 = vadd.f32 %v3446_v39, %v948_v42  ;;  %1099 = vmatmul.f32.vlgmr.msra.gmra.mxu1 %v3857_v41 }
  0xfc   : > { %1559 = vmatpush.msrb.mxu1 %v4400_v57 }
  0xfd   : > { %961 = vst.msk [vmem:[#allocation2 + $0x40] sm:$0xff] %vm662_vm0, %v949_v43 }
  0xfe   : > { %1560 = vmatpush.msrb.mxu1 %v4406_v58 }
 0x100   : > { %1561 = vmatpush.msrb.mxu1 %v4414_v1 }
 0x102   : > { %v951_v48 = vpop.f32.mrf.mxu2  ;;  %1562 = vmatpush.msrb.mxu1 %v4435_v21 }
 0x103   : > { %v952_v51 = vadd.f32 %v3446_v39, %v951_v48  ;;  %1102 = vmatmul.f32.gmra.mxu1 %v3896_v53  ;;  %v707_v48 = vpop.f32.mrf.mxu1 }
 0x104   : > { %v708_v52 = vadd.f32 %v4226_v36, %v707_v48 }
 0x105   : > { %962 = vst.msk [vmem:[#allocation2 + $0x48] sm:$0xff] %vm662_vm0, %v952_v51  ;;  %v3200_v51 = vld [vmem:[%s5081_s7 + $0x178] sm:$0xff] }
 0x106   : > { %1035 = vmatpush.msra.mxu0 %v3200_v51  ;;  %711 = vst.msk [vmem:[#allocation3 + $0x8] sm:$0xff] %vm662_vm0, %v708_v52  ;;  %v4518_v51 = vld [vmem:[%s5083_s9 + $0x38] sm:$0xff]  ;;  %v855_v52 = vpop.f32.mrf.mxu0 }
 0x107   : > { %v1204_v11 = vpop.f32.mrf.mxu3  ;;  %1518 = vmatpush.msra.mxu3 %v4518_v51 }
 0x108   : > { %v1205_v53 = vadd.f32 %v3449_v10, %v1204_v11  ;;  %1036 = vmatpush.msra.mxu0 %v3199_v54 }
 0x10a   : > { %v954_v59 = vpop.f32.mrf.mxu2  ;;  %1211 = vst.msk [vmem:[#allocation4 + $0x30] sm:$0xff] %vm662_vm0, %v1205_v53  ;;  %1037 = vmatpush.msra.mxu0 %v3198_v60  ;;  %v3195_v53 = vld [vmem:[%s5081_s7 + $0x150] sm:$0xff]  ;;  %v3451_v60 = vld [vmem:[%s5078_s4 + $0x3] ss:$0 sm:$0xff] }
 0x10b   : > { %v955_v61 = vadd.f32 %v3446_v39, %v954_v59  ;;  %1105 = vmatmul.f32.gmra.mxu1 %v3947_v3 }
 0x10c   : > { %1038 = vmatpush.msra.mxu0 %v3197_v62  ;;  %v3452_v62 = vld [vmem:[%s5082_s8 + $0x2] ss:$0 sm:$0xff] }
 0x10d   : > { %963 = vst.msk [vmem:[#allocation2 + $0x50] sm:$0xff] %vm662_vm0, %v955_v61 }
 0x10f   : > { %v1207_v19 = vpop.f32.mrf.mxu3 }
 0x110   : > { %v1208_v3 = vadd.f32 %v3449_v10, %v1207_v19 }
 0x111   : > { %v1764_v22 = vld [vmem:[#allocation4 + $0x30] sm:$0xff] }
 0x112   : > { %v957_v41 = vpop.f32.mrf.mxu2  ;;  %1212 = vst.msk [vmem:[#allocation4 + $0x38] sm:$0xff] %vm662_vm0, %v1208_v3  ;;  %1878 = vmatpush.msra.mxu1 %v1764_v22  ;;  %v4476_v22 = vld [vmem:[#allocation2 + $0x40] sm:$0xff] }
 0x113   : > { %v958_v4 = vadd.f32 %v3446_v39, %v957_v41  ;;  %1108 = vmatmul.f32.gmra.mxu1 %v3989_v16  ;;  %v4439_v16 = vpop.permute.xlu0 %1221 }
 0x114   : > { %v1578_v59 = vld [vmem:[#allocation2 + $0x50] sm:$0xff] }
 0x115   : > { %964 = vst.msk [vmem:[#allocation2 + $0x58] sm:$0xff] %vm662_vm0, %v958_v4  ;;  %v4462_v4 = vld [vmem:[#allocation2 + $0x48] sm:$0xff] }
 0x11a   : > { %v1156_v7 = vpop.f32.mrf.mxu2 }
 0x11b   : > { %v1157_v8 = vadd.f32 %v3448_v5, %v1156_v7  ;;  %v3450_v7 = vld [vmem:[%s5082_s8 + $0x1] ss:$0 sm:$0xff] }
 0x11c   : > { %v1579_v47 = vld [vmem:[#allocation2 + $0x58] sm:$0xff] }
 0x11d   : > { %1163 = vst.msk [vmem:[#allocation3 + $0x30] sm:$0xff] %vm662_vm0, %v1157_v8  ;;  %3283 = vmatpush.xpose.msk.msrb.mxu2 %vm662_vm0, %v1579_v47 }
 0x121   : > { %3284 = vmatpush.xpose.msk.msrb.mxu2 %vm662_vm0, %v1578_v59 }
 0x122   : > { %v1159_v13 = vpop.f32.mrf.mxu2 }
 0x123   : > { %v1160_v17 = vadd.f32 %v3448_v5, %v1159_v13  ;;  %v3196_v5 = vld [vmem:[%s5081_s7 + $0x158] sm:$0xff] }
 0x124   : > { %1039 = vmatpush.msra.mxu0 %v3196_v5 }
 0x125   : > { %1164 = vst.msk [vmem:[#allocation3 + $0x38] sm:$0xff] %vm662_vm0, %v1160_v17  ;;  %3285 = vmatpush.xpose.msk.msrb.mxu2 %vm662_vm0, %v4462_v4 }
 0x126   : > { %1040 = vmatpush.msra.mxu0 %v3195_v53 }
 0x129   : > { %3286 = vmatpush.xpose.msk.msrb.mxu2 %vm662_vm0, %v4476_v22 }
 0x143   : > { %v900_v8 = vpop.f32.mrf.mxu1 }
 0x144   : > { %v901_v13 = vadd.f32 %v3450_v7, %v900_v8 }
 0x146   : > { %907 = vst.msk [vmem:[#allocation4 + $0x10] sm:$0xff] %vm662_vm0, %v901_v13 }
 0x14b   : > { %v903_v48 = vpop.f32.mrf.mxu1 }
 0x14d   : > { %v1361_v46 = vld [vmem:[#allocation4 + $0x10] sm:$0xff] }
 0x172   : > { %v1256_v23 = vpop.f32.mrf.mxu2 }
 0x173   : > { %v1257_v24 = vadd.f32 %v1256_v23, %v4439_v16  ;;  %v3194_v23 = vld [vmem:[%s5081_s7 + $0x148] sm:$0xff] }
 0x174   : > { %1041 = vmatpush.msra.mxu0 %v3194_v23 }
 0x175   : > { %v1259_v25 = vsel %vm662_vm0, %v1257_v24, -inf }
 0x176   : > { %v1260_v26 = vrot.slane %v1259_v25, 4 }
 0x178   : > { %v1261_v27 = vmax.f32 %v1259_v25, %v1260_v26  ;;  %v3193_v26 = vld [vmem:[%s5081_s7 + $0x140] sm:$0xff] }
 0x179   : > { %v1394_v28 = vpop.f32.mrf.mxu3  ;;  %1042 = vmatpush.msra.mxu0 %v3193_v26  ;;  %v1580_v26 = vld [vmem:[#allocation3 + $0x20] sm:$0xff] }
 0x17a   : > { %v1395_v29 = vadd.f32 %v1394_v28, %v4439_v16  ;;  %v1262_v30 = vrot.slane %v1261_v27, 2 }
 0x17c   : > { %v1397_v31 = vsel %vm662_vm0, %v1395_v29, -inf  ;;  %v1263_v32 = vmax.f32 %v1261_v27, %v1262_v30 }
 0x17d   : > { %v1398_v33 = vrot.slane %v1397_v31, 4 }
 0x17e   : > { %v1264_v34 = vrot.slane %v1263_v32, 1 }
 0x17f   : > { %v1399_v35 = vmax.f32 %v1397_v31, %v1398_v33  ;;  %v3191_v31 = vld [vmem:[%s5081_s7 + $0x130] sm:$0xff]  ;;  %v3190_v33 = vld [vmem:[%s5081_s7 + $0x128] sm:$0xff] }
 0x180   : > { %v1265_v37 = vmax.f32 %v1263_v32, %v1264_v34 }
 0x181   : > { %v1400_v38 = vrot.slane %v1399_v35, 2 }
 0x182   : > { %v1266_v39 = vsub.f32 %v1257_v24, %v1265_v37 }
 0x183   : > { %v1401_v40 = vmax.f32 %v1399_v35, %v1400_v38  ;;  %v3189_v35 = vld [vmem:[%s5081_s7 + $0x120] sm:$0xff]  ;;  %v3188_v38 = vld [vmem:[%s5081_s7 + $0x118] sm:$0xff] }
 0x184   : > { %v1267_v42 = vmul.f32 1.442695, %v1266_v39 }
 0x185   : > { %v1402_v43 = vrot.slane %v1401_v40, 1 }
 0x186   : > { %3459 = vpow2.f32 %v1267_v42  ;;  %v3186_v42 = vld [vmem:[%s5081_s7 + $0x108] sm:$0xff] }
 0x187   : > { %v1403_v44 = vmax.f32 %v1401_v40, %v1402_v43  ;;  %v3187_v40 = vld [vmem:[%s5081_s7 + $0x110] sm:$0xff] }
 0x189   : > { %v1404_v45 = vsub.f32 %v1395_v29, %v1403_v44  ;;  %v3192_v29 = vld [vmem:[%s5081_s7 + $0x138] sm:$0xff]  ;;  %v3185_v44 = vld [vmem:[%s5081_s7 + $0x100] sm:$0xff] }
 0x18a   : > { %1043 = vmatpush.msra.mxu0 %v3192_v29 }
 0x18b   : > { %v1405_v50 = vmul.f32 1.442695, %v1404_v45 }
 0x18c   : > { %v3460_v56 = vpop.eup %3459  ;;  %1044 = vmatpush.msra.mxu0 %v3191_v31 }
 0x18d   : > { %3461 = vpow2.f32 %v1405_v50  ;;  %v1269_v61 = vsel %vm662_vm0, %v3460_v56, 0.0  ;;  %v904_v50 = vadd.f32 %v3450_v7, %v903_v48  ;;  %v1763_v48 = vld [vmem:[#allocation3 + $0x30] sm:$0xff] }
 0x18e   : > { %v1270_v36 = vrot.slane %v1269_v61, 4  ;;  %1045 = vmatpush.msra.mxu0 %v3190_v33  ;;  %v4580_v33 = vld [vmem:[%s5083_s9 + $0x78] sm:$0xff] }
 0x18f   : > { %908 = vst.msk [vmem:[#allocation4 + $0x18] sm:$0xff] %vm662_vm0, %v904_v50 }
 0x190   : > { %v1271_v41 = vadd.f32 %v1270_v36, %v1269_v61  ;;  %1046 = vmatpush.msra.mxu0 %v3189_v35  ;;  %v1100_v61 = vpop.f32.mrf.mxu1 }
 0x191   : > { %v1101_v36 = vadd.f32 %v3451_v60, %v1100_v61 }
 0x192   : > { %v1272_v11 = vrot.slane %v1271_v41, 2  ;;  %1047 = vmatpush.msra.mxu0 %v3188_v38  ;;  %v4593_v38 = vld [vmem:[%s5083_s9 + $0x68] sm:$0xff] }
 0x193   : > { %v3462_v10 = vpop.eup %3461  ;;  %1113 = vst.msk [vmem:[#allocation2 + $0x60] sm:$0xff] %vm662_vm0, %v1101_v36 }
 0x194   : > { %v1407_v17 = vsel %vm662_vm0, %v3462_v10, 0.0  ;;  %v1273_v3 = vadd.f32 %v1272_v11, %v1271_v41  ;;  %1048 = vmatpush.msra.mxu0 %v3187_v40 }
 0x195   : > { %v1408_v19 = vrot.slane %v1407_v17, 4 }
 0x196   : > { %v1274_v25 = vrot.slane %v1273_v3, 1  ;;  %1049 = vmatpush.msra.mxu0 %v3186_v42 }
 0x197   : > { %v1409_v24 = vadd.f32 %v1408_v19, %v1407_v17 }
 0x198   : > { %v1275_v28 = vadd.f32 %v1274_v25, %v1273_v3  ;;  %1050 = vmatpush.msra.mxu0 %v3185_v44 }
 0x199   : > { %v1410_v27 = vrot.slane %v1409_v24, 2  ;;  %1051 = vmatmul.f32.vlgmr.msra.gmra.mxu0 %v3935_v63  ;;  %v4523_v63 = vld [vmem:[%s5083_s9 + $0x30] sm:$0xff] }
 0x19a   : > { %3463 = vrcp.f32 %v1275_v28  ;;  %1475 = vmatpush.msrb.mxu0 %v1361_v46  ;;  %1519 = vmatpush.msra.mxu3 %v4523_v63 }
 0x19b   : > { %v1411_v30 = vadd.f32 %v1410_v27, %v1409_v24 }
 0x19d   : > { %v1412_v32 = vrot.slane %v1411_v30, 1 }
 0x19f   : > { %v1413_v34 = vadd.f32 %v1412_v32, %v1411_v30  ;;  %v4573_v32 = vld [vmem:[#allocation2 + $0x60] sm:$0xff] }
 0x1a0   : > { %v3464_v37 = vpop.eup %3463 }
 0x1a1   : > { %3465 = vrcp.f32 %v1413_v34  ;;  %v1277_v39 = vmul.f32 %v3464_v37, %v3460_v56  ;;  %1054 = vmatmul.f32.gmra.mxu0 %v3986_v15  ;;  %v856_v15 = vadd.f32 %v4256_v55, %v855_v52  ;;  %v4530_v56 = vld [vmem:[%s5083_s9 + $0x28] sm:$0xff]  ;;  %v4541_v55 = vld [vmem:[%s5083_s9 + $0x20] sm:$0xff]  ;;  %v4587_v37 = vld [vmem:[%s5083_s9 + $0x70] sm:$0xff] }
 0x1a2   : > { %1520 = vmatpush.msra.mxu3 %v4530_v56 }
 0x1a3   : > { %1278 = vxpose.xlu1.b32.start.end [1/1] (short) (narrow) %v1277_v39, 32  ;;  %860 = vst.msk [vmem:[#allocation3 + $0x18] sm:$0xff] %vm662_vm0, %v856_v15  ;;  %v4599_v39 = vld [vmem:[%s5083_s9 + $0x60] sm:$0xff] }
 0x1a4   : > { %1521 = vmatpush.msra.mxu3 %v4541_v55 }
 0x1a7   : > { %v3466_v43 = vpop.eup %3465 }
 0x1a8   : > { %v1415_v45 = vmul.f32 %v3466_v43, %v3462_v10  ;;  %v1103_v10 = vpop.f32.mrf.mxu1 }
 0x1a9   : > { %v1104_v11 = vadd.f32 %v3451_v60, %v1103_v10 }
 0x1aa   : > { %1416 = vxpose.xlu0.b32.start.end [1/1] (short) (narrow) %v1415_v45, 32 }
 0x1ab   : > { %1114 = vst.msk [vmem:[#allocation2 + $0x68] sm:$0xff] %vm662_vm0, %v1104_v11 }
 0x1b0   : > { %v1106_v23 = vpop.f32.mrf.mxu1 }
 0x1b1   : > { %v1107_v24 = vadd.f32 %v3451_v60, %v1106_v23 }
 0x1b2   : > { %v4569_v31 = vld [vmem:[#allocation2 + $0x68] sm:$0xff] }
 0x1b3   : > { %1115 = vst.msk [vmem:[#allocation2 + $0x70] sm:$0xff] %vm662_vm0, %v1107_v24 }
 0x1b8   : > { %v1109_v27 = vpop.f32.mrf.mxu1 }
 0x1b9   : > { %v1110_v28 = vadd.f32 %v3451_v60, %v1109_v27 }
 0x1ba   : > { %v4565_v30 = vld [vmem:[#allocation2 + $0x70] sm:$0xff] }
 0x1bb   : > { %1116 = vst.msk [vmem:[#allocation2 + $0x78] sm:$0xff] %vm662_vm0, %v1110_v28 }
 0x1c2   : > { %v4561_v29 = vld [vmem:[#allocation2 + $0x78] sm:$0xff] }
 0x1c3   : > { %3300 = vmatpush.xpose.msk.msrb.mxu3 %vm662_vm0, %v4561_v29 }
 0x1c7   : > { %3301 = vmatpush.xpose.msk.msrb.mxu3 %vm662_vm0, %v4565_v30 }
 0x1cb   : > { %3302 = vmatpush.xpose.msk.msrb.mxu3 %vm662_vm0, %v4569_v31 }
 0x1cf   : > { %3303 = vmatpush.xpose.msk.msrb.mxu3 %vm662_vm0, %v4573_v32 }
 0x216   : > { %v1052_v41 = vpop.f32.mrf.mxu0 }
 0x217   : > { %v1053_v7 = vadd.f32 %v3452_v62, %v1052_v41 }
 0x219   : > { %1059 = vst.msk [vmem:[#allocation4 + $0x20] sm:$0xff] %vm662_vm0, %v1053_v7 }
 0x21e   : > { %v1055_v53 = vpop.f32.mrf.mxu0 }
 0x21f   : > { %v1056_v13 = vadd.f32 %v3452_v62, %v1055_v53 }
 0x220   : > { %v1581_v3 = vld [vmem:[#allocation4 + $0x20] sm:$0xff] }
 0x221   : > { %1060 = vst.msk [vmem:[#allocation4 + $0x28] sm:$0xff] %vm662_vm0, %v1056_v13  ;;  %1695 = vmatpush.msra.mxu0 %v1581_v3 }
 0x247   : > { %v1294_v47 = vpop.trf.xlu1 }
 0x248   : > { %3258 = vmatmul.msk.f32.vlgmr.msra.gmra.mxu2 %vm1310_vm1, %v1294_v47 }
 0x24e   : > { %v1432_v54 = vpop.trf.xlu0 }
 0x24f   : > { %3267 = vmatmul.msk.f32.vlgmr.msrb.gmra.mxu0 %vm1310_vm1, %v1432_v54  ;;  %v1295_v59 = vpop.trf.xlu1 }
 0x250   : > { %3259 = vmatmul.msk.f32.gmra.mxu2 %vm1310_vm1, %v1295_v59 }
 0x256   : > { %v1433_v5 = vpop.trf.xlu0 }
 0x257   : > { %3268 = vmatmul.msk.f32.gmra.mxu0 %vm1310_vm1, %v1433_v5  ;;  %v1296_v8 = vpop.trf.xlu1 }
 0x258   : > { %3260 = vmatmul.msk.f32.gmra.mxu2 %vm1310_vm1, %v1296_v8 }
 0x25e   : > { %v1434_v17 = vpop.trf.xlu0 }
 0x25f   : > { %3269 = vmatmul.msk.f32.gmra.mxu0 %vm1310_vm1, %v1434_v17  ;;  %v1297_v19 = vpop.trf.xlu1 }
 0x260   : > { %3261 = vmatmul.msk.f32.gmra.mxu2 %vm1310_vm1, %v1297_v19 }
 0x266   : > { %v1435_v25 = vpop.trf.xlu0 }
 0x267   : > { %3270 = vmatmul.msk.f32.gmra.mxu0 %vm1310_vm1, %v1435_v25 }
 0x268   : > { %3287 = vmatmul.msk.f32.vlgmr.msrb.gmra.mxu2 %vm662_vm0, %v1580_v26 }
 0x2cb   : > { %v1340_v34 = vpop.f32.mrf.mxu2 }
 0x2cc   : > { %v1477_v35 = vpop.f32.mrf.mxu0  ;;  %3279 = vmatmul.msk.f32.vlgmr.msrb.gmra.mxu1 %vm662_vm0, %v1340_v34 }
 0x2cd   : > { %3275 = vmatmul.msk.f32.vlgmr.msra.gmra.mxu3 %vm662_vm0, %v1477_v35 }
 0x2ce   : > { %1921 = vmatpush.msra.mxu3 %v4580_v33 }
 0x2d0   : > { %1922 = vmatpush.msra.mxu3 %v4587_v37 }
 0x2d2   : > { %1923 = vmatpush.msra.mxu3 %v4593_v38 }
 0x2d3   : > { %v1343_v40 = vpop.f32.mrf.mxu2 }
 0x2d4   : > { %v1480_v42 = vpop.f32.mrf.mxu0  ;;  %1924 = vmatpush.msra.mxu3 %v4599_v39  ;;  %3280 = vmatmul.msk.f32.gmra.mxu1 %vm662_vm0, %v1343_v40 }
 0x2d5   : > { %3276 = vmatmul.msk.f32.gmra.mxu3 %vm662_vm0, %v1480_v42 }
 0x2db   : > { %v1346_v43 = vpop.f32.mrf.mxu2 }
 0x2dc   : > { %v1483_v44 = vpop.f32.mrf.mxu0  ;;  %3281 = vmatmul.msk.f32.gmra.mxu1 %vm662_vm0, %v1346_v43 }
 0x2dd   : > { %3277 = vmatmul.msk.f32.gmra.mxu3 %vm662_vm0, %v1483_v44 }
 0x2e3   : > { %v1349_v45 = vpop.f32.mrf.mxu2 }
 0x2e4   : > { %v1486_v46 = vpop.f32.mrf.mxu0  ;;  %3282 = vmatmul.msk.f32.gmra.mxu1 %vm662_vm0, %v1349_v45 }
 0x2e5   : > { %3278 = vmatmul.msk.f32.gmra.mxu3 %vm662_vm0, %v1486_v46 }
 0x2eb   : > { %v1614_v47 = vpop.f32.mrf.mxu2 }
 0x2ec   : > { %v1615_v50 = vadd.f32 %v1614_v47, %v4439_v16 }
 0x2ed   : > { %3304 = vmatmul.msk.f32.vlgmr.msrb.gmra.mxu3 %vm662_vm0, %v1763_v48 }
 0x2ee   : > { %3317 = vmatpush.xpose.msk.msrb.mxu3 %vm662_vm0, %v4269_v0  ;;  %v1617_v52 = vsel %vm662_vm0, %v1615_v50, -inf }
 0x2ef   : > { %v1618_v15 = vrot.slane %v1617_v52, 4 }
 0x2f1   : > { %v1619_v54 = vmax.f32 %v1617_v52, %v1618_v15  ;;  %v4639_v52 = vld [vmem:[%s5085_s11 + $0x70] sm:$0xff]  ;;  %v4645_v15 = vld [vmem:[%s5085_s11 + $0x68] sm:$0xff] }
 0x2f2   : > { %3318 = vmatpush.xpose.msk.msrb.mxu3 %vm662_vm0, %v4277_v2 }
 0x2f3   : > { %v1620_v59 = vrot.slane %v1619_v54, 2 }
 0x2f5   : > { %v1621_v60 = vmax.f32 %v1619_v54, %v1620_v59  ;;  %v4651_v54 = vld [vmem:[%s5085_s11 + $0x60] sm:$0xff]  ;;  %v4657_v59 = vld [vmem:[%s5085_s11 + $0x58] sm:$0xff] }
 0x2f6   : > { %3319 = vmatpush.xpose.msk.msrb.mxu3 %vm662_vm0, %v4297_v9 }
 0x2f7   : > { %v1622_v61 = vrot.slane %v1621_v60, 1 }
 0x2f9   : > { %v1623_v36 = vmax.f32 %v1621_v60, %v1622_v61  ;;  %v4663_v60 = vld [vmem:[%s5085_s11 + $0x50] sm:$0xff] }
 0x2fa   : > { %3320 = vmatpush.xpose.msk.msrb.mxu3 %vm662_vm0, %v4308_v14 }
 0x2fb   : > { %v1624_v62 = vsub.f32 %v1615_v50, %v1623_v36  ;;  %v4634_v50 = vld [vmem:[%s5085_s11 + $0x78] sm:$0xff] }
 0x2fc   : > { %1970 = vmatpush.msrb.mxu0 %v4634_v50 }
 0x2fd   : > { %v1625_v41 = vmul.f32 1.442695, %v1624_v62  ;;  %v4670_v62 = vld [vmem:[%s5085_s11 + $0x48] sm:$0xff] }
 0x2fe   : > { %1971 = vmatpush.msrb.mxu0 %v4639_v52 }
 0x2ff   : > { %3467 = vpow2.f32 %v1625_v41 }
 0x300   : > { %1972 = vmatpush.msrb.mxu0 %v4645_v15 }
 0x302   : > { %1973 = vmatpush.msrb.mxu0 %v4651_v54 }
 0x304   : > { %1974 = vmatpush.msrb.mxu0 %v4657_v59 }
 0x305   : > { %v3468_v0 = vpop.eup %3467 }
 0x306   : > { %v1627_v5 = vsel %vm662_vm0, %v3468_v0, 0.0  ;;  %1975 = vmatpush.msrb.mxu0 %v4663_v60 }
 0x307   : > { %v1628_v7 = vrot.slane %v1627_v5, 4 }
 0x308   : > { %1976 = vmatpush.msrb.mxu0 %v4670_v62 }
 0x309   : > { %v1629_v8 = vadd.f32 %v1628_v7, %v1627_v5  ;;  %v4682_v7 = vld [vmem:[%s5085_s11 + $0x38] sm:$0xff] }
 0x30b   : > { %v1630_v10 = vrot.slane %v1629_v8, 2 }
 0x30d   : > { %v1631_v2 = vadd.f32 %v1630_v10, %v1629_v8  ;;  %v4688_v10 = vld [vmem:[%s5085_s11 + $0x30] sm:$0xff] }
 0x30f   : > { %v1632_v11 = vrot.slane %v1631_v2, 1 }
 0x311   : > { %v1633_v53 = vadd.f32 %v1632_v11, %v1631_v2  ;;  %v4694_v11 = vld [vmem:[%s5085_s11 + $0x28] sm:$0xff] }
 0x313   : > { %3469 = vrcp.f32 %v1633_v53 }
 0x319   : > { %v3470_v13 = vpop.eup %3469 }
 0x31a   : > { %v1635_v9 = vmul.f32 %v3470_v13, %v3468_v0  ;;  %v4676_v0 = vld [vmem:[%s5085_s11 + $0x40] sm:$0xff] }
 0x31b   : > { %1977 = vmatpush.msrb.mxu0 %v4676_v0  ;;  %v4700_v13 = vld [vmem:[%s5085_s11 + $0x20] sm:$0xff] }
 0x31c   : > { %1636 = vxpose.xlu1.b32.start.end [1/1] (short) (narrow) %v1635_v9, 32 }
 0x31d   : > { %1978 = vmatpush.msrb.mxu0 %v4682_v7 }
 0x31f   : > { %1979 = vmatpush.msrb.mxu0 %v4688_v10 }
 0x321   : > { %1980 = vmatpush.msrb.mxu0 %v4694_v11 }
 0x323   : > { %1981 = vmatpush.msrb.mxu0 %v4700_v13 }
 0x349   : > { %v1564_v17 = vpop.f32.mrf.mxu1 }
 0x350   : > { %v1523_v19 = vpop.f32.mrf.mxu3 }
 0x351   : > { %v4621_v3 = vadd.f32 %v1564_v17, %v1523_v19  ;;  %v1567_v14 = vpop.f32.mrf.mxu1  ;;  %v4706_v17 = vld [vmem:[%s5085_s11 + $0x18] sm:$0xff]  ;;  %v4712_v19 = vld [vmem:[%s5085_s11 + $0x10] sm:$0xff] }
 0x352   : > { %1982 = vmatpush.msrb.mxu0 %v4706_v17 }
 0x354   : > { %1983 = vmatpush.msrb.mxu0 %v4712_v19 }
 0x358   : > { %v1526_v23 = vpop.f32.mrf.mxu3 }
 0x359   : > { %v4623_v24 = vadd.f32 %v1567_v14, %v1526_v23  ;;  %v1570_v25 = vpop.f32.mrf.mxu1  ;;  %v4718_v14 = vld [vmem:[%s5085_s11 + $0x8] sm:$0xff]  ;;  %v4724_v23 = vld [vmem:[%s5085_s11] sm:$0xff] }
 0x35a   : > { %1984 = vmatpush.msrb.mxu0 %v4718_v14 }
 0x35c   : > { %1985 = vmatpush.msrb.mxu0 %v4724_v23 }
 0x360   : > { %v1529_v26 = vpop.f32.mrf.mxu3 }
 0x361   : > { %v4625_v27 = vadd.f32 %v1570_v25, %v1529_v26 }
 0x368   : > { %v4627_v28 = vpop.f32.mrf.mxu3 }
 0x370   : > { %v1797_v34 = vpop.f32.mrf.mxu3 }
 0x371   : > { %v1798_v35 = vadd.f32 %v1797_v34, %v4439_v16  ;;  %v4731_v34 = vld [vmem:[%s5083_s9 + $0x58] sm:$0xff] }
 0x372   : > { %1738 = vmatpush.msra.mxu2 %v4731_v34 }
 0x373   : > { %v1800_v40 = vsel %vm662_vm0, %v1798_v35, -inf }
 0x374   : > { %v1801_v42 = vrot.slane %v1800_v40, 4 }
 0x376   : > { %v1802_v43 = vmax.f32 %v1800_v40, %v1801_v42  ;;  %v2246_v40 = vld [vmem:[#allocation4 + $0x18] sm:$0xff] }
 0x378   : > { %v1803_v44 = vrot.slane %v1802_v43, 2 }
 0x37a   : > { %v1804_v45 = vmax.f32 %v1802_v43, %v1803_v44 }
 0x37c   : > { %v1805_v46 = vrot.slane %v1804_v45, 1 }
 0x37e   : > { %v1806_v47 = vmax.f32 %v1804_v45, %v1805_v46  ;;  %v3294_v45 = vld [vmem:[%s5083_s9 + $0x50] sm:$0xff]  ;;  %v3293_v46 = vld [vmem:[%s5083_s9 + $0x48] sm:$0xff] }
 0x37f   : > { %1739 = vmatpush.msra.mxu2 %v3294_v45 }
 0x380   : > { %v1807_v48 = vsub.f32 %v1798_v35, %v1806_v47  ;;  %v3292_v47 = vld [vmem:[%s5083_s9 + $0x40] sm:$0xff] }
 0x381   : > { %1740 = vmatpush.msra.mxu2 %v3293_v46 }
 0x382   : > { %v1808_v16 = vmul.f32 1.442695, %v1807_v48 }
 0x383   : > { %1741 = vmatpush.msra.mxu2 %v3292_v47 }
 0x384   : > { %3471 = vpow2.f32 %v1808_v16 }
 0x38a   : > { %v3472_v61 = vpop.eup %3471 }
 0x38b   : > { %v1810_v36 = vsel %vm662_vm0, %v3472_v61, 0.0 }
 0x38c   : > { %v1811_v41 = vrot.slane %v1810_v36, 4 }
 0x38e   : > { %v1812_v5 = vadd.f32 %v1811_v41, %v1810_v36 }
 0x390   : > { %v1813_v8 = vrot.slane %v1812_v5, 2 }
 0x392   : > { %v1814_v2 = vadd.f32 %v1813_v8, %v1812_v5 }
 0x394   : > { %v1815_v53 = vrot.slane %v1814_v2, 1 }
 0x396   : > { %v1816_v9 = vadd.f32 %v1815_v53, %v1814_v2  ;;  %v1573_v2 = vpop.f32.mrf.mxu1 }
 0x398   : > { %3473 = vrcp.f32 %v1816_v9  ;;  %v607_v9 = vld [vmem:[%s4238_s16 + $0x8] sm:$0xff] }
 0x39e   : > { %v3474_v25 = vpop.eup %3473 }
 0x39f   : > { %v1818_v26 = vmul.f32 %v3474_v25, %v3472_v61 }
 0x3a1   : > { %1819 = vxpose.xlu2.b32.start.end [1/1] (short) (narrow) %v1818_v26, 32  ;;  %v609_v26 = vmul.f32 -1e+09, %v607_v9 }
 0x3c0   : > { %v1652_v35 = vpop.trf.xlu1 }
 0x3c1   : > { %3288 = vmatmul.msk.f32.vlgmr.msra.gmra.mxu0 %vm1310_vm1, %v1652_v35 }
 0x3c2   : > { %2360 = vmatpush.msra.mxu0 %v2246_v40 }
 0x3c8   : > { %v1653_v42 = vpop.trf.xlu1 }
 0x3c9   : > { %3289 = vmatmul.msk.f32.gmra.mxu0 %vm1310_vm1, %v1653_v42 }
 0x3d0   : > { %v1654_v43 = vpop.trf.xlu1 }
 0x3d1   : > { %3290 = vmatmul.msk.f32.gmra.mxu0 %vm1310_vm1, %v1654_v43  ;;  %v3453_v43 = vld [vmem:[%s5084_s10] ss:$0 sm:$0xff] }
 0x3d8   : > { %v1655_v44 = vpop.trf.xlu1 }
 0x3d9   : > { %3291 = vmatmul.msk.f32.gmra.mxu0 %vm1310_vm1, %v1655_v44 }
 0x403   : > { %3440 = vset.pattern.permute.xlu2 %v3577_v49 }
 0x422   : > { %2107 = vperm.xlu2 %3440, %v609_v26  }
 0x43a   : > { %v1835_v48 = vpop.trf.xlu2 }
 0x43b   : > { %3305 = vmatmul.msk.f32.vlgmr.msra.gmra.mxu1 %vm1310_vm1, %v1835_v48 }
 0x43e   : > { %v1697_v16 = vpop.f32.mrf.mxu0 }
 0x43f   : > { %3296 = vmatmul.msk.f32.vlgmr.msra.gmra.mxu2 %vm662_vm0, %v1697_v16 }
 0x442   : > { %v1836_v49 = vpop.trf.xlu2 }
 0x443   : > { %3306 = vmatmul.msk.f32.gmra.mxu1 %vm1310_vm1, %v1836_v49 }
 0x446   : > { %v1700_v61 = vpop.f32.mrf.mxu0 }
 0x447   : > { %3297 = vmatmul.msk.f32.gmra.mxu2 %vm662_vm0, %v1700_v61 }
 0x44a   : > { %v1837_v36 = vpop.trf.xlu2 }
 0x44b   : > { %3307 = vmatmul.msk.f32.gmra.mxu1 %vm1310_vm1, %v1837_v36 }
 0x44e   : > { %v1703_v41 = vpop.f32.mrf.mxu0 }
 0x44f   : > { %3298 = vmatmul.msk.f32.gmra.mxu2 %vm662_vm0, %v1703_v41 }
 0x452   : > { %v1838_v5 = vpop.trf.xlu2 }
 0x453   : > { %3308 = vmatmul.msk.f32.gmra.mxu1 %vm1310_vm1, %v1838_v5 }
 0x456   : > { %v1706_v8 = vpop.f32.mrf.mxu0 }
 0x457   : > { %3299 = vmatmul.msk.f32.gmra.mxu2 %vm662_vm0, %v1706_v8 }
 0x4b8   : > { %v1880_v53 = vpop.f32.mrf.mxu1 }
 0x4b9   : > { %3313 = vmatmul.msk.f32.vlgmr.msra.gmra.mxu3 %vm662_vm0, %v1880_v53  ;;  %v1574_v53 = vadd.f32 %v1573_v2, %v4627_v28 }
 0x4ba   : > { %3326 = vmatpush.xpose.msk.msra.mxu3 %vm662_vm0, %v4287_v6  ;;  %v2103_v6 = vld [vmem:[#allocation3 + $0x8] sm:$0xff] }
 0x4be   : > { %3327 = vmatpush.xpose.msk.msra.mxu3 %vm662_vm0, %v4304_v12  ;;  %v2245_v12 = vld [vmem:[#allocation3 + $0x18] sm:$0xff] }
 0x4c0   : > { %v1883_v25 = vpop.f32.mrf.mxu1 }
 0x4c1   : > { %3314 = vmatmul.msk.f32.gmra.mxu3 %vm662_vm0, %v1883_v25 }
 0x4c2   : > { %3328 = vmatpush.xpose.msk.msra.mxu3 %vm662_vm0, %v4313_v18  ;;  %v2647_v18 = vld [vmem:[#allocation4 + $0x38] sm:$0xff] }
 0x4c6   : > { %3329 = vmatpush.xpose.msk.msra.mxu3 %vm662_vm0, %v4318_v20  ;;  %v1743_v20 = vpop.f32.mrf.mxu2 }
 0x4c7   : > { %v1755_v42 = vadd.f32 %v1743_v20, %v4621_v3 }
 0x4c8   : > { %v1886_v35 = vpop.f32.mrf.mxu1 }
 0x4c9   : > { %3315 = vmatmul.msk.f32.gmra.mxu3 %vm662_vm0, %v1886_v35 }
 0x4ce   : > { %v1746_v44 = vpop.f32.mrf.mxu2 }
 0x4d0   : > { %v1889_v40 = vpop.f32.mrf.mxu1 }
 0x4d1   : > { %3316 = vmatmul.msk.f32.gmra.mxu3 %vm662_vm0, %v1889_v40 }
 0x4d6   : > { %v1749_v49 = vpop.f32.mrf.mxu2 }
 0x4d7   : > { %v1757_v3 = vadd.f32 %v1749_v49, %v4625_v27  ;;  %v4792_v49 = vld [vmem:[%s5087_s13 + $0x78] sm:$0xff] }
 0x4d8   : > { %2032 = vmatpush.msrb.mxu2 %v4792_v49 }
 0x4d9   : > { %3321 = vmatmul.msk.f32.vlgmr.msrb.gmra.mxu3 %vm662_vm0, %v2103_v6 }
 0x4da   : > { %2443 = vmatpush.msrb.mxu3 %v4400_v57 }
 0x4dc   : > { %2444 = vmatpush.msrb.mxu3 %v4406_v58 }
 0x4de   : > { %2445 = vmatpush.msrb.mxu3 %v4414_v1  ;;  %v1756_v1 = vadd.f32 %v1746_v44, %v4623_v24  ;;  %v1752_v8 = vpop.f32.mrf.mxu2 }
 0x4e0   : > { %2446 = vmatpush.msrb.mxu3 %v4435_v21 }
 0x4e1   : > { %3330 = vmatmul.msk.f32.vlgmr.msra.gmra.mxu3 %vm662_vm0, %v2245_v12 }
 0x4e2   : > { %2761 = vmatpush.msra.mxu3 %v2647_v18 }
 0x53c   : > { %v1926_v57 = vpop.f32.mrf.mxu3 }
 0x53d   : > { %v1938_v48 = vadd.f32 %v1926_v57, %v1755_v42 }
 0x53f   : > { %v1946_v58 = vadd.f32 %v3453_v43, %v1938_v48 }
 0x541   : > { %1986 = vmatmul.f32.vlgmr.msrb.gmra.mxu0 %v1946_v58 }
 0x542   : > { %2621 = vmatpush.msrb.mxu0 %v4731_v34  ;;  %v1758_v34 = vadd.f32 %v1752_v8, %v1574_v53  ;;  %v4810_v53 = vld [vmem:[%s5087_s13 + $0x60] sm:$0xff] }
 0x544   : > { %v1929_v21 = vpop.f32.mrf.mxu3  ;;  %2622 = vmatpush.msrb.mxu0 %v3294_v45  ;;  %v4783_v45 = vpop.permute.xlu2 %2107 }
 0x545   : > { %v1939_v16 = vadd.f32 %v1929_v21, %v1756_v1 }
 0x546   : > { %2623 = vmatpush.msrb.mxu0 %v3293_v46 }
 0x547   : > { %v1947_v61 = vadd.f32 %v3453_v43, %v1939_v16 }
 0x548   : > { %2624 = vmatpush.msrb.mxu0 %v3292_v47 }
 0x549   : > { %1989 = vmatmul.f32.gmra.mxu0 %v1947_v61  ;;  %v4797_v61 = vld [vmem:[%s5087_s13 + $0x70] sm:$0xff] }
 0x54a   : > { %2033 = vmatpush.msrb.mxu2 %v4797_v61 }
 0x54c   : > { %v1932_v36 = vpop.f32.mrf.mxu3 }
 0x54d   : > { %v1940_v41 = vadd.f32 %v1932_v36, %v1757_v3 }
 0x54f   : > { %v1948_v5 = vadd.f32 %v3453_v43, %v1940_v41 }
 0x551   : > { %1992 = vmatmul.f32.gmra.mxu0 %v1948_v5  ;;  %v4804_v5 = vld [vmem:[%s5087_s13 + $0x68] sm:$0xff] }
 0x552   : > { %2034 = vmatpush.msrb.mxu2 %v4804_v5 }
 0x554   : > { %v1935_v9 = vpop.f32.mrf.mxu3  ;;  %2035 = vmatpush.msrb.mxu2 %v4810_v53 }
 0x555   : > { %v1941_v24 = vadd.f32 %v1935_v9, %v1758_v34  ;;  %v4816_v9 = vld [vmem:[%s5087_s13 + $0x58] sm:$0xff] }
 0x556   : > { %2036 = vmatpush.msrb.mxu2 %v4816_v9 }
 0x557   : > { %v1949_v25 = vadd.f32 %v3453_v43, %v1941_v24 }
 0x559   : > { %1995 = vmatmul.f32.gmra.mxu0 %v1949_v25  ;;  %v4822_v25 = vld [vmem:[%s5087_s13 + $0x50] sm:$0xff] }
 0x55a   : > { %2037 = vmatpush.msrb.mxu2 %v4822_v25 }
 0x55c   : > { %v2142_v46 = vpop.f32.mrf.mxu3 }
 0x55d   : > { %v2143_v47 = vadd.f32 %v2142_v46, %v4783_v45 }
 0x55f   : > { %v2145_v26 = vsel %vm662_vm0, %v2143_v47, -inf }
 0x560   : > { %v2146_v27 = vrot.slane %v2145_v26, 4 }
 0x562   : > { %v2147_v35 = vmax.f32 %v2145_v26, %v2146_v27  ;;  %v4829_v27 = vld [vmem:[%s5087_s13 + $0x48] sm:$0xff] }
 0x563   : > { %2038 = vmatpush.msrb.mxu2 %v4829_v27 }
 0x564   : > { %v2148_v40 = vrot.slane %v2147_v35, 2  ;;  %v2279_v6 = vpop.f32.mrf.mxu3 }
 0x565   : > { %v2280_v12 = vadd.f32 %v2279_v6, %v4783_v45  ;;  %v4835_v6 = vld [vmem:[%s5087_s13 + $0x40] sm:$0xff] }
 0x566   : > { %v2149_v28 = vmax.f32 %v2147_v35, %v2148_v40  ;;  %2039 = vmatpush.msrb.mxu2 %v4835_v6 }
 0x567   : > { %v2282_v2 = vsel %vm662_vm0, %v2280_v12, -inf }
 0x568   : > { %v2150_v18 = vrot.slane %v2149_v28, 1  ;;  %v2283_v20 = vrot.slane %v2282_v2, 4 }
 0x56a   : > { %v2151_v42 = vmax.f32 %v2149_v28, %v2150_v18  ;;  %v2284_v43 = vmax.f32 %v2282_v2, %v2283_v20  ;;  %v4841_v2 = vld [vmem:[%s5087_s13 + $0x38] sm:$0xff]  ;;  %v4847_v20 = vld [vmem:[%s5087_s13 + $0x30] sm:$0xff] }
 0x56b   : > { %2040 = vmatpush.msrb.mxu2 %v4841_v2 }
 0x56c   : > { %v2152_v44 = vsub.f32 %v2143_v47, %v2151_v42  ;;  %v2285_v57 = vrot.slane %v2284_v43, 2 }
 0x56d   : > { %2041 = vmatpush.msrb.mxu2 %v4847_v20 }
 0x56e   : > { %v2153_v48 = vmul.f32 1.442695, %v2152_v44  ;;  %v2286_v58 = vmax.f32 %v2284_v43, %v2285_v57  ;;  %v4853_v43 = vld [vmem:[%s5087_s13 + $0x28] sm:$0xff]  ;;  %v4859_v57 = vld [vmem:[%s5087_s13 + $0x20] sm:$0xff] }
 0x56f   : > { %2042 = vmatpush.msrb.mxu2 %v4853_v43 }
 0x570   : > { %3475 = vpow2.f32 %v2153_v48  ;;  %v2287_v1 = vrot.slane %v2286_v58, 1 }
 0x571   : > { %2043 = vmatpush.msrb.mxu2 %v4859_v57 }
 0x572   : > { %v2288_v21 = vmax.f32 %v2286_v58, %v2287_v1 }
 0x574   : > { %v2289_v16 = vsub.f32 %v2280_v12, %v2288_v21  ;;  %v4865_v21 = vld [vmem:[%s5087_s13 + $0x18] sm:$0xff] }
 0x575   : > { %2044 = vmatpush.msrb.mxu2 %v4865_v21 }
 0x576   : > { %v3476_v3 = vpop.eup %3475  ;;  %v2290_v36 = vmul.f32 1.442695, %v2289_v16  ;;  %v4871_v16 = vld [vmem:[%s5087_s13 + $0x10] sm:$0xff] }
 0x577   : > { %v2155_v41 = vsel %vm662_vm0, %v3476_v3, 0.0  ;;  %2045 = vmatpush.msrb.mxu2 %v4871_v16 }
 0x578   : > { %v2156_v8 = vrot.slane %v2155_v41, 4  ;;  %3477 = vpow2.f32 %v2290_v36  ;;  %v4883_v36 = vld [vmem:[%s5087_s13] sm:$0xff] }
 0x57a   : > { %v2157_v34 = vadd.f32 %v2156_v8, %v2155_v41 }
 0x57c   : > { %v2158_v24 = vrot.slane %v2157_v34, 2 }
 0x57e   : > { %v3478_v46 = vpop.eup %3477  ;;  %v2159_v47 = vadd.f32 %v2158_v24, %v2157_v34  ;;  %v3454_v34 = vld [vmem:[%s5086_s12] ss:$0 sm:$0xff] }
 0x57f   : > { %v2292_v26 = vsel %vm662_vm0, %v3478_v46, 0.0 }
 0x580   : > { %v2293_v35 = vrot.slane %v2292_v26, 4  ;;  %v2160_v40 = vrot.slane %v2159_v47, 1 }
 0x582   : > { %v2294_v12 = vadd.f32 %v2293_v35, %v2292_v26  ;;  %v2161_v28 = vadd.f32 %v2160_v40, %v2159_v47  ;;  %v4894_v47 = vstv %s610_s27  ;;  %s2983_s27 = scalar_lea.sflag [#allocation6], %s583_s21 }
 0x584   : > { %3479 = vrcp.f32 %v2161_v28  ;;  %v2295_v18 = vrot.slane %v2294_v12, 2 }
 0x586   : > { %v2296_v42 = vadd.f32 %v2295_v18, %v2294_v12 }
 0x588   : > { %v2297_v44 = vrot.slane %v2296_v42, 1 }
 0x58a   : > { %v3480_v48 = vpop.eup %3479  ;;  %v2298_v58 = vadd.f32 %v2297_v44, %v2296_v42 }
 0x58b   : > { %v2163_v1 = vmul.f32 %v3480_v48, %v3476_v3  ;;  %v4877_v3 = vld [vmem:[%s5087_s13 + $0x8] sm:$0xff] }
 0x58c   : > { %3481 = vrcp.f32 %v2298_v58  ;;  %2046 = vmatpush.msrb.mxu2 %v4877_v3 }
 0x58d   : > { %2164 = vxpose.xlu0.b32.start.end [1/1] (short) (narrow) %v2163_v1, 32 }
 0x58e   : > { %2047 = vmatpush.msrb.mxu2 %v4883_v36 }
 0x590   : > { %2402 = vmatpush.msra.mxu2 %v4518_v51 }
 0x592   : > { %v3482_v41 = vpop.eup %3481  ;;  %2403 = vmatpush.msra.mxu2 %v4523_v63 }
 0x593   : > { %v2300_v8 = vmul.f32 %v3482_v41, %v3478_v46 }
 0x594   : > { %2404 = vmatpush.msra.mxu2 %v4530_v56 }
 0x595   : > { %2301 = vxpose.xlu1.b32.start.end [1/1] (short) (narrow) %v2300_v8, 32  ;;  %v2104_v8 = vld [vmem:[#allocation4 + $0x8] sm:$0xff] }
 0x596   : > { %2405 = vmatpush.msra.mxu2 %v4541_v55 }
 0x5be   : > { %v1987_v24 = vpop.f32.mrf.mxu0 }
 0x5bf   : > { %v1988_v46 = vadd.f32 %v3454_v34, %v1987_v24 }
 0x5c1   : > { %vm1999_vm2 = vcmp.gt.f32.partialorder %v1988_v46, 0.0  ;;  %v2004_v26 = vmul.f32 %v4894_v47, %v1988_v46 }
 0x5c3   : > { %v2008_v35 = vsel %vm1999_vm2, %v1988_v46, %v2004_v26  ;;  %v3491_v46 = vld [vmem:[#allocation2 + $0x58] sm:$0xff]  ;;  %v3492_v26 = vld [vmem:[#allocation2 + $0x50] sm:$0xff] }
 0x5c4   : > { %2048 = vmatmul.f32.vlgmr.msrb.gmra.mxu2 %v2008_v35 }
 0x5c5   : > { %3364 = vmatpush.xpose.msk.msrb.mxu2 %vm662_vm0, %v4561_v29 }
 0x5c6   : > { %v1990_v51 = vpop.f32.mrf.mxu0 }
 0x5c7   : > { %v1991_v63 = vadd.f32 %v3454_v34, %v1990_v51  ;;  %v2465_v51 = vld [vmem:[#allocation4 + $0x28] sm:$0xff] }
 0x5c9   : > { %3365 = vmatpush.xpose.msk.msrb.mxu2 %vm662_vm0, %v4565_v30  ;;  %vm2000_vm3 = vcmp.gt.f32.partialorder %v1991_v63, 0.0  ;;  %v2005_v56 = vmul.f32 %v4894_v47, %v1991_v63 }
 0x5cb   : > { %v2009_v55 = vsel %vm2000_vm3, %v1991_v63, %v2005_v56  ;;  %vm2980_vm3 = vcmask 516352  }
 0x5cc   : > { %2051 = vmatmul.f32.gmra.mxu2 %v2009_v55  ;;  %v2464_v55 = vld [vmem:[#allocation3 + $0x28] sm:$0xff] }
 0x5cd   : > { %3366 = vmatpush.xpose.msk.msrb.mxu2 %vm662_vm0, %v4569_v31 }
 0x5ce   : > { %v1993_v40 = vpop.f32.mrf.mxu0 }
 0x5cf   : > { %v1994_v12 = vadd.f32 %v3454_v34, %v1993_v40 }
 0x5d1   : > { %3367 = vmatpush.xpose.msk.msrb.mxu2 %vm662_vm0, %v4573_v32  ;;  %vm2001_vm4 = vcmp.gt.f32.partialorder %v1994_v12, 0.0  ;;  %v2006_v29 = vmul.f32 %v4894_v47, %v1994_v12 }
 0x5d3   : > { %v2010_v28 = vsel %vm2001_vm4, %v1994_v12, %v2006_v29 }
 0x5d4   : > { %2054 = vmatmul.f32.gmra.mxu2 %v2010_v28 }
 0x5d6   : > { %v1996_v18 = vpop.f32.mrf.mxu0 }
 0x5d7   : > { %v1997_v30 = vadd.f32 %v3454_v34, %v1996_v18  ;;  %v4940_v34 = vld [vmem:[%s5089_s15] sm:$0xff] }
 0x5d9   : > { %vm2002_vm5 = vcmp.gt.f32.partialorder %v1997_v30, 0.0  ;;  %v2007_v42 = vmul.f32 %v4894_v47, %v1997_v30 }
 0x5db   : > { %v2011_v44 = vsel %vm2002_vm5, %v1997_v30, %v2007_v42 }
 0x5dc   : > { %2057 = vmatmul.f32.gmra.mxu2 %v2011_v44 }
 0x631   : > { %v2180_v24 = vpop.trf.xlu0 }
 0x639   : > { %v2317_v48 = vpop.trf.xlu1  ;;  %v2181_v35 = vpop.trf.xlu0 }
 0x63a   : > { %3331 = vmatmul.msk.f32.vlgmr.msra.gmra.mxu0 %vm1310_vm1, %v2317_v48 }
 0x63b   : > { %2913 = vmatpush.msra.mxu0 %v4792_v49 }
 0x63d   : > { %2914 = vmatpush.msra.mxu0 %v4797_v61 }
 0x63f   : > { %2915 = vmatpush.msra.mxu0 %v4804_v5 }
 0x641   : > { %v2318_v31 = vpop.trf.xlu1  ;;  %2916 = vmatpush.msra.mxu0 %v4810_v53  ;;  %v3455_v53 = vld [vmem:[%s5088_s14] ss:$0 sm:$0xff]  ;;  %v2182_v63 = vpop.trf.xlu0 }
 0x642   : > { %3332 = vmatmul.msk.f32.gmra.mxu0 %vm1310_vm1, %v2318_v31 }
 0x643   : > { %2917 = vmatpush.msra.mxu0 %v4816_v9 }
 0x645   : > { %2918 = vmatpush.msra.mxu0 %v4822_v25 }
 0x647   : > { %v2049_v32 = vpop.f32.mrf.mxu2  ;;  %2919 = vmatpush.msra.mxu0 %v4829_v27 }
 0x648   : > { %v2050_v1 = vadd.f32 %v3455_v53, %v2049_v32 }
 0x649   : > { %v2319_v58 = vpop.trf.xlu1  ;;  %2920 = vmatpush.msra.mxu0 %v4835_v6  ;;  %v4931_v6 = vstv %s3098_s19  ;;  %v2183_v56 = vpop.trf.xlu0 }
 0x64a   : > { %3333 = vmatmul.msk.f32.gmra.mxu0 %vm1310_vm1, %v2319_v58  ;;  %vm2061_vm9 = vcmp.gt.f32.partialorder %v2050_v1, 0.0 }
 0x64b   : > { %2921 = vmatpush.msra.mxu0 %v4841_v2 }
 0x64d   : > { %2922 = vmatpush.msra.mxu0 %v4847_v20 }
 0x64f   : > { %v2052_v49 = vpop.f32.mrf.mxu2  ;;  %2923 = vmatpush.msra.mxu0 %v4853_v43 }
 0x650   : > { %v2053_v20 = vadd.f32 %v3455_v53, %v2052_v49 }
 0x651   : > { %v2320_v61 = vpop.trf.xlu1  ;;  %2924 = vmatpush.msra.mxu0 %v4859_v57 }
 0x652   : > { %3334 = vmatmul.msk.f32.gmra.mxu0 %vm1310_vm1, %v2320_v61  ;;  %vm2062_vm8 = vcmp.gt.f32.partialorder %v2053_v20, 0.0 }
 0x653   : > { %2925 = vmatpush.msra.mxu0 %v4865_v21  ;;  %v2067_v21 = vmul.f32 %v4931_v6, %v2053_v20 }
 0x655   : > { %2926 = vmatpush.msra.mxu0 %v4871_v16 }
 0x657   : > { %v2055_v5 = vpop.f32.mrf.mxu2  ;;  %2927 = vmatpush.msra.mxu0 %v4877_v3  ;;  %v2066_v3 = vmul.f32 %v4931_v6, %v2050_v1 }
 0x658   : > { %v2056_v25 = vadd.f32 %v3455_v53, %v2055_v5 }
 0x659   : > { %2928 = vmatpush.msra.mxu0 %v4883_v36  ;;  %v2071_v36 = vsel %vm2062_vm8, %v2053_v20, %v2067_v21  ;;  %v2070_v41 = vsel %vm2061_vm9, %v2050_v1, %v2066_v3 }
 0x65a   : > { %v2068_v43 = vmul.f32 %v4931_v6, %v2056_v25  ;;  %vm2063_vm7 = vcmp.gt.f32.partialorder %v2056_v25, 0.0 }
 0x65c   : > { %v2072_v16 = vsel %vm2063_vm7, %v2056_v25, %v2068_v43 }
 0x65f   : > { %v2058_v9 = vpop.f32.mrf.mxu2 }
 0x660   : > { %v2059_v27 = vadd.f32 %v3455_v53, %v2058_v9 }
 0x662   : > { %vm2064_vm6 = vcmp.gt.f32.partialorder %v2059_v27, 0.0  ;;  %v2069_v2 = vmul.f32 %v4931_v6, %v2059_v27 }
 0x664   : > { %v2073_v57 = vsel %vm2064_vm6, %v2059_v27, %v2069_v2 }
 0x665   : > { %2087 = vmatpush.xpose.msrb.mxu1 %v2073_v57 }
 0x669   : > { %2088 = vmatpush.xpose.msrb.mxu1 %v2072_v16 }
 0x66d   : > { %2089 = vmatpush.xpose.msrb.mxu1 %v2071_v36 }
 0x671   : > { %2090 = vmatpush.xpose.msrb.mxu1 %v2070_v41 }
 0x674   : > { %2091 = vmatmul.f32.vlgmr.msrb.gmra.mxu1 %v4940_v34 }
 0x675   : > { %2223 = vmatpush.msra.mxu1 %v2104_v8 }
 0x677   : > { %3347 = vmatpush.xpose.msk.msrb.mxu1 %vm662_vm0, %v3491_v46 }
 0x67b   : > { %3348 = vmatpush.xpose.msk.msrb.mxu1 %vm662_vm0, %v3492_v26 }
 0x67c   : > { %3322 = vmatmul.msk.f32.vlgmr.msra.gmra.mxu1 %vm1310_vm1, %v2180_v24 }
 0x67f   : > { %3349 = vmatpush.xpose.msk.msrb.mxu1 %vm662_vm0, %v4462_v4 }
 0x683   : > { %3350 = vmatpush.xpose.msk.msrb.mxu1 %vm662_vm0, %v4476_v22 }
 0x684   : > { %3323 = vmatmul.msk.f32.gmra.mxu1 %vm1310_vm1, %v2181_v35 }
 0x687   : > { %2579 = vmatpush.msra.mxu1 %v2465_v51 }
 0x68c   : > { %3324 = vmatmul.msk.f32.gmra.mxu1 %vm1310_vm1, %v2182_v63 }
 0x694   : > { %3325 = vmatmul.msk.f32.gmra.mxu1 %vm1310_vm1, %v2183_v56 }
 0x69c   : > { %3351 = vmatmul.msk.f32.vlgmr.msrb.gmra.mxu1 %vm662_vm0, %v2464_v55 }
 0x69d   : > { %2852 = vmatpush.msrb.mxu1 %v4634_v50 }
 0x69f   : > { %2853 = vmatpush.msrb.mxu1 %v4639_v52 }
 0x6a1   : > { %2854 = vmatpush.msrb.mxu1 %v4645_v15 }
 0x6a3   : > { %2855 = vmatpush.msrb.mxu1 %v4651_v54 }
 0x6a5   : > { %2856 = vmatpush.msrb.mxu1 %v4657_v59 }
 0x6a7   : > { %2857 = vmatpush.msrb.mxu1 %v4663_v60  ;;  %v2095_v60 = vstv %s4982_s30  ;;  %s3524_s30 = scalar_lea.hbm %s3523_s26, 1 }
 0x6a8   : > { %p3525_p0 = scmp.ne.s32.totalorder %s3523_s26, %s3524_s30  ;;  %p3530_p4 = scmp.lt.s32.totalorder %s3528_s28, %s3524_s30 }
 0x6a9   : > { %2858 = vmatpush.msrb.mxu1 %v4670_v62 }
 0x6aa   : > { %p3526_p1 = pnand %p3525_p0, %p3707_p5  ;;  %p3531_p7 = por %p3530_p4, %p3529_p3 }
 0x6ab   : > { %2859 = vmatpush.msrb.mxu1 %v4676_v0 }
 0x6ac   : > { %p3527_p2 = pneg %p3526_p1 }
 0x6ad   : > { %2860 = vmatpush.msrb.mxu1 %v4682_v7 }
 0x6ae   : > { %p3532_p8 = pnand %p3531_p7, %p3527_p2 }
 0x6af   : > { %2861 = vmatpush.msrb.mxu1 %v4688_v10 }
 0x6b1   : > { %2862 = vmatpush.msrb.mxu1 %v4694_v11 }
 0x6b3   : > { %2863 = vmatpush.msrb.mxu1 %v4700_v13 }
 0x6b5   : > { %2864 = vmatpush.msrb.mxu1 %v4706_v17 }
 0x6b7   : > { %v2362_v4 = vpop.f32.mrf.mxu0  ;;  %2865 = vmatpush.msrb.mxu1 %v4712_v19 }
 0x6b8   : > { %3339 = vmatmul.msk.f32.vlgmr.msra.gmra.mxu2 %vm662_vm0, %v2362_v4 }
 0x6b9   : > { %2803 = vmatpush.msra.mxu2 %v4580_v33  ;;  %2866 = vmatpush.msrb.mxu1 %v4718_v14  ;;  %v2646_v33 = vld [vmem:[#allocation3 + $0x38] sm:$0xff] }
 0x6bb   : > { %2804 = vmatpush.msra.mxu2 %v4587_v37  ;;  %2867 = vmatpush.msrb.mxu1 %v4724_v23 }
 0x6bd   : > { %2805 = vmatpush.msra.mxu2 %v4593_v38 }
 0x6bf   : > { %v2365_v22 = vpop.f32.mrf.mxu0  ;;  %2806 = vmatpush.msra.mxu2 %v4599_v39 }
 0x6c0   : > { %3340 = vmatmul.msk.f32.gmra.mxu2 %vm662_vm0, %v2365_v22 }
 0x6c7   : > { %v2368_v50 = vpop.f32.mrf.mxu0 }
 0x6c8   : > { %3341 = vmatmul.msk.f32.gmra.mxu2 %vm662_vm0, %v2368_v50 }
 0x6cf   : > { %v2371_v52 = vpop.f32.mrf.mxu0 }
 0x6d0   : > { %3342 = vmatmul.msk.f32.gmra.mxu2 %vm662_vm0, %v2371_v52 }
 0x6d8   : > { %3368 = vmatmul.msk.f32.vlgmr.msrb.gmra.mxu2 %vm662_vm0, %v2646_v33 }
 0x6f1   : > { %v2092_v37 = vpop.f32.mrf.mxu1 }
 0x6f2   : > { %v2096_v7 = vadd.f32 %v2095_v60, %v2092_v37 }
 0x6f4   : > { %2098 = vst.msk [vmem:[%s4993_s20] sm:$0x1] %vm2097_vm10, %v2096_v7 }
 0x6f9   : > { %v2225_v15 = vpop.f32.mrf.mxu1 }
 0x6fa   : > { %3343 = vmatmul.msk.f32.vlgmr.msrb.gmra.mxu3 %vm662_vm0, %v2225_v15 }
 0x701   : > { %v2228_v38 = vpop.f32.mrf.mxu1 }
 0x702   : > { %3344 = vmatmul.msk.f32.gmra.mxu3 %vm662_vm0, %v2228_v38 }
 0x709   : > { %v2231_v39 = vpop.f32.mrf.mxu1 }
 0x70a   : > { %3345 = vmatmul.msk.f32.gmra.mxu3 %vm662_vm0, %v2231_v39 }
 0x711   : > { %v2234_v54 = vpop.f32.mrf.mxu1 }
 0x712   : > { %3346 = vmatmul.msk.f32.gmra.mxu3 %vm662_vm0, %v2234_v54 }
 0x719   : > { %v2498_v59 = vpop.f32.mrf.mxu1 }
 0x71a   : > { %v2499_v62 = vadd.f32 %v2498_v59, %v4783_v45 }
 0x71c   : > { %v2501_v0 = vsel %vm662_vm0, %v2499_v62, -inf }
 0x71d   : > { %v2502_v10 = vrot.slane %v2501_v0, 4 }
 0x71f   : > { %v2503_v11 = vmax.f32 %v2501_v0, %v2502_v10 }
 0x721   : > { %v2504_v13 = vrot.slane %v2503_v11, 2 }
 0x723   : > { %v2505_v17 = vmax.f32 %v2503_v11, %v2504_v13 }
 0x725   : > { %v2506_v19 = vrot.slane %v2505_v17, 1 }
 0x727   : > { %v2507_v14 = vmax.f32 %v2505_v17, %v2506_v19 }
 0x729   : > { %v2508_v23 = vsub.f32 %v2499_v62, %v2507_v14 }
 0x72b   : > { %v2509_v40 = vmul.f32 1.442695, %v2508_v23 }
 0x72d   : > { %3483 = vpow2.f32 %v2509_v40 }
 0x733   : > { %v3484_v12 = vpop.eup %3483 }
 0x734   : > { %v2511_v29 = vsel %vm662_vm0, %v3484_v12, 0.0 }
 0x735   : > { %v2512_v28 = vrot.slane %v2511_v29, 4 }
 0x737   : > { %v2513_v18 = vadd.f32 %v2512_v28, %v2511_v29 }
 0x739   : > { %v2514_v30 = vrot.slane %v2513_v18, 2 }
 0x73b   : > { %v2407_v42 = vpop.f32.mrf.mxu2  ;;  %v2515_v44 = vadd.f32 %v2514_v30, %v2513_v18 }
 0x73d   : > { %v2516_v48 = vrot.slane %v2515_v44, 1 }
 0x73f   : > { %v2517_v31 = vadd.f32 %v2516_v48, %v2515_v44 }
 0x741   : > { %3485 = vrcp.f32 %v2517_v31 }
 0x743   : > { %v2410_v32 = vpop.f32.mrf.mxu2 }
 0x747   : > { %v3486_v58 = vpop.eup %3485 }
 0x748   : > { %v2519_v49 = vmul.f32 %v3486_v58, %v3484_v12  ;;  %v3456_v12 = vld [vmem:[%s5084_s10] ss:$0 sm:$0xff] }
 0x74a   : > { %2520 = vxpose.xlu0.b32.start.end [1/1] (short) (narrow) %v2519_v49, 32 }
 0x74b   : > { %v2413_v61 = vpop.f32.mrf.mxu2 }
 0x753   : > { %v4997_v5 = vpop.f32.mrf.mxu2 }
 0x75b   : > { %v2680_v53 = vpop.f32.mrf.mxu2 }
 0x75c   : > { %v2681_v9 = vadd.f32 %v2680_v53, %v4783_v45 }
 0x75e   : > { %v2683_v25 = vsel %vm662_vm0, %v2681_v9, -inf }
 0x75f   : > { %v2684_v27 = vrot.slane %v2683_v25, 4 }
 0x761   : > { %v2685_v2 = vmax.f32 %v2683_v25, %v2684_v27 }
 0x763   : > { %v2686_v20 = vrot.slane %v2685_v2, 2 }
 0x765   : > { %v2687_v43 = vmax.f32 %v2685_v2, %v2686_v20 }
 0x767   : > { %v2688_v57 = vrot.slane %v2687_v43, 1 }
 0x769   : > { %v2689_v1 = vmax.f32 %v2687_v43, %v2688_v57  ;;  %v3457_v57 = vld [vmem:[%s5086_s12] ss:$0 sm:$0xff] }
 0x76b   : > { %v2690_v21 = vsub.f32 %v2681_v9, %v2689_v1 }
 0x76d   : > { %v2691_v16 = vmul.f32 1.442695, %v2690_v21 }
 0x76f   : > { %3487 = vpow2.f32 %v2691_v16 }
 0x775   : > { %v3488_v3 = vpop.eup %3487 }
 0x776   : > { %v2693_v36 = vsel %vm662_vm0, %v3488_v3, 0.0 }
 0x777   : > { %v2694_v41 = vrot.slane %v2693_v36, 4 }
 0x779   : > { %v2695_v8 = vadd.f32 %v2694_v41, %v2693_v36 }
 0x77b   : > { %v2696_v24 = vrot.slane %v2695_v8, 2 }
 0x77d   : > { %v2448_v46 = vpop.f32.mrf.mxu3  ;;  %v2697_v26 = vadd.f32 %v2696_v24, %v2695_v8 }
 0x77e   : > { %v2449_v45 = vadd.f32 %v2448_v46, %v2407_v42 }
 0x77f   : > { %v2698_v35 = vrot.slane %v2697_v26, 1 }
 0x781   : > { %v2699_v51 = vadd.f32 %v2698_v35, %v2697_v26 }
 0x783   : > { %3489 = vrcp.f32 %v2699_v51 }
 0x785   : > { %v2451_v63 = vpop.f32.mrf.mxu3 }
 0x786   : > { %v2452_v56 = vadd.f32 %v2451_v63, %v2410_v32 }
 0x789   : > { %v3490_v55 = vpop.eup %3489 }
 0x78a   : > { %v2701_v4 = vmul.f32 %v3490_v55, %v3488_v3 }
 0x78c   : > { %2702 = vxpose.xlu1.b32.start.end [1/1] (short) (narrow) %v2701_v4, 32 }
 0x78d   : > { %v2454_v22 = vpop.f32.mrf.mxu3 }
 0x78e   : > { %v2455_v50 = vadd.f32 %v2454_v22, %v2413_v61 }
 0x795   : > { %v2457_v11 = vpop.f32.mrf.mxu3 }
 0x796   : > { %v2458_v25 = vadd.f32 %v2457_v11, %v4997_v5 }
 0x7ee   : > { %v2536_v52 = vpop.trf.xlu0 }
 0x7ef   : > { %3352 = vmatmul.msk.f32.vlgmr.msra.gmra.mxu1 %vm1310_vm1, %v2536_v52 }
 0x7f6   : > { %v2537_v33 = vpop.trf.xlu0 }
 0x7f7   : > { %3353 = vmatmul.msk.f32.gmra.mxu1 %vm1310_vm1, %v2537_v33 }
 0x7fe   : > { %v2538_v37 = vpop.trf.xlu0 }
 0x7ff   : > { %3354 = vmatmul.msk.f32.gmra.mxu1 %vm1310_vm1, %v2538_v37 }
 0x806   : > { %v2539_v15 = vpop.trf.xlu0 }
 0x807   : > { %3355 = vmatmul.msk.f32.gmra.mxu1 %vm1310_vm1, %v2539_v15 }
 0x830   : > { %v2718_v38 = vpop.trf.xlu1 }
 0x831   : > { %3369 = vmatmul.msk.f32.vlgmr.msra.gmra.mxu3 %vm1310_vm1, %v2718_v38 }
 0x838   : > { %v2719_v39 = vpop.trf.xlu1 }
 0x839   : > { %3370 = vmatmul.msk.f32.gmra.mxu3 %vm1310_vm1, %v2719_v39 }
 0x840   : > { %v2720_v54 = vpop.trf.xlu1 }
 0x841   : > { %3371 = vmatmul.msk.f32.gmra.mxu3 %vm1310_vm1, %v2720_v54 }
 0x848   : > { %v2721_v59 = vpop.trf.xlu1 }
 0x849   : > { %3372 = vmatmul.msk.f32.gmra.mxu3 %vm1310_vm1, %v2721_v59 }
 0x86c   : > { %v2581_v62 = vpop.f32.mrf.mxu1 }
 0x86d   : > { %3360 = vmatmul.msk.f32.vlgmr.msrb.gmra.mxu0 %vm662_vm0, %v2581_v62 }
 0x874   : > { %v2584_v0 = vpop.f32.mrf.mxu1 }
 0x875   : > { %3361 = vmatmul.msk.f32.gmra.mxu0 %vm662_vm0, %v2584_v0 }
 0x87c   : > { %v2587_v7 = vpop.f32.mrf.mxu1 }
 0x87d   : > { %3362 = vmatmul.msk.f32.gmra.mxu0 %vm662_vm0, %v2587_v7 }
 0x884   : > { %v2590_v10 = vpop.f32.mrf.mxu1 }
 0x885   : > { %3363 = vmatmul.msk.f32.gmra.mxu0 %vm662_vm0, %v2590_v10 }
 0x8b4   : > { %v2763_v13 = vpop.f32.mrf.mxu3 }
 0x8b5   : > { %3377 = vmatmul.msk.f32.vlgmr.msra.gmra.mxu2 %vm662_vm0, %v2763_v13 }
 0x8bc   : > { %v2766_v17 = vpop.f32.mrf.mxu3 }
 0x8bd   : > { %3378 = vmatmul.msk.f32.gmra.mxu2 %vm662_vm0, %v2766_v17 }
 0x8c4   : > { %v2769_v19 = vpop.f32.mrf.mxu3 }
 0x8c5   : > { %3379 = vmatmul.msk.f32.gmra.mxu2 %vm662_vm0, %v2769_v19 }
 0x8cc   : > { %v2772_v14 = vpop.f32.mrf.mxu3 }
 0x8cd   : > { %3380 = vmatmul.msk.f32.gmra.mxu2 %vm662_vm0, %v2772_v14 }
 0x8ea   : > { %v2626_v23 = vpop.f32.mrf.mxu0 }
 0x8eb   : > { %v2638_v40 = vadd.f32 %v2626_v23, %v2449_v45 }
 0x8f2   : > { %v2629_v29 = vpop.f32.mrf.mxu0 }
 0x8f3   : > { %v2639_v42 = vadd.f32 %v2629_v29, %v2452_v56 }
 0x8fa   : > { %v2632_v31 = vpop.f32.mrf.mxu0 }
 0x8fb   : > { %v2640_v58 = vadd.f32 %v2632_v31, %v2455_v50  ;;  %v3458_v50 = vld [vmem:[%s5088_s14] ss:$0 sm:$0xff] }
 0x902   : > { %v2635_v9 = vpop.f32.mrf.mxu0 }
 0x903   : > { %v2641_v27 = vadd.f32 %v2635_v9, %v2458_v25 }
 0x938   : > { %v2808_v28 = vpop.f32.mrf.mxu2 }
 0x939   : > { %v2820_v18 = vadd.f32 %v2808_v28, %v2638_v40 }
 0x93b   : > { %v2828_v30 = vadd.f32 %v3456_v12, %v2820_v18 }
 0x93d   : > { %2868 = vmatmul.f32.vlgmr.msrb.gmra.mxu1 %v2828_v30 }
 0x940   : > { %v2811_v44 = vpop.f32.mrf.mxu2 }
 0x941   : > { %v2821_v48 = vadd.f32 %v2811_v44, %v2639_v42 }
 0x943   : > { %v2829_v32 = vadd.f32 %v3456_v12, %v2821_v48 }
 0x945   : > { %2871 = vmatmul.f32.gmra.mxu1 %v2829_v32 }
 0x948   : > { %v2814_v49 = vpop.f32.mrf.mxu2 }
 0x949   : > { %v2822_v61 = vadd.f32 %v2814_v49, %v2640_v58 }
 0x94b   : > { %v2830_v53 = vadd.f32 %v3456_v12, %v2822_v61 }
 0x94d   : > { %2874 = vmatmul.f32.gmra.mxu1 %v2830_v53 }
 0x950   : > { %v2817_v2 = vpop.f32.mrf.mxu2 }
 0x951   : > { %v2823_v20 = vadd.f32 %v2817_v2, %v2641_v27 }
 0x953   : > { %v2831_v43 = vadd.f32 %v3456_v12, %v2823_v20 }
 0x955   : > { %2877 = vmatmul.f32.gmra.mxu1 %v2831_v43 }
 0x9ba   : > { %v2869_v1 = vpop.f32.mrf.mxu1 }
 0x9bb   : > { %v2870_v21 = vadd.f32 %v3457_v57, %v2869_v1 }
 0x9bd   : > { %vm2881_vm11 = vcmp.gt.f32.partialorder %v2870_v21, 0.0  ;;  %v2885_v16 = vmul.f32 %v2870_v21, %v4894_v47 }
 0x9bf   : > { %v2889_v3 = vsel %vm2881_vm11, %v2870_v21, %v2885_v16 }
 0x9c0   : > { %2929 = vmatmul.f32.vlgmr.msra.gmra.mxu0 %v2889_v3 }
 0x9c2   : > { %v2872_v36 = vpop.f32.mrf.mxu1 }
 0x9c3   : > { %v2873_v41 = vadd.f32 %v3457_v57, %v2872_v36 }
 0x9c5   : > { %v2886_v5 = vmul.f32 %v2873_v41, %v4894_v47  ;;  %vm2882_vm12 = vcmp.gt.f32.partialorder %v2873_v41, 0.0 }
 0x9c7   : > { %v2890_v8 = vsel %vm2882_vm12, %v2873_v41, %v2886_v5 }
 0x9c8   : > { %2932 = vmatmul.f32.gmra.mxu0 %v2890_v8 }
 0x9ca   : > { %v2875_v24 = vpop.f32.mrf.mxu1 }
 0x9cb   : > { %v2876_v46 = vadd.f32 %v3457_v57, %v2875_v24 }
 0x9cd   : > { %v2887_v26 = vmul.f32 %v2876_v46, %v4894_v47  ;;  %vm2883_vm13 = vcmp.gt.f32.partialorder %v2876_v46, 0.0 }
 0x9cf   : > { %v2891_v45 = vsel %vm2883_vm13, %v2876_v46, %v2887_v26 }
 0x9d0   : > { %2935 = vmatmul.f32.gmra.mxu0 %v2891_v45 }
 0x9d2   : > { %v2878_v35 = vpop.f32.mrf.mxu1 }
 0x9d3   : > { %v2879_v51 = vadd.f32 %v3457_v57, %v2878_v35 }
 0x9d5   : > { %v2888_v63 = vmul.f32 %v2879_v51, %v4894_v47  ;;  %vm2884_vm14 = vcmp.gt.f32.partialorder %v2879_v51, 0.0 }
 0x9d7   : > { %v2892_v56 = vsel %vm2884_vm14, %v2879_v51, %v2888_v63 }
 0x9d8   : > { %2938 = vmatmul.f32.gmra.mxu0 %v2892_v56 }
 0xa3d   : > { %v2930_v55 = vpop.f32.mrf.mxu0 }
 0xa3e   : > { %v2931_v54 = vadd.f32 %v3458_v50, %v2930_v55 }
 0xa40   : > { %v2946_v0 = vmul.f32 %v2931_v54, %v4931_v6  ;;  %vm2942_vm2 = vcmp.gt.f32.partialorder %v2931_v54, 0.0 }
 0xa42   : > { %v2950_v10 = vsel %vm2942_vm2, %v2931_v54, %v2946_v0 }
 0xa45   : > { %v2933_v4 = vpop.f32.mrf.mxu0 }
 0xa46   : > { %v2934_v38 = vadd.f32 %v3458_v50, %v2933_v4 }
 0xa48   : > { %v2947_v59 = vmul.f32 %v2934_v38, %v4931_v6  ;;  %vm2943_vm1 = vcmp.gt.f32.partialorder %v2934_v38, 0.0 }
 0xa4a   : > { %v2951_v7 = vsel %vm2943_vm1, %v2934_v38, %v2947_v59 }
 0xa4d   : > { %v2936_v22 = vpop.f32.mrf.mxu0 }
 0xa4e   : > { %v2937_v33 = vadd.f32 %v3458_v50, %v2936_v22 }
 0xa50   : > { %v2948_v39 = vmul.f32 %v2937_v33, %v4931_v6  ;;  %vm2944_vm0 = vcmp.gt.f32.partialorder %v2937_v33, 0.0 }
 0xa52   : > { %v2952_v62 = vsel %vm2944_vm0, %v2937_v33, %v2948_v39 }
 0xa55   : > { %v2939_v52 = vpop.f32.mrf.mxu0 }
 0xa56   : > { %v2940_v37 = vadd.f32 %v3458_v50, %v2939_v52 }
 0xa58   : > { %vm2945_vm15 = vcmp.gt.f32.partialorder %v2940_v37, 0.0  ;;  %v2949_v15 = vmul.f32 %v2940_v37, %v4931_v6 }
 0xa5a   : > { %v2953_v47 = vsel %vm2945_vm15, %v2940_v37, %v2949_v15 }
 0xa5b   : > { %2967 = vmatpush.xpose.msrb.mxu3 %v2953_v47 }
 0xa5f   : > { %2968 = vmatpush.xpose.msrb.mxu3 %v2952_v62 }
 0xa63   : > { %2969 = vmatpush.xpose.msrb.mxu3 %v2951_v7 }
 0xa67   : > { %2970 = vmatpush.xpose.msrb.mxu3 %v2950_v10 }
 0xa6a   : > { %2971 = vmatmul.f32.vlgmr.msrb.gmra.mxu3 %v4940_v34 }
 0xaed   : > { %v2972_v11 = vpop.f32.mrf.mxu3 }
 0xaee   : > { %v2975_v13 = vadd.f32 %v2972_v11, %v2095_v60 }
 0xaf0   : > { %2977 = vrot.lane.b32.xlu1 %v2975_v13, %s3578_s0 }
 0xb62   : > { %v2978_v6 = vpop.permute.xlu1 %2977 }
 0xb63   : > { %2981 = vst.msk [vmem:[%s4993_s20] sm:$0x1] %vm2980_vm3, %v2978_v6 }
 0xb64   : > { %3535 = shalt.err (!%p3532_p8)
}
 0xb65   : > { %3390 = dma.vmem_to_hbm [thread:$0]  (%p3707_p5), %s2994_s29, 16, %s2996_s18, %s2983_s27  }
 0xb66 PF: > { %s5114_s21 = sld [smem:[#allocation13_spill]] }
 0xb67   : > { %s5115_s20 = sld [smem:[#allocation11_spill]] }
 0xb6c   : > { %p3402_p9 = scmp.ge.s32.totalorder %s5114_s21, 2 }
 0xb6d   : > { %s3007_s23 = sand.u32 1, %s5115_s20  }
 0xb6e   : > { %p3397_p10 = pnand %p3402_p9, %p3711_p6  ;;  %s3008_s24 = scalar_lea.sflag [#allocation6], %s3007_s23 }
 0xb70   : > { %p3398_p11 = pneg %p3397_p10 }
 0xb72   : > { %3557 = dma.done.wait (%p3398_p11), %s3008_s24, 16  }
 0xb73   : > { %3559 = vsyncadd (%p3398_p11), %s3008_s24, 4294967280  ;;  %s5117_s27 = sld [smem:[#allocation14_spill]]  ;;  %s5120_s24 = smov %s3566_s25 }
 0xb74   : > { %s5118_s26 = sld [smem:[#allocation12_spill]] }
 0xb75   : > { %s5119_s30 = sld [smem:[#allocation15_spill]] }
 0xb79   : > { %p28_p12 = scmp.ge.s32.totalorder %s5117_s27, 4  }
 0xb7a   : > { %s5121_s25 = smov %s5118_s26 }
 0xb7b   : > { %s5122_s26 = smov %s5119_s30  ;;  %30 = sbr.rel (!%p28_p12) target bundleno = 8 (0x8), region = 164 }
 0xb80   :  { %3013 = vsyncpa [#allocation6], 1 }
 0xb81   :  { %3015 = vsyncpa [#allocation6 + $0x1], 1 }
 0xb82   :  { %3016 = vsyncpa [#allocation7], 1 }
 0xb83   :  { %3018 = vsyncpa [#allocation7 + $0x1], 1 }

</bundles_post_ra>
